<compile_context>
chip_gen: v5e
topology: v5e:2x2
jax: 0.10.0
libtpu: 0.0.40
codegen_flags: <defaults>
</compile_context>

<pallas_src>
import functools

import jax
import jax.numpy as jnp
from jax.experimental import pallas as pl
from jax.experimental.pallas import tpu as pltpu
from jax.scipy.linalg import block_diag


ROW_PACK = 8  # batch rows folded into the 128-lane dimension


def _mlp_kernel(x_ref, w1_ref, b1_ref, w2_ref, b2_ref, w3_ref, b3_ref, o_ref):
    """Fused 3-layer MLP on one lane-packed batch tile.

    x_ref : (TR, P*D0)        P=8 batch rows packed along lanes (storage dtype)
    wK_ref: (P*D_{k-1}, P*D_k) block-diagonal weight (storage dtype)
    bK_ref: (1, P*D_k)         tiled bias (float32)
    o_ref : (TR, P*D3)         lane-dense output tile
    """
    x = x_ref[...]

    # Layer 1: Linear + ReLU (MXU matmul, f32 accumulation, f32 elementwise).
    h = jnp.dot(x, w1_ref[...], preferred_element_type=jnp.float32)
    h = jnp.maximum(h + b1_ref[...], 0.0)

    # Layer 2: Linear + ReLU.  (If storage is bf16, intermediates are downcast to
    # bf16 before feeding the MXU — documented, matches the loose bf16 tolerance.)
    h = jnp.dot(h.astype(w2_ref.dtype), w2_ref[...],
                preferred_element_type=jnp.float32)
    h = jnp.maximum(h + b2_ref[...], 0.0)

    # Output layer: Linear + Tanh.
    h = jnp.dot(h.astype(w3_ref.dtype), w3_ref[...],
                preferred_element_type=jnp.float32)
    o_ref[...] = jnp.tanh(h + b3_ref[...]).astype(o_ref.dtype)

    # TODO(synk): nn.Dropout(p>0) at train time (needs pltpu.prng_*) and
    # nn.BatchNorm1d batch statistics are not implemented (config disables both).


def init_linear_params(key, fan_in, fan_out, dtype=jnp.float32):
    """torch.nn.Linear-style init U(-1/sqrt(fan_in), 1/sqrt(fan_in)).

    Returns weight already transposed to (fan_in, fan_out) and bias (1, fan_out).
    """
    kw, kb = jax.random.split(key)
    bound = 1.0 / jnp.sqrt(jnp.asarray(fan_in, dtype))
    w = jax.random.uniform(kw, (fan_in, fan_out), dtype, minval=-bound, maxval=bound)
    b = jax.random.uniform(kb, (1, fan_out), dtype, minval=-bound, maxval=bound)
    return w, b


def prepare_params(w1, b1, w2, b2, w3, b3, *, dtype=jnp.bfloat16):
    """One-time packing of nn.Linear params for the lane-dense kernel.

    wK must already be (fan_in, fan_out); bK is (1, fan_out).  Weights become
    ROW_PACK-way block-diagonal so ROW_PACK batch rows share the lane dimension;
    biases are tiled.  Biases stay float32 (added post-MXU in f32)."""
    P = ROW_PACK
    pack_w = lambda w: block_diag(*([jnp.asarray(w)] * P)).astype(dtype)
    pack_b = lambda b: jnp.tile(jnp.asarray(b, jnp.float32).reshape(1, -1), (1, P))
    return (pack_w(w1), pack_b(b1), pack_w(w2), pack_b(b2), pack_w(w3), pack_b(b3))


def _vmem_budget_bytes():
    """Generation-aware VMEM budget (~3/4 of physical)."""
    try:
        phys = int(pltpu.get_tpu_info().vmem_capacity_bytes)
    except Exception:
        phys = 64 << 20  # conservative (v7x-sized) fallback
    return (3 * phys) // 4  # ~48 MiB on v7x (64 MiB), ~96 MiB on v5e/v6e (128 MiB)


def _choose_tile_rows(n_rows, itemsize, dims, w_bytes, budget, max_tile=4096):
    """Largest packed-row tile (multiple of the sublane pack) that fits the budget.

    Accounting uses the real (lane-dense) tile widths, which are already multiples
    of 128 lanes, plus the f32 compute temporaries the kernel materializes."""
    dx, d1, d2, do = dims                       # packed feature widths
    sub = 16 if itemsize == 2 else 8            # sublane pack: 16 rows/vreg bf16, 8 f32
    per_row = (2 * dx * itemsize                # double-buffered x tile
               + 2 * do * itemsize              # double-buffered out tile
               + (dx + d1 + d2 + do) * 4)       # f32 intermediates (h1, h2, h3, upcast x)
    headroom = 4 << 20
    avail = budget - 2 * w_bytes - headroom     # weights assumed double-buffered
    tile = max(sub, min(avail // per_row, max_tile))
    tile = max(sub, (tile // sub) * sub)
    data = -(-n_rows // sub) * sub              # never bigger than (rounded) data
    return int(min(tile, data))


@functools.partial(jax.jit, static_argnames=("tile_r", "vmem_limit"))
def _mlp_packed(xp, w1p, b1p, w2p, b2p, w3p, b3p, *, tile_r, vmem_limit):
    R, DX = xp.shape
    D1, D2, DO = w1p.shape[1], w2p.shape[1], w3p.shape[1]
    n_steps = R // tile_r  # R is padded to a multiple of tile_r by the caller

    isz = lambda a: jnp.dtype(a.dtype).itemsize
    w_bytes = sum(int(a.size) * isz(a) for a in (w1p, b1p, w2p, b2p, w3p, b3p))
    cost = pl.CostEstimate(
        flops=2 * R * (DX * D1 + D1 * D2 + D2 * DO),
        transcendentals=R * DO,                       # tanh
        bytes_accessed=R * DX * isz(xp) + w_bytes + R * DO * isz(xp),
    )

    # Weights/biases: same full block every grid step -> stay resident in VMEM.
    full = lambda shape: pl.BlockSpec(shape, lambda i: (0, 0))

    return pl.pallas_call(
        _mlp_kernel,
        out_shape=jax.ShapeDtypeStruct((R, DO), xp.dtype),
        grid_spec=pltpu.PrefetchScalarGridSpec(
            num_scalar_prefetch=0,
            grid=(n_steps,),
            in_specs=[
                pl.BlockSpec((tile_r, DX), lambda i: (i, 0)),   # streamed x tile
                full(w1p.shape), full(b1p.shape),
                full(w2p.shape), full(b2p.shape),
                full(w3p.shape), full(b3p.shape),
            ],
            out_specs=pl.BlockSpec((tile_r, DO), lambda i: (i, 0)),
        ),
        compiler_params=pltpu.CompilerParams(
            dimension_semantics=("parallel",),
            vmem_limit_bytes=int(vmem_limit),
        ),
        cost_estimate=cost,
    )(xp, w1p, b1p, w2p, b2p, w3p, b3p)


def mlp_forward(x, packed_params):
    """y = tanh(relu(relu(x@W1+b1)@W2+b2)@W3+b3) on the lane-packed kernel."""
    w1p, b1p, w2p, b2p, w3p, b3p = packed_params
    P = ROW_PACK
    B, D0 = x.shape
    D3 = w3p.shape[1] // P
    x = x.astype(w1p.dtype)                       # bf16 streaming by default

    isz_x = jnp.dtype(x.dtype).itemsize
    w_bytes = sum(int(a.size) * jnp.dtype(a.dtype).itemsize
                  for a in (w1p, b1p, w2p, b2p, w3p, b3p))
    dims = (w1p.shape[0], w1p.shape[1], w2p.shape[1], w3p.shape[1])

    budget = _vmem_budget_bytes()
    n_rows = -(-B // P)                           # packed rows needed
    tile_r = _choose_tile_rows(n_rows, isz_x, dims, w_bytes, budget)
    n_steps = -(-n_rows // tile_r)
    rows_pad = n_steps * tile_r
    b_pad = rows_pad * P

    if b_pad != B:
        x = jnp.pad(x, ((0, b_pad - B), (0, 0)))
    xp = x.reshape(rows_pad, P * D0)              # free contiguous reshape

    outp = _mlp_packed(xp, w1p, b1p, w2p, b2p, w3p, b3p,
                       tile_r=tile_r, vmem_limit=budget)
    return outp.reshape(b_pad, D3)[:B]            # free reshape; slice off padding


def _reference(x, w1, b1, w2, b2, w3, b3):
    h = jnp.maximum(x @ w1 + b1, 0.0)
    h = jnp.maximum(h @ w2 + b2, 0.0)
    return jnp.tanh(h @ w3 + b3)


if __name__ == "__main__":
    layers = [32, 64, 64, 16]   # [in, hidden, hidden, out]
    batch = 1024

    key = jax.random.PRNGKey(0)
    k_x, k1, k2, k3 = jax.random.split(key, 4)

    x = jax.random.normal(k_x, (batch, layers[0]), jnp.float32)
    w1, b1 = init_linear_params(k1, layers[0], layers[1])
    w2, b2 = init_linear_params(k2, layers[1], layers[2])
    w3, b3 = init_linear_params(k3, layers[2], layers[3])
    ref = _reference(x, w1, b1, w2, b2, w3, b3)

    # --- f32 storage path (tight check vs pure-JAX reference) --------------
    params_f32 = prepare_params(w1, b1, w2, b2, w3, b3, dtype=jnp.float32)
    out = jax.block_until_ready(mlp_forward(x, params_f32))
    assert out.shape == (batch, layers[-1])
    assert jnp.allclose(out, ref, atol=1e-4, rtol=1e-4)

    # --- ragged batch (exercises padding + lane-packing path) --------------
    out_small = jax.block_until_ready(mlp_forward(x[:50], params_f32))
    assert out_small.shape == (50, layers[-1])
    assert jnp.allclose(out_small, ref[:50], atol=1e-4, rtol=1e-4)

    # --- bf16 streaming default (halves HBM traffic; f32 MXU accumulation) -
    params_bf16 = prepare_params(w1, b1, w2, b2, w3, b3)   # dtype=bf16 default
    out_bf16 = jax.block_until_ready(mlp_forward(x, params_bf16))
    assert out_bf16.shape == (batch, layers[-1])
    assert jnp.allclose(out_bf16.astype(jnp.float32), ref, atol=1e-1, rtol=1e-1)

    print("KERNEL_OK")
</pallas_src>

<mosaic_0001>
module attributes {stable_mosaic.version = 11 : i64} {
  func.func @_mlp_kernel(%arg0: i32, %arg1: memref<128x256xf32, #tpu.memory_space<vmem>>, %arg2: memref<256x512xf32, #tpu.memory_space<vmem>>, %arg3: memref<1x512xf32, #tpu.memory_space<vmem>>, %arg4: memref<512x512xf32, #tpu.memory_space<vmem>>, %arg5: memref<1x512xf32, #tpu.memory_space<vmem>>, %arg6: memref<512x128xf32, #tpu.memory_space<vmem>>, %arg7: memref<1x128xf32, #tpu.memory_space<vmem>>, %arg8: memref<128x128xf32, #tpu.memory_space<vmem>>) attributes {dimension_semantics = [#tpu.dimension_semantics<parallel>], iteration_bounds = array<i64: 1>, scalar_prefetch = 0 : i64, scratch_operands = 0 : i64, tpu.core_type = #tpu.core_type<tc>, window_params = [{transform_indices = @transform_0, window_bounds = array<i64: 128, 256>}, {pipeline_mode = #tpu.pipeline_mode<synchronous>, transform_indices = @transform_1, window_bounds = array<i64: 256, 512>}, {pipeline_mode = #tpu.pipeline_mode<synchronous>, transform_indices = @transform_2, window_bounds = array<i64: 1, 512>}, {pipeline_mode = #tpu.pipeline_mode<synchronous>, transform_indices = @transform_3, window_bounds = array<i64: 512, 512>}, {pipeline_mode = #tpu.pipeline_mode<synchronous>, transform_indices = @transform_4, window_bounds = array<i64: 1, 512>}, {pipeline_mode = #tpu.pipeline_mode<synchronous>, transform_indices = @transform_5, window_bounds = array<i64: 512, 128>}, {pipeline_mode = #tpu.pipeline_mode<synchronous>, transform_indices = @transform_6, window_bounds = array<i64: 1, 128>}, {transform_indices = @transform_7, window_bounds = array<i64: 128, 128>}]} {
    %c0 = arith.constant 0 : index
    %c0_0 = arith.constant 0 : index
    %0 = vector.load %arg1[%c0, %c0_0] : memref<128x256xf32, #tpu.memory_space<vmem>>, vector<128x256xf32>
    %c0_1 = arith.constant 0 : index
    %c0_2 = arith.constant 0 : index
    %1 = vector.load %arg2[%c0_1, %c0_2] : memref<256x512xf32, #tpu.memory_space<vmem>>, vector<256x512xf32>
    %cst = arith.constant dense<0.000000e+00> : vector<128x512xf32>
    %2 = tpu.matmul %0, %1, %cst {dimension_numbers = #tpu.dot_dimension_numbers<[1], [0], [0], [1], [0, 0, 1, 1], [], []>} : vector<128x256xf32>, vector<256x512xf32>, vector<128x512xf32> -> vector<128x512xf32>
    %c0_3 = arith.constant 0 : index
    %c0_4 = arith.constant 0 : index
    %3 = vector.load %arg3[%c0_3, %c0_4] : memref<1x512xf32, #tpu.memory_space<vmem>>, vector<1x512xf32>
    %4 = vector.broadcast %3 : vector<1x512xf32> to vector<128x512xf32>
    %5 = arith.addf %2, %4 : vector<128x512xf32>
    %cst_5 = arith.constant 0.000000e+00 : f32
    %6 = vector.broadcast %cst_5 : f32 to vector<128x512xf32>
    %7 = arith.maximumf %5, %6 : vector<128x512xf32>
    %c0_6 = arith.constant 0 : index
    %c0_7 = arith.constant 0 : index
    %8 = vector.load %arg4[%c0_6, %c0_7] : memref<512x512xf32, #tpu.memory_space<vmem>>, vector<512x512xf32>
    %cst_8 = arith.constant dense<0.000000e+00> : vector<128x512xf32>
    %9 = tpu.matmul %7, %8, %cst_8 {dimension_numbers = #tpu.dot_dimension_numbers<[1], [0], [0], [1], [0, 0, 1, 1], [], []>} : vector<128x512xf32>, vector<512x512xf32>, vector<128x512xf32> -> vector<128x512xf32>
    %c0_9 = arith.constant 0 : index
    %c0_10 = arith.constant 0 : index
    %10 = vector.load %arg5[%c0_9, %c0_10] : memref<1x512xf32, #tpu.memory_space<vmem>>, vector<1x512xf32>
    %11 = vector.broadcast %10 : vector<1x512xf32> to vector<128x512xf32>
    %12 = arith.addf %9, %11 : vector<128x512xf32>
    %cst_11 = arith.constant 0.000000e+00 : f32
    %13 = vector.broadcast %cst_11 : f32 to vector<128x512xf32>
    %14 = arith.maximumf %12, %13 : vector<128x512xf32>
    %c0_12 = arith.constant 0 : index
    %c0_13 = arith.constant 0 : index
    %15 = vector.load %arg6[%c0_12, %c0_13] : memref<512x128xf32, #tpu.memory_space<vmem>>, vector<512x128xf32>
    %cst_14 = arith.constant dense<0.000000e+00> : vector<128x128xf32>
    %16 = tpu.matmul %14, %15, %cst_14 {dimension_numbers = #tpu.dot_dimension_numbers<[1], [0], [0], [1], [0, 0, 1, 1], [], []>} : vector<128x512xf32>, vector<512x128xf32>, vector<128x128xf32> -> vector<128x128xf32>
    %c0_15 = arith.constant 0 : index
    %c0_16 = arith.constant 0 : index
    %17 = vector.load %arg7[%c0_15, %c0_16] : memref<1x128xf32, #tpu.memory_space<vmem>>, vector<1x128xf32>
    %18 = vector.broadcast %17 : vector<1x128xf32> to vector<128x128xf32>
    %19 = arith.addf %16, %18 : vector<128x128xf32>
    %20 = math.tanh %19 : vector<128x128xf32>
    %c0_17 = arith.constant 0 : index
    %c0_18 = arith.constant 0 : index
    %21 = vector.load %arg8[%c0_17, %c0_18] : memref<128x128xf32, #tpu.memory_space<vmem>>, vector<128x128xf32>
    tpu.vector_store %arg8[%c0_17, %c0_18], %20 {strides = array<i32>} : memref<128x128xf32, #tpu.memory_space<vmem>>, vector<128x128xf32>,
    return
  }
  func.func @transform_0(%arg0: i32) -> (i32, i32) {
    %c0_i32 = arith.constant 0 : i32
    %c0_i32_0 = arith.constant 0 : i32
    return %arg0, %c0_i32 : i32, i32
  }
  func.func @transform_1(%arg0: i32) -> (i32, i32) {
    %c0_i32 = arith.constant 0 : i32
    %c0_i32_0 = arith.constant 0 : i32
    %c0_i32_1 = arith.constant 0 : i32
    return %c0_i32, %c0_i32_0 : i32, i32
  }
  func.func @transform_2(%arg0: i32) -> (i32, i32) {
    %c0_i32 = arith.constant 0 : i32
    %c0_i32_0 = arith.constant 0 : i32
    %c0_i32_1 = arith.constant 0 : i32
    return %c0_i32, %c0_i32_0 : i32, i32
  }
  func.func @transform_3(%arg0: i32) -> (i32, i32) {
    %c0_i32 = arith.constant 0 : i32
    %c0_i32_0 = arith.constant 0 : i32
    %c0_i32_1 = arith.constant 0 : i32
    return %c0_i32, %c0_i32_0 : i32, i32
  }
  func.func @transform_4(%arg0: i32) -> (i32, i32) {
    %c0_i32 = arith.constant 0 : i32
    %c0_i32_0 = arith.constant 0 : i32
    %c0_i32_1 = arith.constant 0 : i32
    return %c0_i32, %c0_i32_0 : i32, i32
  }
  func.func @transform_5(%arg0: i32) -> (i32, i32) {
    %c0_i32 = arith.constant 0 : i32
    %c0_i32_0 = arith.constant 0 : i32
    %c0_i32_1 = arith.constant 0 : i32
    return %c0_i32, %c0_i32_0 : i32, i32
  }
  func.func @transform_6(%arg0: i32) -> (i32, i32) {
    %c0_i32 = arith.constant 0 : i32
    %c0_i32_0 = arith.constant 0 : i32
    %c0_i32_1 = arith.constant 0 : i32
    return %c0_i32, %c0_i32_0 : i32, i32
  }
  func.func @transform_7(%arg0: i32) -> (i32, i32) {
    %c0_i32 = arith.constant 0 : i32
    %c0_i32_0 = arith.constant 0 : i32
    return %arg0, %c0_i32 : i32, i32
  }
}

</mosaic_0001>

<bundles_post_ra>
// kernel: _mlp_packed.1
= control target key start
LH: loop header
LB: loop body
LE: loop exit
PB: predicated region body
PF: predicated region fallthrough
CT: control target
= control target key end

     0   :  { %12 = vsyncpa [#allocation3], 0  ;;  %s4019_s0 = inlined_call_operand.hbm [shape: f32[128,256], index: 0, kind: input, shape index: {}]   ;;  %s4020_s1 = inlined_call_operand.hbm [shape: f32[256,512], index: 1, kind: input, shape index: {}]   ;;  %s4021_s2 = inlined_call_operand.hbm [shape: f32[1,512], index: 2, kind: input, shape index: {}]   ;;  %s4022_s3 = inlined_call_operand.hbm [shape: f32[512,512], index: 3, kind: input, shape index: {}]   ;;  %s4023_s4 = inlined_call_operand.hbm [shape: f32[1,512], index: 4, kind: input, shape index: {}]   ;;  %s4024_s5 = inlined_call_operand.hbm [shape: f32[512,128], index: 5, kind: input, shape index: {}]   ;;  %s4025_s6 = inlined_call_operand.vmem [shape: f32[1,128], index: 6, kind: input, shape index: {}]   ;;  %s4026_s7 = inlined_call_operand.hbm [shape: f32[128,128], index: 7, kind: output, shape index: {}]  }
   0x1   :  { %13 = vsyncpa [#allocation6], 0 }
   0x2   :  { %14 = vsyncpa [#allocation9], 0 }
   0x3   :  { %15 = vsyncpa [#allocation12], 0  ;;  %s34_s26 = sshll.u32 %s4020_s1, 4  ;;  %s35_s26 = int_to_ptr.hbm [resolvable:$true] %s34_s26 }
   0x4   :  { %16 = vsyncpa [#allocation4], 0  ;;  %s2848_s27 = smov [#allocation5]   ;;  %s58_s8 = sshll.u32 %s4022_s3, 4  ;;  %s59_s8 = int_to_ptr.hbm [resolvable:$true] %s58_s8 }
   0x5   :  { %s36_s28 = sshll.u32 %s2848_s27, 4  ;;  %s2849_s9 = smov 512   ;;  %s37_s28 = int_to_ptr.vmem [resolvable:$true] %s36_s28 }
   0x6   :  { %s2850_s10 = smov 32   ;;  %s2851_s11 = smov [#allocation8]  }
   0x7   :  { %42 = dma.hbm_to_vmem [thread:$0]  %s35_s26, 16384, %s37_s28, [#allocation6], %s2849_s9, %s2849_s9, %s2850_s10  }
   0x8   :  { %s60_s12 = sshll.u32 %s2851_s11, 4  ;;  %s21_s15 = sshll.u32 %s4019_s0, 4  ;;  %s61_s12 = int_to_ptr.vmem [resolvable:$true] %s60_s12  ;;  %s22_s15 = int_to_ptr.hbm [resolvable:$true] %s21_s15 }
   0x9   :  { %66 = dma.hbm_to_vmem [thread:$0]  %s59_s8, 32768, %s61_s12, [#allocation9], %s2849_s9, %s2849_s9, %s2850_s10  }
   0xa   :  { %s2852_s1 = smov [#allocation2]   ;;  %s48_s3 = sshll.u32 %s4021_s2, 4  ;;  %s49_s3 = int_to_ptr.hbm [resolvable:$true] %s48_s3 }
   0xb   :  { %s23_s16 = sshll.u32 %s2852_s1, 4  ;;  %s2853_s19 = smov 256   ;;  %s24_s16 = int_to_ptr.vmem [resolvable:$true] %s23_s16 }
   0xc   :  { %s2854_s20 = smov 16   ;;  %s2855_s21 = smov [#allocation7]  }
   0xd   :  { %29 = dma.hbm_to_vmem [thread:$0]  %s22_s15, 4096, %s24_s16, [#allocation3], %s2853_s19, %s2853_s19, %s2854_s20  }
   0xe   :  { %s50_s22 = sshll.u32 %s2855_s21, 4  ;;  %s72_s0 = sshll.u32 %s4023_s4, 4  ;;  %s51_s22 = int_to_ptr.vmem [resolvable:$true] %s50_s22  ;;  %s73_s0 = int_to_ptr.hbm [resolvable:$true] %s72_s0 }
   0xf   :  { %53 = dma.hbm_to_vmem [thread:$0]  %s49_s3, 64, %s51_s22, [#allocation6]  }
  0x10   :  { %s82_s27 = sshll.u32 %s4024_s5, 4  ;;  %s2856_s28 = smov [#allocation10]   ;;  %s83_s27 = int_to_ptr.hbm [resolvable:$true] %s82_s27 }
  0x11   :  { %s74_s29 = sshll.u32 %s2856_s28, 4  ;;  %s2857_s2 = smov [#allocation11]   ;;  %s75_s29 = int_to_ptr.vmem [resolvable:$true] %s74_s29 }
  0x12   :  { %77 = dma.hbm_to_vmem [thread:$0]  %s73_s0, 64, %s75_s29, [#allocation9]  }
  0x13   :  { %s84_s30 = sshll.u32 %s2857_s2, 4  ;;  %s2858_s8 = smov 128   ;;  %s85_s30 = int_to_ptr.vmem [resolvable:$true] %s84_s30 }
  0x14   :  { %s2859_s9 = smov 8  }
  0x15   :  { %90 = dma.hbm_to_vmem [thread:$0]  %s83_s27, 8192, %s85_s30, [#allocation12], %s2858_s8, %s2858_s8, %s2859_s9  }
  0x16   :  { %2838 = dma.done.wait [#allocation3], 4096  }
  0x17   :  { %2839 = vsyncadd [#allocation3], 4294963200 }
  0x18   :  { %2840 = dma.done.wait [#allocation6], 16448  }
  0x19   :  { %2841 = vsyncadd [#allocation6], 4294950848 }
  0x1a   :  { %2842 = dma.done.wait [#allocation9], 32832  }
  0x1b   :  { %2843 = vsyncadd [#allocation9], 4294934464 }
  0x1c   :  { %2844 = dma.done.wait [#allocation12], 8192  }
  0x1d   :  { %2845 = vsyncadd [#allocation12], 4294959104  ;;  %v209_v0 = vld [vmem:[#allocation5 + $0x1e0] sm:$0xff]  ;;  %v210_v2 = vld [vmem:[#allocation5 + $0x1e8] sm:$0xff]  ;;  %s2607_s13 = sshll.u32 %s4026_s7, 4  ;;  %s2608_s13 = int_to_ptr.hbm [resolvable:$true] %s2607_s13 }
  0x1e   :  { %v273_v1 = vld [vmem:[#allocation5 + $0x3e0] sm:$0xff]  ;;  %287 = vmatpush.msra.mxu0 %v209_v0  ;;  %v206_v5 = vld [vmem:[#allocation5 + $0x1c8] sm:$0xff]  ;;  %417 = vmatpush.msra.mxu2 %v210_v2  ;;  %v212_v2 = vld [vmem:[#allocation5 + $0x1f8] sm:$0xff] }
  0x1f   :  { %352 = vmatpush.msra.mxu1 %v273_v1  ;;  %v205_v3 = vld [vmem:[#allocation5 + $0x1c0] sm:$0xff]  ;;  %v274_v6 = vld [vmem:[#allocation5 + $0x3e8] sm:$0xff] }
  0x20   :  { %v269_v4 = vld [vmem:[#allocation5 + $0x3c0] sm:$0xff]  ;;  %288 = vmatpush.msra.mxu0 %v205_v3  ;;  %v202_v9 = vld [vmem:[#allocation5 + $0x1a8] sm:$0xff]  ;;  %418 = vmatpush.msra.mxu2 %v206_v5  ;;  %v276_v3 = vld [vmem:[#allocation5 + $0x3f8] sm:$0xff] }
  0x21   :  { %v201_v7 = vld [vmem:[#allocation5 + $0x1a0] sm:$0xff]  ;;  %353 = vmatpush.msra.mxu1 %v269_v4  ;;  %v270_v10 = vld [vmem:[#allocation5 + $0x3c8] sm:$0xff]  ;;  %482 = vmatpush.msra.mxu3 %v274_v6  ;;  %v211_v4 = vld [vmem:[#allocation5 + $0x1f0] sm:$0xff] }
  0x22   :  { %v265_v8 = vld [vmem:[#allocation5 + $0x3a0] sm:$0xff]  ;;  %289 = vmatpush.msra.mxu0 %v201_v7  ;;  %v198_v13 = vld [vmem:[#allocation5 + $0x188] sm:$0xff]  ;;  %419 = vmatpush.msra.mxu2 %v202_v9  ;;  %v275_v5 = vld [vmem:[#allocation5 + $0x3f0] sm:$0xff] }
  0x23   :  { %v197_v11 = vld [vmem:[#allocation5 + $0x180] sm:$0xff]  ;;  %354 = vmatpush.msra.mxu1 %v265_v8  ;;  %v266_v14 = vld [vmem:[#allocation5 + $0x3a8] sm:$0xff]  ;;  %483 = vmatpush.msra.mxu3 %v270_v10  ;;  %v208_v6 = vld [vmem:[#allocation5 + $0x1d8] sm:$0xff] }
  0x24   :  { %v261_v12 = vld [vmem:[#allocation5 + $0x380] sm:$0xff]  ;;  %290 = vmatpush.msra.mxu0 %v197_v11  ;;  %v194_v17 = vld [vmem:[#allocation5 + $0x168] sm:$0xff]  ;;  %420 = vmatpush.msra.mxu2 %v198_v13  ;;  %v272_v7 = vld [vmem:[#allocation5 + $0x3d8] sm:$0xff] }
  0x25   :  { %v193_v15 = vld [vmem:[#allocation5 + $0x160] sm:$0xff]  ;;  %355 = vmatpush.msra.mxu1 %v261_v12  ;;  %v262_v18 = vld [vmem:[#allocation5 + $0x388] sm:$0xff]  ;;  %484 = vmatpush.msra.mxu3 %v266_v14  ;;  %v207_v8 = vld [vmem:[#allocation5 + $0x1d0] sm:$0xff] }
  0x26   :  { %v257_v16 = vld [vmem:[#allocation5 + $0x360] sm:$0xff]  ;;  %291 = vmatpush.msra.mxu0 %v193_v15  ;;  %v190_v21 = vld [vmem:[#allocation5 + $0x148] sm:$0xff]  ;;  %421 = vmatpush.msra.mxu2 %v194_v17  ;;  %v271_v9 = vld [vmem:[#allocation5 + $0x3d0] sm:$0xff] }
  0x27   :  { %v189_v19 = vld [vmem:[#allocation5 + $0x140] sm:$0xff]  ;;  %356 = vmatpush.msra.mxu1 %v257_v16  ;;  %v258_v22 = vld [vmem:[#allocation5 + $0x368] sm:$0xff]  ;;  %485 = vmatpush.msra.mxu3 %v262_v18  ;;  %v204_v10 = vld [vmem:[#allocation5 + $0x1b8] sm:$0xff] }
  0x28   :  { %v253_v20 = vld [vmem:[#allocation5 + $0x340] sm:$0xff]  ;;  %292 = vmatpush.msra.mxu0 %v189_v19  ;;  %v186_v25 = vld [vmem:[#allocation5 + $0x128] sm:$0xff]  ;;  %422 = vmatpush.msra.mxu2 %v190_v21  ;;  %v268_v11 = vld [vmem:[#allocation5 + $0x3b8] sm:$0xff] }
  0x29   :  { %v185_v23 = vld [vmem:[#allocation5 + $0x120] sm:$0xff]  ;;  %357 = vmatpush.msra.mxu1 %v253_v20  ;;  %v254_v26 = vld [vmem:[#allocation5 + $0x348] sm:$0xff]  ;;  %486 = vmatpush.msra.mxu3 %v258_v22  ;;  %v203_v12 = vld [vmem:[#allocation5 + $0x1b0] sm:$0xff] }
  0x2a   :  { %v249_v24 = vld [vmem:[#allocation5 + $0x320] sm:$0xff]  ;;  %293 = vmatpush.msra.mxu0 %v185_v23  ;;  %v182_v29 = vld [vmem:[#allocation5 + $0x108] sm:$0xff]  ;;  %423 = vmatpush.msra.mxu2 %v186_v25  ;;  %v2930_v13 = vld [vmem:[#allocation2 + $0x10] sm:$0xff] }
  0x2b   :  { %v181_v27 = vld [vmem:[#allocation5 + $0x100] sm:$0xff]  ;;  %358 = vmatpush.msra.mxu1 %v249_v24  ;;  %v250_v30 = vld [vmem:[#allocation5 + $0x328] sm:$0xff]  ;;  %487 = vmatpush.msra.mxu3 %v254_v26  ;;  %v2932_v14 = vld [vmem:[#allocation2 + $0x18] sm:$0xff] }
  0x2c   :  { %v245_v28 = vld [vmem:[#allocation5 + $0x300] sm:$0xff]  ;;  %294 = vmatpush.msra.mxu0 %v181_v27  ;;  %v178_v33 = vld [vmem:[#allocation5 + $0xe8] sm:$0xff]  ;;  %424 = vmatpush.msra.mxu2 %v182_v29  ;;  %v267_v15 = vld [vmem:[#allocation5 + $0x3b0] sm:$0xff] }
  0x2d   :  { %v177_v31 = vld [vmem:[#allocation5 + $0xe0] sm:$0xff]  ;;  %359 = vmatpush.msra.mxu1 %v245_v28  ;;  %v246_v34 = vld [vmem:[#allocation5 + $0x308] sm:$0xff]  ;;  %488 = vmatpush.msra.mxu3 %v250_v30  ;;  %v200_v16 = vld [vmem:[#allocation5 + $0x198] sm:$0xff] }
  0x2e   :  { %v241_v32 = vld [vmem:[#allocation5 + $0x2e0] sm:$0xff]  ;;  %295 = vmatpush.msra.mxu0 %v177_v31  ;;  %v174_v37 = vld [vmem:[#allocation5 + $0xc8] sm:$0xff]  ;;  %425 = vmatpush.msra.mxu2 %v178_v33  ;;  %v264_v17 = vld [vmem:[#allocation5 + $0x398] sm:$0xff] }
  0x2f   :  { %v173_v35 = vld [vmem:[#allocation5 + $0xc0] sm:$0xff]  ;;  %360 = vmatpush.msra.mxu1 %v241_v32  ;;  %v242_v38 = vld [vmem:[#allocation5 + $0x2e8] sm:$0xff]  ;;  %489 = vmatpush.msra.mxu3 %v246_v34  ;;  %v199_v18 = vld [vmem:[#allocation5 + $0x190] sm:$0xff] }
  0x30   :  { %v237_v36 = vld [vmem:[#allocation5 + $0x2c0] sm:$0xff]  ;;  %296 = vmatpush.msra.mxu0 %v173_v35  ;;  %v170_v41 = vld [vmem:[#allocation5 + $0xa8] sm:$0xff]  ;;  %426 = vmatpush.msra.mxu2 %v174_v37  ;;  %v263_v19 = vld [vmem:[#allocation5 + $0x390] sm:$0xff] }
  0x31   :  { %v169_v39 = vld [vmem:[#allocation5 + $0xa0] sm:$0xff]  ;;  %361 = vmatpush.msra.mxu1 %v237_v36  ;;  %v238_v42 = vld [vmem:[#allocation5 + $0x2c8] sm:$0xff]  ;;  %490 = vmatpush.msra.mxu3 %v242_v38  ;;  %v196_v20 = vld [vmem:[#allocation5 + $0x178] sm:$0xff] }
  0x32   :  { %v233_v40 = vld [vmem:[#allocation5 + $0x2a0] sm:$0xff]  ;;  %297 = vmatpush.msra.mxu0 %v169_v39  ;;  %v166_v45 = vld [vmem:[#allocation5 + $0x88] sm:$0xff]  ;;  %427 = vmatpush.msra.mxu2 %v170_v41  ;;  %v260_v21 = vld [vmem:[#allocation5 + $0x378] sm:$0xff] }
  0x33   :  { %v165_v43 = vld [vmem:[#allocation5 + $0x80] sm:$0xff]  ;;  %362 = vmatpush.msra.mxu1 %v233_v40  ;;  %v234_v46 = vld [vmem:[#allocation5 + $0x2a8] sm:$0xff]  ;;  %491 = vmatpush.msra.mxu3 %v238_v42  ;;  %v195_v22 = vld [vmem:[#allocation5 + $0x170] sm:$0xff] }
  0x34   :  { %v229_v44 = vld [vmem:[#allocation5 + $0x280] sm:$0xff]  ;;  %298 = vmatpush.msra.mxu0 %v165_v43  ;;  %v162_v49 = vld [vmem:[#allocation5 + $0x68] sm:$0xff]  ;;  %428 = vmatpush.msra.mxu2 %v166_v45  ;;  %v259_v23 = vld [vmem:[#allocation5 + $0x370] sm:$0xff] }
  0x35   :  { %v161_v47 = vld [vmem:[#allocation5 + $0x60] sm:$0xff]  ;;  %363 = vmatpush.msra.mxu1 %v229_v44  ;;  %v230_v50 = vld [vmem:[#allocation5 + $0x288] sm:$0xff]  ;;  %492 = vmatpush.msra.mxu3 %v234_v46  ;;  %v192_v24 = vld [vmem:[#allocation5 + $0x158] sm:$0xff] }
  0x36   :  { %v225_v48 = vld [vmem:[#allocation5 + $0x260] sm:$0xff]  ;;  %299 = vmatpush.msra.mxu0 %v161_v47  ;;  %v158_v53 = vld [vmem:[#allocation5 + $0x48] sm:$0xff]  ;;  %429 = vmatpush.msra.mxu2 %v162_v49  ;;  %v256_v25 = vld [vmem:[#allocation5 + $0x358] sm:$0xff] }
  0x37   :  { %v157_v51 = vld [vmem:[#allocation5 + $0x40] sm:$0xff]  ;;  %364 = vmatpush.msra.mxu1 %v225_v48  ;;  %v226_v54 = vld [vmem:[#allocation5 + $0x268] sm:$0xff]  ;;  %493 = vmatpush.msra.mxu3 %v230_v50  ;;  %v191_v26 = vld [vmem:[#allocation5 + $0x150] sm:$0xff] }
  0x38   :  { %v221_v52 = vld [vmem:[#allocation5 + $0x240] sm:$0xff]  ;;  %300 = vmatpush.msra.mxu0 %v157_v51  ;;  %v154_v57 = vld [vmem:[#allocation5 + $0x28] sm:$0xff]  ;;  %430 = vmatpush.msra.mxu2 %v158_v53  ;;  %v255_v29 = vld [vmem:[#allocation5 + $0x350] sm:$0xff] }
  0x39   :  { %v153_v55 = vld [vmem:[#allocation5 + $0x20] sm:$0xff]  ;;  %365 = vmatpush.msra.mxu1 %v221_v52  ;;  %v222_v58 = vld [vmem:[#allocation5 + $0x248] sm:$0xff]  ;;  %494 = vmatpush.msra.mxu3 %v226_v54  ;;  %v188_v30 = vld [vmem:[#allocation5 + $0x138] sm:$0xff] }
  0x3a   :  { %v217_v56 = vld [vmem:[#allocation5 + $0x220] sm:$0xff]  ;;  %301 = vmatpush.msra.mxu0 %v153_v55  ;;  %v150_v61 = vld [vmem:[#allocation5 + $0x8] sm:$0xff]  ;;  %431 = vmatpush.msra.mxu2 %v154_v57  ;;  %v252_v31 = vld [vmem:[#allocation5 + $0x338] sm:$0xff] }
  0x3b   :  { %v149_v59 = vld [vmem:[#allocation5] sm:$0xff]  ;;  %366 = vmatpush.msra.mxu1 %v217_v56  ;;  %v218_v62 = vld [vmem:[#allocation5 + $0x228] sm:$0xff]  ;;  %495 = vmatpush.msra.mxu3 %v222_v58  ;;  %v187_v32 = vld [vmem:[#allocation5 + $0x130] sm:$0xff] }
  0x3c   :  { %v213_v60 = vld [vmem:[#allocation5 + $0x200] sm:$0xff]  ;;  %v2924_v0 = vld [vmem:[#allocation2 + $0x8] sm:$0xff]  ;;  %302 = vmatpush.msra.mxu0 %v149_v59  ;;  %432 = vmatpush.msra.mxu2 %v150_v61  ;;  %v251_v33 = vld [vmem:[#allocation5 + $0x330] sm:$0xff] }
  0x3d   :  { %v2922_v63 = vld [vmem:[#allocation2] sm:$0xff]  ;;  %367 = vmatpush.msra.mxu1 %v213_v60  ;;  %v214_v1 = vld [vmem:[#allocation5 + $0x208] sm:$0xff]  ;;  %496 = vmatpush.msra.mxu3 %v218_v62  ;;  %v2946_v34 = vld [vmem:[#allocation2 + $0x30] sm:$0xff] }
  0x3e   :  { %303 = vmatmul.f32.vlgmr.msra.gmra.mxu0 %v2922_v63  ;;  %368 = vmatmul.f32.vlgmr.msra.gmra.mxu1 %v2924_v0  ;;  %v2938_v27 = vld [vmem:[#allocation2 + $0x20] sm:$0xff]  ;;  %v2940_v28 = vld [vmem:[#allocation2 + $0x28] sm:$0xff]  ;;  %v2948_v35 = vld [vmem:[#allocation2 + $0x38] sm:$0xff] }
  0x3f   :  { %433 = vmatmul.f32.vlgmr.msra.gmra.mxu2 %v2922_v63  ;;  %497 = vmatpush.msra.mxu3 %v214_v1  ;;  %v184_v36 = vld [vmem:[#allocation5 + $0x118] sm:$0xff]  ;;  %v183_v38 = vld [vmem:[#allocation5 + $0x110] sm:$0xff]  ;;  %v2954_v40 = vld [vmem:[#allocation2 + $0x40] sm:$0xff] }
  0x40   :  { %677 = vmatpush.msrb.mxu2 %v212_v2  ;;  %498 = vmatmul.f32.vlgmr.msra.gmra.mxu3 %v2924_v0  ;;  %v248_v37 = vld [vmem:[#allocation5 + $0x318] sm:$0xff]  ;;  %v247_v39 = vld [vmem:[#allocation5 + $0x310] sm:$0xff]  ;;  %v2956_v41 = vld [vmem:[#allocation2 + $0x48] sm:$0xff] }
  0x41   :  { %742 = vmatpush.msrb.mxu3 %v276_v3  ;;  %547 = vmatpush.msrb.mxu0 %v211_v4  ;;  %v180_v42 = vld [vmem:[#allocation5 + $0xf8] sm:$0xff]  ;;  %v179_v44 = vld [vmem:[#allocation5 + $0xf0] sm:$0xff]  ;;  %v2970_v52 = vld [vmem:[#allocation2 + $0x60] sm:$0xff] }
  0x42   :  { %612 = vmatpush.msrb.mxu1 %v275_v5  ;;  %678 = vmatpush.msrb.mxu2 %v208_v6  ;;  %v244_v43 = vld [vmem:[#allocation5 + $0x2f8] sm:$0xff]  ;;  %v243_v45 = vld [vmem:[#allocation5 + $0x2f0] sm:$0xff]  ;;  %v2972_v53 = vld [vmem:[#allocation2 + $0x68] sm:$0xff] }
  0x43   :  { %743 = vmatpush.msrb.mxu3 %v272_v7  ;;  %548 = vmatpush.msrb.mxu0 %v207_v8  ;;  %v2962_v46 = vld [vmem:[#allocation2 + $0x50] sm:$0xff]  ;;  %v2964_v47 = vld [vmem:[#allocation2 + $0x58] sm:$0xff]  ;;  %v2986_v2 = vld [vmem:[#allocation2 + $0x80] sm:$0xff] }
  0x44   :  { %613 = vmatpush.msrb.mxu1 %v271_v9  ;;  %679 = vmatpush.msrb.mxu2 %v204_v10  ;;  %v176_v48 = vld [vmem:[#allocation5 + $0xd8] sm:$0xff]  ;;  %v175_v50 = vld [vmem:[#allocation5 + $0xd0] sm:$0xff]  ;;  %v2988_v3 = vld [vmem:[#allocation2 + $0x88] sm:$0xff] }
  0x45   :  { %744 = vmatpush.msrb.mxu3 %v268_v11  ;;  %549 = vmatpush.msrb.mxu0 %v203_v12  ;;  %v240_v49 = vld [vmem:[#allocation5 + $0x2d8] sm:$0xff]  ;;  %v239_v51 = vld [vmem:[#allocation5 + $0x2d0] sm:$0xff] }
  0x46   :  { %306 = vmatmul.f32.gmra.mxu0 %v2930_v13  ;;  %371 = vmatmul.f32.gmra.mxu1 %v2932_v14  ;;  %v172_v54 = vld [vmem:[#allocation5 + $0xb8] sm:$0xff]  ;;  %v171_v56 = vld [vmem:[#allocation5 + $0xb0] sm:$0xff] }
  0x47   :  { %436 = vmatmul.f32.gmra.mxu2 %v2930_v13  ;;  %614 = vmatpush.msrb.mxu1 %v267_v15  ;;  %v236_v55 = vld [vmem:[#allocation5 + $0x2b8] sm:$0xff]  ;;  %v235_v57 = vld [vmem:[#allocation5 + $0x2b0] sm:$0xff] }
  0x48   :  { %501 = vmatmul.f32.gmra.mxu3 %v2932_v14  ;;  %680 = vmatpush.msrb.mxu2 %v200_v16  ;;  %v2978_v58 = vld [vmem:[#allocation2 + $0x70] sm:$0xff]  ;;  %v2980_v59 = vld [vmem:[#allocation2 + $0x78] sm:$0xff]  ;;  %v3002_v16 = vld [vmem:[#allocation2 + $0xa0] sm:$0xff] }
  0x49   :  { %745 = vmatpush.msrb.mxu3 %v264_v17  ;;  %550 = vmatpush.msrb.mxu0 %v199_v18  ;;  %v168_v60 = vld [vmem:[#allocation5 + $0x98] sm:$0xff]  ;;  %v167_v62 = vld [vmem:[#allocation5 + $0x90] sm:$0xff]  ;;  %v3004_v17 = vld [vmem:[#allocation2 + $0xa8] sm:$0xff] }
  0x4a   :  { %615 = vmatpush.msrb.mxu1 %v263_v19  ;;  %681 = vmatpush.msrb.mxu2 %v196_v20  ;;  %v232_v61 = vld [vmem:[#allocation5 + $0x298] sm:$0xff]  ;;  %v231_v1 = vld [vmem:[#allocation5 + $0x290] sm:$0xff] }
  0x4b   :  { %746 = vmatpush.msrb.mxu3 %v260_v21  ;;  %551 = vmatpush.msrb.mxu0 %v195_v22  ;;  %v164_v4 = vld [vmem:[#allocation5 + $0x78] sm:$0xff]  ;;  %v163_v6 = vld [vmem:[#allocation5 + $0x70] sm:$0xff] }
  0x4c   :  { %616 = vmatpush.msrb.mxu1 %v259_v23  ;;  %682 = vmatpush.msrb.mxu2 %v192_v24  ;;  %v228_v5 = vld [vmem:[#allocation5 + $0x278] sm:$0xff]  ;;  %v227_v7 = vld [vmem:[#allocation5 + $0x270] sm:$0xff] }
  0x4d   :  { %747 = vmatpush.msrb.mxu3 %v256_v25  ;;  %552 = vmatpush.msrb.mxu0 %v191_v26  ;;  %v2994_v8 = vld [vmem:[#allocation2 + $0x90] sm:$0xff]  ;;  %v2996_v9 = vld [vmem:[#allocation2 + $0x98] sm:$0xff] }
  0x4e   :  { %309 = vmatmul.f32.gmra.mxu0 %v2938_v27  ;;  %374 = vmatmul.f32.gmra.mxu1 %v2940_v28  ;;  %v160_v10 = vld [vmem:[#allocation5 + $0x58] sm:$0xff]  ;;  %v159_v12 = vld [vmem:[#allocation5 + $0x50] sm:$0xff] }
  0x4f   :  { %439 = vmatmul.f32.gmra.mxu2 %v2938_v27  ;;  %617 = vmatpush.msrb.mxu1 %v255_v29  ;;  %v224_v11 = vld [vmem:[#allocation5 + $0x258] sm:$0xff]  ;;  %v223_v15 = vld [vmem:[#allocation5 + $0x250] sm:$0xff]  ;;  %v3018_v29 = vld [vmem:[#allocation2 + $0xc0] sm:$0xff] }
  0x50   :  { %504 = vmatmul.f32.gmra.mxu3 %v2940_v28  ;;  %683 = vmatpush.msrb.mxu2 %v188_v30  ;;  %v156_v18 = vld [vmem:[#allocation5 + $0x38] sm:$0xff]  ;;  %v155_v20 = vld [vmem:[#allocation5 + $0x30] sm:$0xff]  ;;  %v3020_v30 = vld [vmem:[#allocation2 + $0xc8] sm:$0xff] }
  0x51   :  { %748 = vmatpush.msrb.mxu3 %v252_v31  ;;  %553 = vmatpush.msrb.mxu0 %v187_v32  ;;  %v220_v19 = vld [vmem:[#allocation5 + $0x238] sm:$0xff]  ;;  %v219_v21 = vld [vmem:[#allocation5 + $0x230] sm:$0xff] }
  0x52   :  { %618 = vmatpush.msrb.mxu1 %v251_v33  ;;  %684 = vmatpush.msrb.mxu2 %v184_v36  ;;  %v3010_v22 = vld [vmem:[#allocation2 + $0xb0] sm:$0xff]  ;;  %v3012_v23 = vld [vmem:[#allocation2 + $0xb8] sm:$0xff]  ;;  %v1059_v36 = vld [vmem:[#allocation8 + $0x5e0] sm:$0xff] }
  0x53   :  { %749 = vmatpush.msrb.mxu3 %v248_v37  ;;  %554 = vmatpush.msrb.mxu0 %v183_v38  ;;  %v152_v24 = vld [vmem:[#allocation5 + $0x18] sm:$0xff]  ;;  %v151_v26 = vld [vmem:[#allocation5 + $0x10] sm:$0xff]  ;;  %v931_v37 = vld [vmem:[#allocation8 + $0x1e0] sm:$0xff] }
  0x54   :  { %619 = vmatpush.msrb.mxu1 %v247_v39  ;;  %685 = vmatpush.msrb.mxu2 %v180_v42  ;;  %v216_v25 = vld [vmem:[#allocation5 + $0x218] sm:$0xff]  ;;  %v215_v31 = vld [vmem:[#allocation5 + $0x210] sm:$0xff]  ;;  %v1123_v38 = vld [vmem:[#allocation8 + $0x7e0] sm:$0xff] }
  0x55   :  { %750 = vmatpush.msrb.mxu3 %v244_v43  ;;  %555 = vmatpush.msrb.mxu0 %v179_v44  ;;  %v3026_v32 = vld [vmem:[#allocation2 + $0xd0] sm:$0xff]  ;;  %v3028_v33 = vld [vmem:[#allocation2 + $0xd8] sm:$0xff]  ;;  %v3034_v39 = vld [vmem:[#allocation2 + $0xe0] sm:$0xff] }
  0x56   :  { %312 = vmatmul.f32.gmra.mxu0 %v2946_v34  ;;  %377 = vmatmul.f32.gmra.mxu1 %v2948_v35  ;;  %v3036_v42 = vld [vmem:[#allocation2 + $0xe8] sm:$0xff] }
  0x57   :  { %442 = vmatmul.f32.gmra.mxu2 %v2946_v34  ;;  %620 = vmatpush.msrb.mxu1 %v243_v45  ;;  %v995_v43 = vld [vmem:[#allocation8 + $0x3e0] sm:$0xff] }
  0x58   :  { %507 = vmatmul.f32.gmra.mxu3 %v2948_v35  ;;  %686 = vmatpush.msrb.mxu2 %v176_v48  ;;  %v1055_v44 = vld [vmem:[#allocation8 + $0x5c0] sm:$0xff] }
  0x59   :  { %751 = vmatpush.msrb.mxu3 %v240_v49  ;;  %556 = vmatpush.msrb.mxu0 %v175_v50  ;;  %v927_v45 = vld [vmem:[#allocation8 + $0x1c0] sm:$0xff]  ;;  %v3042_v49 = vld [vmem:[#allocation2 + $0xf0] sm:$0xff]  ;;  %v3044_v50 = vld [vmem:[#allocation2 + $0xf8] sm:$0xff] }
  0x5a   :  { %621 = vmatpush.msrb.mxu1 %v239_v51  ;;  %687 = vmatpush.msrb.mxu2 %v172_v54  ;;  %v1119_v48 = vld [vmem:[#allocation8 + $0x7c0] sm:$0xff] }
  0x5b   :  { %752 = vmatpush.msrb.mxu3 %v236_v55  ;;  %557 = vmatpush.msrb.mxu0 %v171_v56  ;;  %v991_v51 = vld [vmem:[#allocation8 + $0x3c0] sm:$0xff] }
  0x5c   :  { %622 = vmatpush.msrb.mxu1 %v235_v57  ;;  %688 = vmatpush.msrb.mxu2 %v168_v60  ;;  %v1051_v54 = vld [vmem:[#allocation8 + $0x5a0] sm:$0xff] }
  0x5d   :  { %753 = vmatpush.msrb.mxu3 %v232_v61  ;;  %558 = vmatpush.msrb.mxu0 %v167_v62  ;;  %v923_v55 = vld [vmem:[#allocation8 + $0x1a0] sm:$0xff]  ;;  %v3054_v62 = vld [vmem:[#allocation7] sm:$0xf] }
  0x5e   :  { %315 = vmatmul.f32.gmra.mxu0 %v2954_v40  ;;  %380 = vmatmul.f32.gmra.mxu1 %v2956_v41  ;;  %v1115_v56 = vld [vmem:[#allocation8 + $0x7a0] sm:$0xff] }
  0x5f   :  { %445 = vmatmul.f32.gmra.mxu2 %v2954_v40  ;;  %623 = vmatpush.msrb.mxu1 %v231_v1  ;;  %v987_v61 = vld [vmem:[#allocation8 + $0x3a0] sm:$0xff]  ;;  %v3060_v1 = vperm.slane %v3054_v62, 1 }
  0x60   :  { %510 = vmatmul.f32.gmra.mxu3 %v2956_v41  ;;  %689 = vmatpush.msrb.mxu2 %v164_v4  ;;  %v1047_v4 = vld [vmem:[#allocation8 + $0x580] sm:$0xff] }
  0x61   :  { %754 = vmatpush.msrb.mxu3 %v228_v5  ;;  %559 = vmatpush.msrb.mxu0 %v163_v6  ;;  %v919_v5 = vld [vmem:[#allocation8 + $0x180] sm:$0xff] }
  0x62   :  { %624 = vmatpush.msrb.mxu1 %v227_v7  ;;  %690 = vmatpush.msrb.mxu2 %v160_v10  ;;  %v1111_v6 = vld [vmem:[#allocation8 + $0x780] sm:$0xff] }
  0x63   :  { %755 = vmatpush.msrb.mxu3 %v224_v11  ;;  %560 = vmatpush.msrb.mxu0 %v159_v12 }
  0x64   :  { %625 = vmatpush.msrb.mxu1 %v223_v15  ;;  %691 = vmatpush.msrb.mxu2 %v156_v18  ;;  %v983_v15 = vld [vmem:[#allocation8 + $0x380] sm:$0xff] }
  0x65   :  { %756 = vmatpush.msrb.mxu3 %v220_v19  ;;  %561 = vmatpush.msrb.mxu0 %v155_v20  ;;  %v915_v19 = vld [vmem:[#allocation8 + $0x160] sm:$0xff] }
  0x66   :  { %318 = vmatmul.f32.gmra.mxu0 %v2962_v46  ;;  %383 = vmatmul.f32.gmra.mxu1 %v2964_v47  ;;  %v1107_v20 = vld [vmem:[#allocation8 + $0x760] sm:$0xff] }
  0x67   :  { %448 = vmatmul.f32.gmra.mxu2 %v2962_v46  ;;  %626 = vmatpush.msrb.mxu1 %v219_v21 }
  0x68   :  { %513 = vmatmul.f32.gmra.mxu3 %v2964_v47  ;;  %692 = vmatpush.msrb.mxu2 %v152_v24 }
  0x69   :  { %757 = vmatpush.msrb.mxu3 %v216_v25  ;;  %562 = vmatpush.msrb.mxu0 %v151_v26 }
  0x6a   :  { %627 = vmatpush.msrb.mxu1 %v215_v31  ;;  %1267 = vmatpush.msra.mxu2 %v1059_v36  ;;  %v979_v31 = vld [vmem:[#allocation8 + $0x360] sm:$0xff] }
  0x6b   :  { %1137 = vmatpush.msra.mxu0 %v931_v37  ;;  %1332 = vmatpush.msra.mxu3 %v1123_v38  ;;  %v1103_v38 = vld [vmem:[#allocation8 + $0x740] sm:$0xff] }
  0x6c   :  { %1202 = vmatpush.msra.mxu1 %v995_v43  ;;  %1268 = vmatpush.msra.mxu2 %v1055_v44 }
  0x6d   :  { %1138 = vmatpush.msra.mxu0 %v927_v45  ;;  %1333 = vmatpush.msra.mxu3 %v1119_v48 }
  0x6e   :  { %321 = vmatmul.f32.gmra.mxu0 %v2970_v52  ;;  %386 = vmatmul.f32.gmra.mxu1 %v2972_v53 }
  0x6f   :  { %451 = vmatmul.f32.gmra.mxu2 %v2970_v52  ;;  %1203 = vmatpush.msra.mxu1 %v991_v51  ;;  %v975_v51 = vld [vmem:[#allocation8 + $0x340] sm:$0xff] }
  0x70   :  { %516 = vmatmul.f32.gmra.mxu3 %v2972_v53  ;;  %1269 = vmatpush.msra.mxu2 %v1051_v54 }
  0x71   :  { %1139 = vmatpush.msra.mxu0 %v923_v55  ;;  %1334 = vmatpush.msra.mxu3 %v1115_v56  ;;  %v1099_v56 = vld [vmem:[#allocation8 + $0x720] sm:$0xff] }
  0x72   :  { %1204 = vmatpush.msra.mxu1 %v987_v61  ;;  %1270 = vmatpush.msra.mxu2 %v1047_v4 }
  0x73   :  { %1140 = vmatpush.msra.mxu0 %v919_v5  ;;  %1335 = vmatpush.msra.mxu3 %v1111_v6 }
  0x74   :  { %1205 = vmatpush.msra.mxu1 %v983_v15 }
  0x75   :  { %1141 = vmatpush.msra.mxu0 %v915_v19  ;;  %1336 = vmatpush.msra.mxu3 %v1107_v20 }
  0x76   :  { %324 = vmatmul.f32.gmra.mxu0 %v2978_v58  ;;  %389 = vmatmul.f32.gmra.mxu1 %v2980_v59 }
  0x77   :  { %454 = vmatmul.f32.gmra.mxu2 %v2978_v58  ;;  %1206 = vmatpush.msra.mxu1 %v979_v31 }
  0x78   :  { %519 = vmatmul.f32.gmra.mxu3 %v2980_v59 }
  0x79   :  { %1337 = vmatpush.msra.mxu3 %v1103_v38  ;;  %1207 = vmatpush.msra.mxu1 %v975_v51  ;;  %v963_v51 = vld [vmem:[#allocation8 + $0x2e0] sm:$0xff] }
  0x7b   :  { %1338 = vmatpush.msra.mxu3 %v1099_v56 }
  0x7e   :  { %327 = vmatmul.f32.gmra.mxu0 %v2986_v2  ;;  %392 = vmatmul.f32.gmra.mxu1 %v2988_v3 }
  0x7f   :  { %457 = vmatmul.f32.gmra.mxu2 %v2986_v2 }
  0x80   :  { %522 = vmatmul.f32.gmra.mxu3 %v2988_v3 }
  0x86   :  { %330 = vmatmul.f32.gmra.mxu0 %v2994_v8  ;;  %395 = vmatmul.f32.gmra.mxu1 %v2996_v9 }
  0x87   :  { %460 = vmatmul.f32.gmra.mxu2 %v2994_v8 }
  0x88   :  { %525 = vmatmul.f32.gmra.mxu3 %v2996_v9 }
  0x8e   :  { %333 = vmatmul.f32.gmra.mxu0 %v3002_v16  ;;  %398 = vmatmul.f32.gmra.mxu1 %v3004_v17 }
  0x8f   :  { %463 = vmatmul.f32.gmra.mxu2 %v3002_v16 }
  0x90   :  { %528 = vmatmul.f32.gmra.mxu3 %v3004_v17 }
  0x96   :  { %336 = vmatmul.f32.gmra.mxu0 %v3010_v22  ;;  %401 = vmatmul.f32.gmra.mxu1 %v3012_v23 }
  0x97   :  { %466 = vmatmul.f32.gmra.mxu2 %v3010_v22 }
  0x98   :  { %531 = vmatmul.f32.gmra.mxu3 %v3012_v23 }
  0x9e   :  { %339 = vmatmul.f32.gmra.mxu0 %v3018_v29  ;;  %404 = vmatmul.f32.gmra.mxu1 %v3020_v30 }
  0x9f   :  { %469 = vmatmul.f32.gmra.mxu2 %v3018_v29 }
  0xa0   :  { %534 = vmatmul.f32.gmra.mxu3 %v3020_v30 }
  0xa6   :  { %342 = vmatmul.f32.gmra.mxu0 %v3026_v32  ;;  %407 = vmatmul.f32.gmra.mxu1 %v3028_v33 }
  0xa7   :  { %472 = vmatmul.f32.gmra.mxu2 %v3026_v32 }
  0xa8   :  { %537 = vmatmul.f32.gmra.mxu3 %v3028_v33 }
  0xae   :  { %345 = vmatmul.f32.gmra.mxu0 %v3034_v39  ;;  %410 = vmatmul.f32.gmra.mxu1 %v3036_v42 }
  0xaf   :  { %475 = vmatmul.f32.gmra.mxu2 %v3034_v39 }
  0xb0   :  { %540 = vmatmul.f32.gmra.mxu3 %v3036_v42 }
  0xb6   :  { %348 = vmatmul.f32.gmra.mxu0 %v3042_v49  ;;  %413 = vmatmul.f32.gmra.mxu1 %v3044_v50 }
  0xb7   :  { %478 = vmatmul.f32.gmra.mxu2 %v3042_v49 }
  0xb8   :  { %543 = vmatmul.f32.gmra.mxu3 %v3044_v50 }
  0xbb   :  { %v3050_v57 = vpop.f32.mrf.mxu0  ;;  %v3052_v60 = vpop.f32.mrf.mxu1 }
  0xbe   :  { %563 = vmatmul.f32.vlgmr.msrb.gmra.mxu0 %v2922_v63  ;;  %628 = vmatmul.f32.vlgmr.msrb.gmra.mxu1 %v2924_v0 }
  0xbf   :  { %693 = vmatmul.f32.vlgmr.msrb.gmra.mxu2 %v2922_v63 }
  0xc0   :  { %758 = vmatmul.f32.vlgmr.msrb.gmra.mxu3 %v2924_v0  ;;  %v1043_v0 = vld [vmem:[#allocation8 + $0x560] sm:$0xff] }
  0xc1   :  { %1271 = vmatpush.msra.mxu2 %v1043_v0 }
  0xc2   :  { %v434_v7 = vpop.f32.mrf.mxu2 }
  0xc3   :  { %v435_v10 = vadd.f32 %v434_v7, %v3060_v1  ;;  %v3064_v11 = vpop.f32.mrf.mxu0  ;;  %v3066_v12 = vpop.f32.mrf.mxu1  ;;  %v971_v7 = vld [vmem:[#allocation8 + $0x320] sm:$0xff] }
  0xc4   :  { %v499_v63 = vpop.f32.mrf.mxu3  ;;  %1208 = vmatpush.msra.mxu1 %v971_v7 }
  0xc5   :  { %v3068_v18 = vadd.f32 %v499_v63, %v435_v10  ;;  %v1095_v63 = vld [vmem:[#allocation8 + $0x700] sm:$0xff] }
  0xc6   :  { %566 = vmatmul.f32.gmra.mxu0 %v2930_v13  ;;  %631 = vmatmul.f32.gmra.mxu1 %v2932_v14 }
  0xc7   :  { %696 = vmatmul.f32.gmra.mxu2 %v2930_v13  ;;  %v1039_v13 = vld [vmem:[#allocation8 + $0x540] sm:$0xff]  ;;  %1339 = vmatpush.msra.mxu3 %v1095_v63 }
  0xc8   :  { %761 = vmatmul.f32.gmra.mxu3 %v2932_v14  ;;  %v911_v14 = vld [vmem:[#allocation8 + $0x140] sm:$0xff]  ;;  %1272 = vmatpush.msra.mxu2 %v1039_v13 }
  0xc9   :  { %1142 = vmatpush.msra.mxu0 %v911_v14  ;;  %v1091_v13 = vld [vmem:[#allocation8 + $0x6e0] sm:$0xff] }
  0xca   :  { %v437_v21 = vpop.f32.mrf.mxu2  ;;  %1340 = vmatpush.msra.mxu3 %v1091_v13  ;;  %v1083_v63 = vld [vmem:[#allocation8 + $0x6a0] sm:$0xff] }
  0xcb   :  { %v438_v24 = vadd.f32 %v437_v21, %v3060_v1  ;;  %v3075_v25 = vpop.f32.mrf.mxu0  ;;  %v3077_v26 = vpop.f32.mrf.mxu1 }
  0xcc   :  { %v502_v36 = vpop.f32.mrf.mxu3 }
  0xcd   :  { %v3079_v37 = vadd.f32 %v502_v36, %v438_v24  ;;  %v967_v24 = vld [vmem:[#allocation8 + $0x300] sm:$0xff] }
  0xce   :  { %569 = vmatmul.f32.gmra.mxu0 %v2938_v27  ;;  %634 = vmatmul.f32.gmra.mxu1 %v2940_v28 }
  0xcf   :  { %699 = vmatmul.f32.gmra.mxu2 %v2938_v27  ;;  %v1035_v27 = vld [vmem:[#allocation8 + $0x520] sm:$0xff]  ;;  %1209 = vmatpush.msra.mxu1 %v967_v24 }
  0xd0   :  { %764 = vmatmul.f32.gmra.mxu3 %v2940_v28  ;;  %v907_v28 = vld [vmem:[#allocation8 + $0x120] sm:$0xff]  ;;  %1273 = vmatpush.msra.mxu2 %v1035_v27 }
  0xd1   :  { %1143 = vmatpush.msra.mxu0 %v907_v28  ;;  %1210 = vmatpush.msra.mxu1 %v963_v51  ;;  %v1087_v28 = vld [vmem:[#allocation8 + $0x6c0] sm:$0xff] }
  0xd2   :  { %v440_v43 = vpop.f32.mrf.mxu2  ;;  %1341 = vmatpush.msra.mxu3 %v1087_v28  ;;  %v1075_v28 = vld [vmem:[#allocation8 + $0x660] sm:$0xff] }
  0xd3   :  { %v441_v44 = vadd.f32 %v440_v43, %v3060_v1  ;;  %v3086_v45 = vpop.f32.mrf.mxu0  ;;  %v3088_v48 = vpop.f32.mrf.mxu1 }
  0xd4   :  { %v505_v54 = vpop.f32.mrf.mxu3  ;;  %1342 = vmatpush.msra.mxu3 %v1083_v63 }
  0xd5   :  { %v3090_v55 = vadd.f32 %v505_v54, %v441_v44 }
  0xd6   :  { %572 = vmatmul.f32.gmra.mxu0 %v2946_v34  ;;  %637 = vmatmul.f32.gmra.mxu1 %v2948_v35 }
  0xd7   :  { %702 = vmatmul.f32.gmra.mxu2 %v2946_v34  ;;  %v1031_v34 = vld [vmem:[#allocation8 + $0x500] sm:$0xff] }
  0xd8   :  { %767 = vmatmul.f32.gmra.mxu3 %v2948_v35  ;;  %v903_v35 = vld [vmem:[#allocation8 + $0x100] sm:$0xff]  ;;  %1274 = vmatpush.msra.mxu2 %v1031_v34 }
  0xd9   :  { %1144 = vmatpush.msra.mxu0 %v903_v35 }
  0xda   :  { %v443_v61 = vpop.f32.mrf.mxu2 }
  0xdb   :  { %v444_v4 = vadd.f32 %v443_v61, %v3060_v1  ;;  %v3097_v5 = vpop.f32.mrf.mxu0  ;;  %v3099_v6 = vpop.f32.mrf.mxu1 }
  0xdc   :  { %v508_v10 = vpop.f32.mrf.mxu3 }
  0xdd   :  { %v3101_v15 = vadd.f32 %v508_v10, %v444_v4  ;;  %v959_v10 = vld [vmem:[#allocation8 + $0x2c0] sm:$0xff] }
  0xde   :  { %575 = vmatmul.f32.gmra.mxu0 %v2954_v40  ;;  %640 = vmatmul.f32.gmra.mxu1 %v2956_v41 }
  0xdf   :  { %705 = vmatmul.f32.gmra.mxu2 %v2954_v40  ;;  %v1027_v40 = vld [vmem:[#allocation8 + $0x4e0] sm:$0xff]  ;;  %1211 = vmatpush.msra.mxu1 %v959_v10 }
  0xe0   :  { %770 = vmatmul.f32.gmra.mxu3 %v2956_v41  ;;  %v899_v41 = vld [vmem:[#allocation8 + $0xe0] sm:$0xff]  ;;  %1275 = vmatpush.msra.mxu2 %v1027_v40 }
  0xe1   :  { %1145 = vmatpush.msra.mxu0 %v899_v41  ;;  %v955_v40 = vld [vmem:[#allocation8 + $0x2a0] sm:$0xff] }
  0xe2   :  { %v446_v0 = vpop.f32.mrf.mxu2  ;;  %1212 = vmatpush.msra.mxu1 %v955_v40  ;;  %v943_v40 = vld [vmem:[#allocation8 + $0x240] sm:$0xff] }
  0xe3   :  { %v447_v19 = vadd.f32 %v446_v0, %v3060_v1  ;;  %v3108_v20 = vpop.f32.mrf.mxu0  ;;  %v3110_v21 = vpop.f32.mrf.mxu1 }
  0xe4   :  { %v511_v31 = vpop.f32.mrf.mxu3 }
  0xe5   :  { %v3112_v36 = vadd.f32 %v511_v31, %v447_v19 }
  0xe6   :  { %578 = vmatmul.f32.gmra.mxu0 %v2962_v46  ;;  %643 = vmatmul.f32.gmra.mxu1 %v2964_v47 }
  0xe7   :  { %708 = vmatmul.f32.gmra.mxu2 %v2962_v46  ;;  %v1023_v46 = vld [vmem:[#allocation8 + $0x4c0] sm:$0xff] }
  0xe8   :  { %773 = vmatmul.f32.gmra.mxu3 %v2964_v47  ;;  %v895_v47 = vld [vmem:[#allocation8 + $0xc0] sm:$0xff]  ;;  %1276 = vmatpush.msra.mxu2 %v1023_v46 }
  0xe9   :  { %1146 = vmatpush.msra.mxu0 %v895_v47  ;;  %v951_v46 = vld [vmem:[#allocation8 + $0x280] sm:$0xff] }
  0xea   :  { %v449_v14 = vpop.f32.mrf.mxu2  ;;  %1213 = vmatpush.msra.mxu1 %v951_v46 }
  0xeb   :  { %v450_v38 = vadd.f32 %v449_v14, %v3060_v1  ;;  %v3119_v43 = vpop.f32.mrf.mxu0  ;;  %v3121_v44 = vpop.f32.mrf.mxu1  ;;  %v1079_v14 = vld [vmem:[#allocation8 + $0x680] sm:$0xff] }
  0xec   :  { %v514_v54 = vpop.f32.mrf.mxu3  ;;  %1343 = vmatpush.msra.mxu3 %v1079_v14 }
  0xed   :  { %v3123_v27 = vadd.f32 %v514_v54, %v450_v38 }
  0xee   :  { %581 = vmatmul.f32.gmra.mxu0 %v2970_v52  ;;  %646 = vmatmul.f32.gmra.mxu1 %v2972_v53 }
  0xef   :  { %711 = vmatmul.f32.gmra.mxu2 %v2970_v52  ;;  %v1019_v52 = vld [vmem:[#allocation8 + $0x4a0] sm:$0xff]  ;;  %1344 = vmatpush.msra.mxu3 %v1075_v28 }
  0xf0   :  { %776 = vmatmul.f32.gmra.mxu3 %v2972_v53  ;;  %v891_v53 = vld [vmem:[#allocation8 + $0xa0] sm:$0xff]  ;;  %1277 = vmatpush.msra.mxu2 %v1019_v52 }
  0xf1   :  { %1147 = vmatpush.msra.mxu0 %v891_v53  ;;  %v1071_v53 = vld [vmem:[#allocation8 + $0x640] sm:$0xff] }
  0xf2   :  { %v452_v56 = vpop.f32.mrf.mxu2  ;;  %1345 = vmatpush.msra.mxu3 %v1071_v53  ;;  %v871_v28 = vld [vmem:[#allocation8] sm:$0xff] }
  0xf3   :  { %v453_v61 = vadd.f32 %v452_v56, %v3060_v1  ;;  %v3130_v4 = vpop.f32.mrf.mxu0  ;;  %v3132_v7 = vpop.f32.mrf.mxu1 }
  0xf4   :  { %v517_v34 = vpop.f32.mrf.mxu3 }
  0xf5   :  { %v3134_v35 = vadd.f32 %v517_v34, %v453_v61  ;;  %v947_v34 = vld [vmem:[#allocation8 + $0x260] sm:$0xff] }
  0xf6   :  { %584 = vmatmul.f32.gmra.mxu0 %v2978_v58  ;;  %649 = vmatmul.f32.gmra.mxu1 %v2980_v59 }
  0xf7   :  { %714 = vmatmul.f32.gmra.mxu2 %v2978_v58  ;;  %v1015_v58 = vld [vmem:[#allocation8 + $0x480] sm:$0xff]  ;;  %1214 = vmatpush.msra.mxu1 %v947_v34 }
  0xf8   :  { %779 = vmatmul.f32.gmra.mxu3 %v2980_v59  ;;  %v887_v59 = vld [vmem:[#allocation8 + $0x80] sm:$0xff]  ;;  %1278 = vmatpush.msra.mxu2 %v1015_v58 }
  0xf9   :  { %1148 = vmatpush.msra.mxu0 %v887_v59  ;;  %1215 = vmatpush.msra.mxu1 %v943_v40  ;;  %v1067_v58 = vld [vmem:[#allocation8 + $0x620] sm:$0xff] }
  0xfa   :  { %v455_v0 = vpop.f32.mrf.mxu2  ;;  %1346 = vmatpush.msra.mxu3 %v1067_v58  ;;  %v1063_v34 = vld [vmem:[#allocation8 + $0x600] sm:$0xff] }
  0xfb   :  { %v456_v19 = vadd.f32 %v455_v0, %v3060_v1  ;;  %v3141_v24 = vpop.f32.mrf.mxu0  ;;  %v3143_v31 = vpop.f32.mrf.mxu1 }
  0xfc   :  { %v520_v41 = vpop.f32.mrf.mxu3  ;;  %1347 = vmatpush.msra.mxu3 %v1063_v34  ;;  %v1120_v34 = vld [vmem:[#allocation8 + $0x7c8] sm:$0xff] }
  0xfd   :  { %v3145_v13 = vadd.f32 %v520_v41, %v456_v19 }
  0xfe   :  { %587 = vmatmul.f32.gmra.mxu0 %v2986_v2  ;;  %652 = vmatmul.f32.gmra.mxu1 %v2988_v3 }
  0xff   :  { %717 = vmatmul.f32.gmra.mxu2 %v2986_v2  ;;  %v1011_v2 = vld [vmem:[#allocation8 + $0x460] sm:$0xff] }
 0x100   :  { %782 = vmatmul.f32.gmra.mxu3 %v2988_v3  ;;  %v883_v3 = vld [vmem:[#allocation8 + $0x60] sm:$0xff]  ;;  %1279 = vmatpush.msra.mxu2 %v1011_v2 }
 0x101   :  { %1149 = vmatpush.msra.mxu0 %v883_v3  ;;  %v939_v2 = vld [vmem:[#allocation8 + $0x220] sm:$0xff] }
 0x102   :  { %v3151_v38 = vpop.f32.mrf.mxu2  ;;  %1216 = vmatpush.msra.mxu1 %v939_v2 }
 0x103   :  { %v3153_v51 = vpop.f32.mrf.mxu0  ;;  %v3155_v54 = vpop.f32.mrf.mxu1 }
 0x104   :  { %v3157_v47 = vpop.f32.mrf.mxu3 }
 0x106   :  { %590 = vmatmul.f32.gmra.mxu0 %v2994_v8  ;;  %655 = vmatmul.f32.gmra.mxu1 %v2996_v9 }
 0x107   :  { %720 = vmatmul.f32.gmra.mxu2 %v2994_v8  ;;  %v1007_v8 = vld [vmem:[#allocation8 + $0x440] sm:$0xff] }
 0x108   :  { %785 = vmatmul.f32.gmra.mxu3 %v2996_v9  ;;  %v879_v9 = vld [vmem:[#allocation8 + $0x40] sm:$0xff]  ;;  %1280 = vmatpush.msra.mxu2 %v1007_v8 }
 0x109   :  { %1150 = vmatpush.msra.mxu0 %v879_v9 }
 0x10a   :  { %v3163_v56 = vpop.f32.mrf.mxu2 }
 0x10b   :  { %v3165_v61 = vpop.f32.mrf.mxu0  ;;  %v3167_v10 = vpop.f32.mrf.mxu1 }
 0x10c   :  { %v3169_v52 = vpop.f32.mrf.mxu3 }
 0x10e   :  { %593 = vmatmul.f32.gmra.mxu0 %v3002_v16  ;;  %658 = vmatmul.f32.gmra.mxu1 %v3004_v17 }
 0x10f   :  { %723 = vmatmul.f32.gmra.mxu2 %v3002_v16  ;;  %v1003_v16 = vld [vmem:[#allocation8 + $0x420] sm:$0xff] }
 0x110   :  { %788 = vmatmul.f32.gmra.mxu3 %v3004_v17  ;;  %v875_v17 = vld [vmem:[#allocation8 + $0x20] sm:$0xff]  ;;  %1281 = vmatpush.msra.mxu2 %v1003_v16  ;;  %v1124_v16 = vld [vmem:[#allocation8 + $0x7e8] sm:$0xff] }
 0x111   :  { %1151 = vmatpush.msra.mxu0 %v875_v17  ;;  %1592 = vmatpush.msrb.mxu3 %v1124_v16 }
 0x112   :  { %v3175_v63 = vpop.f32.mrf.mxu2 }
 0x113   :  { %v3177_v0 = vpop.f32.mrf.mxu0  ;;  %v3179_v19 = vpop.f32.mrf.mxu1  ;;  %1152 = vmatpush.msra.mxu0 %v871_v28  ;;  %v996_v28 = vld [vmem:[#allocation8 + $0x3e8] sm:$0xff]  ;;  %1593 = vmatpush.msrb.mxu3 %v1120_v34 }
 0x114   :  { %v3181_v41 = vpop.f32.mrf.mxu3  ;;  %v924_v34 = vld [vmem:[#allocation8 + $0x1a8] sm:$0xff] }
 0x116   :  { %596 = vmatmul.f32.gmra.mxu0 %v3010_v22  ;;  %661 = vmatmul.f32.gmra.mxu1 %v3012_v23 }
 0x117   :  { %726 = vmatmul.f32.gmra.mxu2 %v3010_v22  ;;  %v935_v22 = vld [vmem:[#allocation8 + $0x200] sm:$0xff] }
 0x118   :  { %791 = vmatmul.f32.gmra.mxu3 %v3012_v23  ;;  %1217 = vmatpush.msra.mxu1 %v935_v22  ;;  %v999_v23 = vld [vmem:[#allocation8 + $0x400] sm:$0xff] }
 0x119   :  { %1282 = vmatpush.msra.mxu2 %v999_v23  ;;  %v928_v23 = vld [vmem:[#allocation8 + $0x1c8] sm:$0xff] }
 0x11a   :  { %v3187_v59 = vpop.f32.mrf.mxu2  ;;  %1462 = vmatpush.msrb.mxu1 %v996_v28  ;;  %v992_v28 = vld [vmem:[#allocation8 + $0x3c8] sm:$0xff] }
 0x11b   :  { %v3189_v14 = vpop.f32.mrf.mxu0  ;;  %v3191_v46 = vpop.f32.mrf.mxu1 }
 0x11c   :  { %v3193_v3 = vpop.f32.mrf.mxu3  ;;  %1463 = vmatpush.msrb.mxu1 %v992_v28 }
 0x11e   :  { %599 = vmatmul.f32.gmra.mxu0 %v3018_v29  ;;  %664 = vmatmul.f32.gmra.mxu1 %v3020_v30 }
 0x11f   :  { %729 = vmatmul.f32.gmra.mxu2 %v3018_v29  ;;  %v1060_v29 = vld [vmem:[#allocation8 + $0x5e8] sm:$0xff] }
 0x120   :  { %794 = vmatmul.f32.gmra.mxu3 %v3020_v30  ;;  %1527 = vmatpush.msrb.mxu2 %v1060_v29  ;;  %v932_v30 = vld [vmem:[#allocation8 + $0x1e8] sm:$0xff] }
 0x121   :  { %1397 = vmatpush.msrb.mxu0 %v932_v30 }
 0x122   :  { %v3199_v8 = vpop.f32.mrf.mxu2 }
 0x123   :  { %v3201_v9 = vpop.f32.mrf.mxu0  ;;  %v3203_v53 = vpop.f32.mrf.mxu1  ;;  %1398 = vmatpush.msrb.mxu0 %v928_v23  ;;  %v1052_v23 = vld [vmem:[#allocation8 + $0x5a8] sm:$0xff] }
 0x124   :  { %v3205_v40 = vpop.f32.mrf.mxu3 }
 0x125   :  { %1399 = vmatpush.msrb.mxu0 %v924_v34  ;;  %v3259_v34 = vperm.slane %v3054_v62, 3 }
 0x126   :  { %602 = vmatmul.f32.gmra.mxu0 %v3026_v32  ;;  %667 = vmatmul.f32.gmra.mxu1 %v3028_v33 }
 0x127   :  { %732 = vmatmul.f32.gmra.mxu2 %v3026_v32  ;;  %v3223_v32 = vperm.slane %v3054_v62, 0 }
 0x128   :  { %797 = vmatmul.f32.gmra.mxu3 %v3028_v33  ;;  %v1056_v33 = vld [vmem:[#allocation8 + $0x5c8] sm:$0xff] }
 0x129   :  { %1528 = vmatpush.msrb.mxu2 %v1056_v33  ;;  %v3242_v33 = vperm.slane %v3054_v62, 2 }
 0x12a   :  { %v3211_v17 = vpop.f32.mrf.mxu2 }
 0x12b   :  { %v3213_v58 = vpop.f32.mrf.mxu0  ;;  %v3215_v2 = vpop.f32.mrf.mxu1  ;;  %1529 = vmatpush.msrb.mxu2 %v1052_v23 }
 0x12c   :  { %4071 = vst [vmem:[#allocation19_spill] sm:$0xff] %v3215_v2  ;;  %v3217_v22 = vpop.f32.mrf.mxu3 }
 0x12e   :  { %605 = vmatmul.f32.gmra.mxu0 %v3034_v39  ;;  %670 = vmatmul.f32.gmra.mxu1 %v3036_v42 }
 0x12f   :  { %735 = vmatmul.f32.gmra.mxu2 %v3034_v39  ;;  %v305_v39 = vadd.f32 %v3050_v57, %v3223_v32  ;;  %v1116_v57 = vld [vmem:[#allocation8 + $0x7a8] sm:$0xff] }
 0x130   :  { %800 = vmatmul.f32.gmra.mxu3 %v3036_v42 }
 0x131   :  { %v370_v42 = vadd.f32 %v3052_v60, %v305_v39  ;;  %1594 = vmatpush.msrb.mxu3 %v1116_v57 }
 0x132   :  { %v3226_v29 = vpop.f32.mrf.mxu2 }
 0x133   :  { %4072 = vst [vmem:[#allocation20_spill] sm:$0xff] %v3226_v29  ;;  %v3228_v30 = vpop.f32.mrf.mxu0  ;;  %v3230_v16 = vpop.f32.mrf.mxu1  ;;  %v3246_v29 = vmax.f32 %v370_v42, 0.0 }
 0x134   :  { %4073 = vst [vmem:[#allocation21_spill] sm:$0xff] %v3228_v30  ;;  %v3234_v2 = vpop.f32.mrf.mxu3 }
 0x135   :  { %4074 = vst [vmem:[#allocation22_spill] sm:$0xff] %v3230_v16 }
 0x136   :  { %4075 = vst [vmem:[#allocation23_spill] sm:$0xff] %v3234_v2  ;;  %608 = vmatmul.f32.gmra.mxu0 %v3042_v49  ;;  %673 = vmatmul.f32.gmra.mxu1 %v3044_v50  ;;  %v988_v2 = vld [vmem:[#allocation8 + $0x3a8] sm:$0xff] }
 0x137   :  { %738 = vmatmul.f32.gmra.mxu2 %v3042_v49  ;;  %4077 = vst [vmem:[#allocation25_spill] sm:$0xff] %v3246_v29  ;;  %v308_v49 = vadd.f32 %v3064_v11, %v3223_v32  ;;  %1464 = vmatpush.msrb.mxu1 %v988_v2  ;;  %v1048_v11 = vld [vmem:[#allocation8 + $0x588] sm:$0xff] }
 0x138   :  { %803 = vmatmul.f32.gmra.mxu3 %v3044_v50  ;;  %v3251_v50 = vmax.f32 %v3068_v18, 0.0  ;;  %1530 = vmatpush.msrb.mxu2 %v1048_v11  ;;  %v920_v18 = vld [vmem:[#allocation8 + $0x188] sm:$0xff] }
 0x139   :  { %v373_v42 = vadd.f32 %v3066_v12, %v308_v49  ;;  %1400 = vmatpush.msrb.mxu0 %v920_v18  ;;  %v311_v12 = vadd.f32 %v3075_v25, %v3223_v32  ;;  %v3271_v49 = vmax.f32 %v3079_v37, 0.0  ;;  %v1044_v25 = vld [vmem:[#allocation8 + $0x568] sm:$0xff] }
 0x13a   :  { %v3244_v16 = vpop.f32.mrf.mxu2  ;;  %4078 = vst [vmem:[#allocation26_spill] sm:$0xff] %v3251_v50  ;;  %1531 = vmatpush.msrb.mxu2 %v1044_v25  ;;  %v916_v37 = vld [vmem:[#allocation8 + $0x168] sm:$0xff] }
 0x13b   :  { %4076 = vst [vmem:[#allocation24_spill] sm:$0xff] %v3244_v16  ;;  %v564_v28 = vpop.f32.mrf.mxu0  ;;  %v629_v30 = vpop.f32.mrf.mxu1  ;;  %v1112_v16 = vld [vmem:[#allocation8 + $0x788] sm:$0xff]  ;;  %v3266_v62 = vmax.f32 %v373_v42, 0.0  ;;  %1401 = vmatpush.msrb.mxu0 %v916_v37 }
 0x13c   :  { %v3253_v60 = vpop.f32.mrf.mxu3  ;;  %v565_v39 = vadd.f32 %v564_v28, %v3242_v33  ;;  %1595 = vmatpush.msrb.mxu3 %v1112_v16  ;;  %4082 = vst [vmem:[#allocation30_spill] sm:$0xff] %v3271_v49 }
 0x13d   :  { %4079 = vst [vmem:[#allocation27_spill] sm:$0xff] %v3253_v60 }
 0x13e   :  { %v630_v23 = vadd.f32 %v629_v30, %v565_v39  ;;  %1153 = vmatmul.f32.vlgmr.msra.gmra.mxu0 %v3246_v29  ;;  %1218 = vmatmul.f32.vlgmr.msra.gmra.mxu1 %v3251_v50  ;;  %v984_v39 = vld [vmem:[#allocation8 + $0x388] sm:$0xff]  ;;  %4081 = vst [vmem:[#allocation29_spill] sm:$0xff] %v3266_v62 }
 0x13f   :  { %1465 = vmatpush.msrb.mxu1 %v984_v39 }
 0x140   :  { %v3262_v57 = vmax.f32 %v630_v23, 0.0 }
 0x142   :  { %4080 = vst [vmem:[#allocation28_spill] sm:$0xff] %v3262_v57  ;;  %v694_v60 = vpop.f32.mrf.mxu2  ;;  %1283 = vmatmul.f32.vlgmr.msra.gmra.mxu2 %v3262_v57 }
 0x143   :  { %v695_v2 = vadd.f32 %v694_v60, %v3259_v34  ;;  %v567_v30 = vpop.f32.mrf.mxu0  ;;  %v632_v28 = vpop.f32.mrf.mxu1  ;;  %v376_v60 = vadd.f32 %v3077_v26, %v311_v12  ;;  %v314_v26 = vadd.f32 %v3086_v45, %v3223_v32  ;;  %v3289_v12 = vmax.f32 %v3090_v55, 0.0  ;;  %v1040_v45 = vld [vmem:[#allocation8 + $0x548] sm:$0xff] }
 0x144   :  { %v568_v23 = vadd.f32 %v567_v30, %v3242_v33  ;;  %v759_v11 = vpop.f32.mrf.mxu3  ;;  %v1108_v30 = vld [vmem:[#allocation8 + $0x768] sm:$0xff]  ;;  %1532 = vmatpush.msrb.mxu2 %v1040_v45 }
 0x145   :  { %v760_v57 = vadd.f32 %v759_v11, %v695_v2  ;;  %1596 = vmatpush.msrb.mxu3 %v1108_v30  ;;  %v912_v55 = vld [vmem:[#allocation8 + $0x148] sm:$0xff] }
 0x146   :  { %v633_v18 = vadd.f32 %v632_v28, %v568_v23  ;;  %1156 = vmatmul.f32.gmra.mxu0 %v3266_v62  ;;  %1221 = vmatmul.f32.gmra.mxu1 %v3271_v49  ;;  %v3284_v23 = vmax.f32 %v376_v60, 0.0  ;;  %v379_v60 = vadd.f32 %v3088_v48, %v314_v26  ;;  %v317_v48 = vadd.f32 %v3097_v5, %v3223_v32  ;;  %v1036_v5 = vld [vmem:[#allocation8 + $0x528] sm:$0xff] }
 0x147   :  { %v3276_v16 = vmax.f32 %v760_v57, 0.0  ;;  %v980_v57 = vld [vmem:[#allocation8 + $0x368] sm:$0xff]  ;;  %1402 = vmatpush.msrb.mxu0 %v912_v55  ;;  %v3307_v26 = vmax.f32 %v3101_v15, 0.0  ;;  %1533 = vmatpush.msrb.mxu2 %v1036_v5 }
 0x148   :  { %v3279_v42 = vmax.f32 %v633_v18, 0.0  ;;  %1466 = vmatpush.msrb.mxu1 %v980_v57  ;;  %v908_v15 = vld [vmem:[#allocation8 + $0x128] sm:$0xff] }
 0x149   :  { %1348 = vmatmul.f32.vlgmr.msra.gmra.mxu3 %v3276_v16  ;;  %1403 = vmatpush.msrb.mxu0 %v908_v15 }
 0x14a   :  { %4083 = vst [vmem:[#allocation31_spill] sm:$0xff] %v3279_v42  ;;  %v697_v50 = vpop.f32.mrf.mxu2  ;;  %1286 = vmatmul.f32.gmra.mxu2 %v3279_v42 }
 0x14b   :  { %v698_v2 = vadd.f32 %v697_v50, %v3259_v34  ;;  %v570_v28 = vpop.f32.mrf.mxu0  ;;  %v635_v39 = vpop.f32.mrf.mxu1 }
 0x14c   :  { %v571_v11 = vadd.f32 %v570_v28, %v3242_v33  ;;  %v762_v18 = vpop.f32.mrf.mxu3  ;;  %v1104_v28 = vld [vmem:[#allocation8 + $0x748] sm:$0xff] }
 0x14d   :  { %v763_v25 = vadd.f32 %v762_v18, %v698_v2  ;;  %1597 = vmatpush.msrb.mxu3 %v1104_v28  ;;  %v3302_v18 = vmax.f32 %v379_v60, 0.0  ;;  %v382_v60 = vadd.f32 %v3099_v6, %v317_v48  ;;  %v320_v6 = vadd.f32 %v3108_v20, %v3223_v32  ;;  %v1032_v20 = vld [vmem:[#allocation8 + $0x508] sm:$0xff] }
 0x14e   :  { %v636_v37 = vadd.f32 %v635_v39, %v571_v11  ;;  %1159 = vmatmul.f32.gmra.mxu0 %v3284_v23  ;;  %1224 = vmatmul.f32.gmra.mxu1 %v3289_v12  ;;  %v976_v11 = vld [vmem:[#allocation8 + $0x348] sm:$0xff]  ;;  %v3325_v48 = vmax.f32 %v3112_v36, 0.0 }
 0x14f   :  { %v3294_v50 = vmax.f32 %v763_v25, 0.0  ;;  %1467 = vmatpush.msrb.mxu1 %v976_v11  ;;  %1534 = vmatpush.msrb.mxu2 %v1032_v20  ;;  %v904_v36 = vld [vmem:[#allocation8 + $0x108] sm:$0xff] }
 0x150   :  { %v3297_v30 = vmax.f32 %v636_v37, 0.0  ;;  %1404 = vmatpush.msrb.mxu0 %v904_v36 }
 0x151   :  { %1351 = vmatmul.f32.gmra.mxu3 %v3294_v50 }
 0x152   :  { %4084 = vst [vmem:[#allocation32_spill] sm:$0xff] %v3297_v30  ;;  %v700_v42 = vpop.f32.mrf.mxu2  ;;  %1289 = vmatmul.f32.gmra.mxu2 %v3297_v30 }
 0x153   :  { %v701_v2 = vadd.f32 %v700_v42, %v3259_v34  ;;  %v573_v39 = vpop.f32.mrf.mxu0  ;;  %v638_v57 = vpop.f32.mrf.mxu1 }
 0x154   :  { %v574_v25 = vadd.f32 %v573_v39, %v3242_v33  ;;  %v765_v37 = vpop.f32.mrf.mxu3  ;;  %v1100_v39 = vld [vmem:[#allocation8 + $0x728] sm:$0xff] }
 0x155   :  { %v766_v45 = vadd.f32 %v765_v37, %v701_v2  ;;  %1598 = vmatpush.msrb.mxu3 %v1100_v39  ;;  %v3320_v37 = vmax.f32 %v382_v60, 0.0  ;;  %v385_v60 = vadd.f32 %v3110_v21, %v320_v6  ;;  %v323_v21 = vadd.f32 %v3119_v43, %v3223_v32  ;;  %v1028_v43 = vld [vmem:[#allocation8 + $0x4e8] sm:$0xff] }
 0x156   :  { %v639_v55 = vadd.f32 %v638_v57, %v574_v25  ;;  %1162 = vmatmul.f32.gmra.mxu0 %v3302_v18  ;;  %1227 = vmatmul.f32.gmra.mxu1 %v3307_v26  ;;  %v972_v25 = vld [vmem:[#allocation8 + $0x328] sm:$0xff]  ;;  %v3343_v6 = vmax.f32 %v3123_v27, 0.0 }
 0x157   :  { %v3312_v42 = vmax.f32 %v766_v45, 0.0  ;;  %1468 = vmatpush.msrb.mxu1 %v972_v25  ;;  %1535 = vmatpush.msrb.mxu2 %v1028_v43  ;;  %v900_v27 = vld [vmem:[#allocation8 + $0xe8] sm:$0xff] }
 0x158   :  { %v3315_v28 = vmax.f32 %v639_v55, 0.0  ;;  %1405 = vmatpush.msrb.mxu0 %v900_v27 }
 0x159   :  { %1354 = vmatmul.f32.gmra.mxu3 %v3312_v42 }
 0x15a   :  { %4085 = vst [vmem:[#allocation33_spill] sm:$0xff] %v3315_v28  ;;  %v703_v30 = vpop.f32.mrf.mxu2  ;;  %1292 = vmatmul.f32.gmra.mxu2 %v3315_v28 }
 0x15b   :  { %v704_v2 = vadd.f32 %v703_v30, %v3259_v34  ;;  %v576_v57 = vpop.f32.mrf.mxu0  ;;  %v641_v11 = vpop.f32.mrf.mxu1 }
 0x15c   :  { %v577_v45 = vadd.f32 %v576_v57, %v3242_v33  ;;  %v768_v55 = vpop.f32.mrf.mxu3  ;;  %v1096_v57 = vld [vmem:[#allocation8 + $0x708] sm:$0xff] }
 0x15d   :  { %v769_v5 = vadd.f32 %v768_v55, %v704_v2  ;;  %1599 = vmatpush.msrb.mxu3 %v1096_v57  ;;  %v3338_v55 = vmax.f32 %v385_v60, 0.0  ;;  %v388_v60 = vadd.f32 %v3121_v44, %v323_v21  ;;  %v326_v44 = vadd.f32 %v3130_v4, %v3223_v32  ;;  %v1024_v4 = vld [vmem:[#allocation8 + $0x4c8] sm:$0xff] }
 0x15e   :  { %v642_v15 = vadd.f32 %v641_v11, %v577_v45  ;;  %1165 = vmatmul.f32.gmra.mxu0 %v3320_v37  ;;  %1230 = vmatmul.f32.gmra.mxu1 %v3325_v48  ;;  %v968_v45 = vld [vmem:[#allocation8 + $0x308] sm:$0xff]  ;;  %v3361_v21 = vmax.f32 %v3134_v35, 0.0 }
 0x15f   :  { %v3330_v30 = vmax.f32 %v769_v5, 0.0  ;;  %1469 = vmatpush.msrb.mxu1 %v968_v45  ;;  %1536 = vmatpush.msrb.mxu2 %v1024_v4  ;;  %v896_v35 = vld [vmem:[#allocation8 + $0xc8] sm:$0xff] }
 0x160   :  { %v3333_v39 = vmax.f32 %v642_v15, 0.0  ;;  %1406 = vmatpush.msrb.mxu0 %v896_v35 }
 0x161   :  { %1357 = vmatmul.f32.gmra.mxu3 %v3330_v30 }
 0x162   :  { %4086 = vst [vmem:[#allocation34_spill] sm:$0xff] %v3333_v39  ;;  %v706_v28 = vpop.f32.mrf.mxu2  ;;  %1295 = vmatmul.f32.gmra.mxu2 %v3333_v39 }
 0x163   :  { %v707_v2 = vadd.f32 %v706_v28, %v3259_v34  ;;  %v579_v11 = vpop.f32.mrf.mxu0  ;;  %v644_v25 = vpop.f32.mrf.mxu1 }
 0x164   :  { %v580_v5 = vadd.f32 %v579_v11, %v3242_v33  ;;  %v771_v15 = vpop.f32.mrf.mxu3  ;;  %v1092_v11 = vld [vmem:[#allocation8 + $0x6e8] sm:$0xff] }
 0x165   :  { %v772_v20 = vadd.f32 %v771_v15, %v707_v2  ;;  %1600 = vmatpush.msrb.mxu3 %v1092_v11  ;;  %v3356_v15 = vmax.f32 %v388_v60, 0.0  ;;  %v391_v60 = vadd.f32 %v3132_v7, %v326_v44  ;;  %v960_v7 = vld [vmem:[#allocation8 + $0x2c8] sm:$0xff] }
 0x166   :  { %v645_v36 = vadd.f32 %v644_v25, %v580_v5  ;;  %1168 = vmatmul.f32.gmra.mxu0 %v3338_v55  ;;  %1233 = vmatmul.f32.gmra.mxu1 %v3343_v6  ;;  %v964_v5 = vld [vmem:[#allocation8 + $0x2e8] sm:$0xff] }
 0x167   :  { %v3348_v28 = vmax.f32 %v772_v20, 0.0  ;;  %1470 = vmatpush.msrb.mxu1 %v964_v5  ;;  %v3376_v44 = vmax.f32 %v391_v60, 0.0 }
 0x168   :  { %v3351_v57 = vmax.f32 %v645_v36, 0.0 }
 0x169   :  { %1360 = vmatmul.f32.gmra.mxu3 %v3348_v28  ;;  %1471 = vmatpush.msrb.mxu1 %v960_v7 }
 0x16a   :  { %4087 = vst [vmem:[#allocation35_spill] sm:$0xff] %v3351_v57  ;;  %v709_v39 = vpop.f32.mrf.mxu2  ;;  %1298 = vmatmul.f32.gmra.mxu2 %v3351_v57 }
 0x16b   :  { %v710_v2 = vadd.f32 %v709_v39, %v3259_v34  ;;  %v582_v25 = vpop.f32.mrf.mxu0  ;;  %v647_v45 = vpop.f32.mrf.mxu1 }
 0x16c   :  { %v583_v20 = vadd.f32 %v582_v25, %v3242_v33  ;;  %v774_v36 = vpop.f32.mrf.mxu3  ;;  %v1088_v25 = vld [vmem:[#allocation8 + $0x6c8] sm:$0xff] }
 0x16d   :  { %v775_v43 = vadd.f32 %v774_v36, %v710_v2  ;;  %v329_v2 = vadd.f32 %v3141_v24, %v3223_v32  ;;  %1601 = vmatpush.msrb.mxu3 %v1088_v25  ;;  %v3379_v36 = vmax.f32 %v3145_v13, 0.0 }
 0x16e   :  { %v648_v27 = vadd.f32 %v647_v45, %v583_v20  ;;  %1171 = vmatmul.f32.gmra.mxu0 %v3356_v15  ;;  %1236 = vmatmul.f32.gmra.mxu1 %v3361_v21 }
 0x16f   :  { %v3366_v39 = vmax.f32 %v775_v43, 0.0  ;;  %v459_v43 = vadd.f32 %v3151_v38, %v3060_v1  ;;  %v892_v38 = vld [vmem:[#allocation8 + $0xa8] sm:$0xff] }
 0x170   :  { %v3369_v11 = vmax.f32 %v648_v27, 0.0  ;;  %1407 = vmatpush.msrb.mxu0 %v892_v38 }
 0x171   :  { %1363 = vmatmul.f32.gmra.mxu3 %v3366_v39  ;;  %v524_v13 = vadd.f32 %v3157_v47, %v459_v43  ;;  %v956_v47 = vld [vmem:[#allocation8 + $0x2a8] sm:$0xff]  ;;  %v332_v43 = vadd.f32 %v3153_v51, %v3223_v32 }
 0x172   :  { %4088 = vst [vmem:[#allocation36_spill] sm:$0xff] %v3369_v11  ;;  %v712_v57 = vpop.f32.mrf.mxu2  ;;  %1301 = vmatmul.f32.gmra.mxu2 %v3369_v11  ;;  %v1020_v11 = vld [vmem:[#allocation8 + $0x4a8] sm:$0xff]  ;;  %1472 = vmatpush.msrb.mxu1 %v956_v47 }
 0x173   :  { %v713_v45 = vadd.f32 %v712_v57, %v3259_v34  ;;  %v585_v5 = vpop.f32.mrf.mxu0  ;;  %v650_v20 = vpop.f32.mrf.mxu1  ;;  %v394_v57 = vadd.f32 %v3143_v31, %v329_v2  ;;  %1537 = vmatpush.msrb.mxu2 %v1020_v11  ;;  %v462_v11 = vadd.f32 %v3163_v56, %v3060_v1  ;;  %v888_v56 = vld [vmem:[#allocation8 + $0x88] sm:$0xff] }
 0x174   :  { %v586_v27 = vadd.f32 %v585_v5, %v3242_v33  ;;  %v777_v4 = vpop.f32.mrf.mxu3  ;;  %v1084_v5 = vld [vmem:[#allocation8 + $0x6a8] sm:$0xff]  ;;  %1408 = vmatpush.msrb.mxu0 %v888_v56 }
 0x175   :  { %v778_v35 = vadd.f32 %v777_v4, %v713_v45  ;;  %1602 = vmatpush.msrb.mxu3 %v1084_v5  ;;  %v397_v5 = vadd.f32 %v3155_v54, %v332_v43  ;;  %v527_v51 = vadd.f32 %v3169_v52, %v462_v11  ;;  %v952_v52 = vld [vmem:[#allocation8 + $0x288] sm:$0xff] }
 0x176   :  { %v651_v24 = vadd.f32 %v650_v20, %v586_v27  ;;  %1174 = vmatmul.f32.gmra.mxu0 %v3376_v44  ;;  %1239 = vmatmul.f32.gmra.mxu1 %v3379_v36  ;;  %v3394_v20 = vmax.f32 %v394_v57, 0.0  ;;  %v3399_v27 = vmax.f32 %v524_v13, 0.0 }
 0x177   :  { %v3387_v60 = vmax.f32 %v778_v35, 0.0  ;;  %v3417_v11 = vmax.f32 %v397_v5, 0.0  ;;  %1473 = vmatpush.msrb.mxu1 %v952_v52 }
 0x178   :  { %v3390_v25 = vmax.f32 %v651_v24, 0.0 }
 0x179   :  { %1366 = vmatmul.f32.gmra.mxu3 %v3387_v60 }
 0x17a   :  { %v715_v45 = vpop.f32.mrf.mxu2  ;;  %1304 = vmatmul.f32.gmra.mxu2 %v3390_v25 }
 0x17b   :  { %v716_v31 = vadd.f32 %v715_v45, %v3259_v34  ;;  %v588_v2 = vpop.f32.mrf.mxu0  ;;  %v653_v7 = vpop.f32.mrf.mxu1  ;;  %v1016_v45 = vld [vmem:[#allocation8 + $0x488] sm:$0xff] }
 0x17c   :  { %v589_v4 = vadd.f32 %v588_v2, %v3242_v33  ;;  %v780_v35 = vpop.f32.mrf.mxu3  ;;  %1538 = vmatpush.msrb.mxu2 %v1016_v45  ;;  %v1080_v2 = vld [vmem:[#allocation8 + $0x688] sm:$0xff] }
 0x17d   :  { %v781_v24 = vadd.f32 %v780_v35, %v716_v31  ;;  %1603 = vmatpush.msrb.mxu3 %v1080_v2  ;;  %v465_v35 = vadd.f32 %v3175_v63, %v3060_v1  ;;  %v884_v63 = vld [vmem:[#allocation8 + $0x68] sm:$0xff] }
 0x17e   :  { %v654_v57 = vadd.f32 %v653_v7, %v589_v4  ;;  %1177 = vmatmul.f32.gmra.mxu0 %v3394_v20  ;;  %1242 = vmatmul.f32.gmra.mxu1 %v3399_v27  ;;  %v335_v7 = vadd.f32 %v3165_v61, %v3223_v32  ;;  %v3419_v4 = vmax.f32 %v527_v51, 0.0 }
 0x17f   :  { %v3406_v38 = vmax.f32 %v781_v24, 0.0  ;;  %v530_v5 = vadd.f32 %v3181_v41, %v465_v35  ;;  %1409 = vmatpush.msrb.mxu0 %v884_v63  ;;  %v948_v41 = vld [vmem:[#allocation8 + $0x268] sm:$0xff]  ;;  %v338_v35 = vadd.f32 %v3177_v0, %v3223_v32 }
 0x180   :  { %v3410_v13 = vmax.f32 %v654_v57, 0.0  ;;  %v400_v61 = vadd.f32 %v3167_v10, %v335_v7  ;;  %1474 = vmatpush.msrb.mxu1 %v948_v41 }
 0x181   :  { %1369 = vmatmul.f32.gmra.mxu3 %v3406_v38 }
 0x182   :  { %v718_v31 = vpop.f32.mrf.mxu2  ;;  %1307 = vmatmul.f32.gmra.mxu2 %v3410_v13 }
 0x183   :  { %v719_v47 = vadd.f32 %v718_v31, %v3259_v34  ;;  %v591_v54 = vpop.f32.mrf.mxu0  ;;  %v656_v43 = vpop.f32.mrf.mxu1  ;;  %v1012_v31 = vld [vmem:[#allocation8 + $0x468] sm:$0xff] }
 0x184   :  { %v592_v24 = vadd.f32 %v591_v54, %v3242_v33  ;;  %v783_v57 = vpop.f32.mrf.mxu3  ;;  %1539 = vmatpush.msrb.mxu2 %v1012_v31  ;;  %v1076_v54 = vld [vmem:[#allocation8 + $0x668] sm:$0xff] }
 0x185   :  { %v784_v45 = vadd.f32 %v783_v57, %v719_v47  ;;  %1604 = vmatpush.msrb.mxu3 %v1076_v54  ;;  %v468_v57 = vadd.f32 %v3187_v59, %v3060_v1  ;;  %v403_v54 = vadd.f32 %v3179_v19, %v338_v35  ;;  %v880_v59 = vld [vmem:[#allocation8 + $0x48] sm:$0xff] }
 0x186   :  { %v657_v56 = vadd.f32 %v656_v43, %v592_v24  ;;  %1180 = vmatmul.f32.gmra.mxu0 %v3417_v11  ;;  %1245 = vmatmul.f32.gmra.mxu1 %v3419_v4  ;;  %v3434_v43 = vmax.f32 %v400_v61, 0.0  ;;  %v3439_v24 = vmax.f32 %v530_v5, 0.0 }
 0x187   :  { %v3427_v2 = vmax.f32 %v784_v45, 0.0  ;;  %v533_v0 = vadd.f32 %v3193_v3, %v468_v57  ;;  %1410 = vmatpush.msrb.mxu0 %v880_v59  ;;  %v944_v3 = vld [vmem:[#allocation8 + $0x248] sm:$0xff]  ;;  %v3457_v57 = vmax.f32 %v403_v54, 0.0 }
 0x188   :  { %v3430_v51 = vmax.f32 %v657_v56, 0.0  ;;  %1475 = vmatpush.msrb.mxu1 %v944_v3 }
 0x189   :  { %1372 = vmatmul.f32.gmra.mxu3 %v3427_v2 }
 0x18a   :  { %v721_v47 = vpop.f32.mrf.mxu2  ;;  %1310 = vmatmul.f32.gmra.mxu2 %v3430_v51 }
 0x18b   :  { %v722_v10 = vadd.f32 %v721_v47, %v3259_v34  ;;  %v594_v7 = vpop.f32.mrf.mxu0  ;;  %v659_v52 = vpop.f32.mrf.mxu1  ;;  %v1008_v47 = vld [vmem:[#allocation8 + $0x448] sm:$0xff] }
 0x18c   :  { %v595_v45 = vadd.f32 %v594_v7, %v3242_v33  ;;  %v786_v56 = vpop.f32.mrf.mxu3  ;;  %1540 = vmatpush.msrb.mxu2 %v1008_v47  ;;  %v1072_v7 = vld [vmem:[#allocation8 + $0x648] sm:$0xff] }
 0x18d   :  { %v787_v61 = vadd.f32 %v786_v56, %v722_v10  ;;  %1605 = vmatpush.msrb.mxu3 %v1072_v7  ;;  %v471_v56 = vadd.f32 %v3199_v8, %v3060_v1  ;;  %v876_v8 = vld [vmem:[#allocation8 + $0x28] sm:$0xff] }
 0x18e   :  { %v660_v31 = vadd.f32 %v659_v52, %v595_v45  ;;  %1183 = vmatmul.f32.gmra.mxu0 %v3434_v43  ;;  %1248 = vmatmul.f32.gmra.mxu1 %v3439_v24  ;;  %v341_v52 = vadd.f32 %v3189_v14, %v3223_v32  ;;  %v3459_v45 = vmax.f32 %v533_v0, 0.0 }
 0x18f   :  { %v3446_v63 = vmax.f32 %v787_v61, 0.0  ;;  %v536_v54 = vadd.f32 %v3205_v40, %v471_v56  ;;  %1411 = vmatpush.msrb.mxu0 %v876_v8  ;;  %v940_v40 = vld [vmem:[#allocation8 + $0x228] sm:$0xff]  ;;  %v344_v56 = vadd.f32 %v3201_v9, %v3223_v32 }
 0x190   :  { %v3450_v5 = vmax.f32 %v660_v31, 0.0  ;;  %v406_v14 = vadd.f32 %v3191_v46, %v341_v52  ;;  %1476 = vmatpush.msrb.mxu1 %v940_v40  ;;  %v936_v8 = vld [vmem:[#allocation8 + $0x208] sm:$0xff]  ;;  %v347_v40 = vadd.f32 %v3213_v58, %v3223_v32  ;;  %v1061_v58 = vld [vmem:[#allocation8 + $0x5f0] sm:$0xff] }
 0x191   :  { %1375 = vmatmul.f32.gmra.mxu3 %v3446_v63  ;;  %v1000_v9 = vld [vmem:[#allocation8 + $0x408] sm:$0xff] }
 0x192   :  { %v724_v10 = vpop.f32.mrf.mxu2  ;;  %1313 = vmatmul.f32.gmra.mxu2 %v3450_v5  ;;  %1477 = vmatpush.msrb.mxu1 %v936_v8 }
 0x193   :  { %v725_v41 = vadd.f32 %v724_v10, %v3259_v34  ;;  %v597_v19 = vpop.f32.mrf.mxu0  ;;  %v662_v35 = vpop.f32.mrf.mxu1  ;;  %v1004_v10 = vld [vmem:[#allocation8 + $0x428] sm:$0xff] }
 0x194   :  { %v598_v61 = vadd.f32 %v597_v19, %v3242_v33  ;;  %v789_v31 = vpop.f32.mrf.mxu3  ;;  %1541 = vmatpush.msrb.mxu2 %v1004_v10  ;;  %v1068_v19 = vld [vmem:[#allocation8 + $0x628] sm:$0xff] }
 0x195   :  { %v790_v47 = vadd.f32 %v789_v31, %v725_v41  ;;  %1606 = vmatpush.msrb.mxu3 %v1068_v19  ;;  %v474_v31 = vadd.f32 %v3211_v17, %v3060_v1  ;;  %v872_v10 = vld [vmem:[#allocation8 + $0x8] sm:$0xff] }
 0x196   :  { %v663_v59 = vadd.f32 %v662_v35, %v598_v61  ;;  %1186 = vmatmul.f32.gmra.mxu0 %v3457_v57  ;;  %1251 = vmatmul.f32.gmra.mxu1 %v3459_v45  ;;  %v3474_v35 = vmax.f32 %v406_v14, 0.0  ;;  %v3479_v61 = vmax.f32 %v536_v54, 0.0  ;;  %v409_v54 = vadd.f32 %v3203_v53, %v344_v56  ;;  %v4094_v56 = vld [vmem:[#allocation20_spill] sm:$0xff] }
 0x197   :  { %v3467_v7 = vmax.f32 %v790_v47, 0.0  ;;  %1412 = vmatpush.msrb.mxu0 %v872_v10  ;;  %v539_v17 = vadd.f32 %v3217_v22, %v474_v31  ;;  %1542 = vmatpush.msrb.mxu2 %v1000_v9  ;;  %v477_v31 = vadd.f32 %v4094_v56, %v3060_v1  ;;  %v1125_v56 = vld [vmem:[#allocation8 + $0x7f0] sm:$0xff] }
 0x198   :  { %v3470_v0 = vmax.f32 %v663_v59, 0.0  ;;  %4090 = vst [vmem:[#allocation38_spill] sm:$0xff] %v3479_v61  ;;  %v3497_v53 = vmax.f32 %v409_v54, 0.0  ;;  %v4097_v54 = vld [vmem:[#allocation23_spill] sm:$0xff] }
 0x199   :  { %1378 = vmatmul.f32.gmra.mxu3 %v3467_v7  ;;  %v3499_v22 = vmax.f32 %v539_v17, 0.0  ;;  %1787 = vmatpush.msra.mxu2 %v1061_v58  ;;  %v542_v17 = vadd.f32 %v4097_v54, %v477_v31  ;;  %v4099_v31 = vld [vmem:[#allocation21_spill] sm:$0xff] }
 0x19a   :  { %4089 = vst [vmem:[#allocation37_spill] sm:$0xff] %v3470_v0  ;;  %v727_v41 = vpop.f32.mrf.mxu2  ;;  %1316 = vmatmul.f32.gmra.mxu2 %v3470_v0 }
 0x19b   :  { %v728_v46 = vadd.f32 %v727_v41, %v3259_v34  ;;  %v600_v52 = vpop.f32.mrf.mxu0  ;;  %v665_v3 = vpop.f32.mrf.mxu1  ;;  %4093 = vst [vmem:[#allocation41_spill] sm:$0xff] %v3499_v22  ;;  %v3519_v58 = vmax.f32 %v542_v17, 0.0 }
 0x19c   :  { %v601_v47 = vadd.f32 %v600_v52, %v3242_v33  ;;  %v792_v59 = vpop.f32.mrf.mxu3 }
 0x19d   :  { %v793_v14 = vadd.f32 %v792_v59, %v728_v46  ;;  %v1064_v46 = vld [vmem:[#allocation8 + $0x608] sm:$0xff] }
 0x19e   :  { %v666_v41 = vadd.f32 %v665_v3, %v601_v47  ;;  %1189 = vmatmul.f32.gmra.mxu0 %v3474_v35  ;;  %1254 = vmatmul.f32.gmra.mxu1 %v3479_v61 }
 0x19f   :  { %v3486_v19 = vmax.f32 %v793_v14, 0.0  ;;  %1607 = vmatpush.msrb.mxu3 %v1064_v46  ;;  %v4095_v46 = vld [vmem:[#allocation19_spill] sm:$0xff] }
 0x1a0   :  { %v3490_v52 = vmax.f32 %v666_v41, 0.0 }
 0x1a1   :  { %4091 = vst [vmem:[#allocation39_spill] sm:$0xff] %v3486_v19  ;;  %1381 = vmatmul.f32.gmra.mxu3 %v3486_v19 }
 0x1a2   :  { %4092 = vst [vmem:[#allocation40_spill] sm:$0xff] %v3490_v52  ;;  %v730_v3 = vpop.f32.mrf.mxu2  ;;  %1319 = vmatmul.f32.gmra.mxu2 %v3490_v52  ;;  %1852 = vmatpush.msra.mxu3 %v1125_v56  ;;  %v1057_v56 = vld [vmem:[#allocation8 + $0x5d0] sm:$0xff] }
 0x1a3   :  { %v731_v47 = vadd.f32 %v730_v3, %v3259_v34  ;;  %v603_v59 = vpop.f32.mrf.mxu0  ;;  %v668_v14 = vpop.f32.mrf.mxu1  ;;  %v412_v3 = vadd.f32 %v4095_v46, %v347_v40  ;;  %v4100_v46 = vld [vmem:[#allocation24_spill] sm:$0xff]  ;;  %1788 = vmatpush.msra.mxu2 %v1057_v56 }
 0x1a4   :  { %v604_v10 = vadd.f32 %v603_v59, %v3242_v33  ;;  %v795_v8 = vpop.f32.mrf.mxu3  ;;  %v933_v59 = vld [vmem:[#allocation8 + $0x1f0] sm:$0xff]  ;;  %v480_v54 = vadd.f32 %v4100_v46, %v3060_v1 }
 0x1a5   :  { %v796_v41 = vadd.f32 %v795_v8, %v731_v47  ;;  %1657 = vmatpush.msra.mxu0 %v933_v59  ;;  %v929_v1 = vld [vmem:[#allocation8 + $0x1d0] sm:$0xff] }
 0x1a6   :  { %v669_v9 = vadd.f32 %v668_v14, %v604_v10  ;;  %1192 = vmatmul.f32.gmra.mxu0 %v3497_v53  ;;  %1257 = vmatmul.f32.gmra.mxu1 %v3499_v22  ;;  %v997_v14 = vld [vmem:[#allocation8 + $0x3f0] sm:$0xff]  ;;  %v3514_v10 = vmax.f32 %v412_v3, 0.0 }
 0x1a7   :  { %v3507_v52 = vmax.f32 %v796_v41, 0.0  ;;  %1722 = vmatpush.msra.mxu1 %v997_v14  ;;  %v4102_v14 = vld [vmem:[#allocation22_spill] sm:$0xff]  ;;  %1658 = vmatpush.msra.mxu0 %v929_v1  ;;  %v1053_v1 = vld [vmem:[#allocation8 + $0x5b0] sm:$0xff] }
 0x1a8   :  { %v3510_v19 = vmax.f32 %v669_v9, 0.0  ;;  %v350_v9 = vadd.f32 %v4099_v31, %v3223_v32  ;;  %v4103_v32 = vld [vmem:[#allocation27_spill] sm:$0xff]  ;;  %1789 = vmatpush.msra.mxu2 %v1053_v1 }
 0x1a9   :  { %4096 = vst [vmem:[#allocation20_spill] sm:$0xff] %v3507_v52  ;;  %1384 = vmatmul.f32.gmra.mxu3 %v3507_v52  ;;  %v545_v17 = vadd.f32 %v4103_v32, %v480_v54 }
 0x1aa   :  { %4098 = vst [vmem:[#allocation19_spill] sm:$0xff] %v3510_v19  ;;  %v733_v47 = vpop.f32.mrf.mxu2  ;;  %1322 = vmatmul.f32.gmra.mxu2 %v3510_v19  ;;  %v415_v22 = vadd.f32 %v4102_v14, %v350_v9 }
 0x1ab   :  { %v734_v40 = vadd.f32 %v733_v47, %v3259_v34  ;;  %v606_v8 = vpop.f32.mrf.mxu0  ;;  %v671_v41 = vpop.f32.mrf.mxu1  ;;  %v3537_v54 = vmax.f32 %v545_v17, 0.0  ;;  %v925_v17 = vld [vmem:[#allocation8 + $0x1b0] sm:$0xff] }
 0x1ac   :  { %v607_v19 = vadd.f32 %v606_v8, %v3242_v33  ;;  %v798_v59 = vpop.f32.mrf.mxu3  ;;  %v1121_v8 = vld [vmem:[#allocation8 + $0x7d0] sm:$0xff]  ;;  %v3535_v9 = vmax.f32 %v415_v22, 0.0  ;;  %v3547_v22 = vld [vmem:[#allocation10] sm:$0xf]  ;;  %1659 = vmatpush.msra.mxu0 %v925_v17 }
 0x1ad   :  { %v799_v52 = vadd.f32 %v798_v59, %v734_v40  ;;  %1853 = vmatpush.msra.mxu3 %v1121_v8  ;;  %4107 = vst [vmem:[#allocation27_spill] sm:$0xff] %v3547_v22  ;;  %v1117_v8 = vld [vmem:[#allocation8 + $0x7b0] sm:$0xff] }
 0x1ae   :  { %v672_v3 = vadd.f32 %v671_v41, %v607_v19  ;;  %1195 = vmatmul.f32.gmra.mxu0 %v3514_v10  ;;  %1260 = vmatmul.f32.gmra.mxu1 %v3519_v58  ;;  %v993_v19 = vld [vmem:[#allocation8 + $0x3d0] sm:$0xff] }
 0x1af   :  { %v3526_v47 = vmax.f32 %v799_v52, 0.0  ;;  %1723 = vmatpush.msra.mxu1 %v993_v19  ;;  %v989_v19 = vld [vmem:[#allocation8 + $0x3b0] sm:$0xff]  ;;  %1854 = vmatpush.msra.mxu3 %v1117_v8 }
 0x1b0   :  { %v3530_v31 = vmax.f32 %v672_v3, 0.0  ;;  %v1113_v8 = vld [vmem:[#allocation8 + $0x790] sm:$0xff] }
 0x1b1   :  { %4101 = vst [vmem:[#allocation23_spill] sm:$0xff] %v3526_v47  ;;  %1387 = vmatmul.f32.gmra.mxu3 %v3526_v47  ;;  %1724 = vmatpush.msra.mxu1 %v989_v19  ;;  %v985_v19 = vld [vmem:[#allocation8 + $0x390] sm:$0xff] }
 0x1b2   :  { %4104 = vst [vmem:[#allocation21_spill] sm:$0xff] %v3530_v31  ;;  %v736_v40 = vpop.f32.mrf.mxu2  ;;  %1325 = vmatmul.f32.gmra.mxu2 %v3530_v31  ;;  %1855 = vmatpush.msra.mxu3 %v1113_v8  ;;  %v981_v8 = vld [vmem:[#allocation8 + $0x370] sm:$0xff] }
 0x1b3   :  { %v737_v52 = vadd.f32 %v736_v40, %v3259_v34  ;;  %v609_v41 = vpop.f32.mrf.mxu0  ;;  %v674_v46 = vpop.f32.mrf.mxu1  ;;  %1725 = vmatpush.msra.mxu1 %v985_v19 }
 0x1b4   :  { %v610_v59 = vadd.f32 %v609_v41, %v3242_v33  ;;  %v801_v3 = vpop.f32.mrf.mxu3 }
 0x1b5   :  { %v802_v56 = vadd.f32 %v801_v3, %v737_v52  ;;  %v3552_v3 = vperm.slane %v3547_v22, 0  ;;  %1726 = vmatpush.msra.mxu1 %v981_v8 }
 0x1b6   :  { %v675_v14 = vadd.f32 %v674_v46, %v610_v59  ;;  %1198 = vmatmul.f32.gmra.mxu0 %v3535_v9  ;;  %1263 = vmatmul.f32.gmra.mxu1 %v3537_v54 }
 0x1b7   :  { %v3542_v32 = vmax.f32 %v802_v56, 0.0 }
 0x1b8   :  { %v3544_v40 = vmax.f32 %v675_v14, 0.0  ;;  %v4108_v14 = vld [vmem:[#allocation26_spill] sm:$0xff] }
 0x1b9   :  { %4105 = vst [vmem:[#allocation24_spill] sm:$0xff] %v3542_v32  ;;  %1390 = vmatmul.f32.gmra.mxu3 %v3542_v32 }
 0x1ba   :  { %4106 = vst [vmem:[#allocation22_spill] sm:$0xff] %v3544_v40  ;;  %v739_v33 = vpop.f32.mrf.mxu2  ;;  %1328 = vmatmul.f32.gmra.mxu2 %v3544_v40  ;;  %v1049_v40 = vld [vmem:[#allocation8 + $0x590] sm:$0xff] }
 0x1bb   :  { %v740_v52 = vadd.f32 %v739_v33, %v3259_v34  ;;  %v1154_v41 = vpop.f32.mrf.mxu0  ;;  %v1219_v46 = vpop.f32.mrf.mxu1  ;;  %1790 = vmatpush.msra.mxu2 %v1049_v40  ;;  %v921_v34 = vld [vmem:[#allocation8 + $0x190] sm:$0xff] }
 0x1bc   :  { %v804_v59 = vpop.f32.mrf.mxu3  ;;  %v1155_v17 = vadd.f32 %v1154_v41, %v3552_v3  ;;  %v4110_v33 = vld [vmem:[#allocation28_spill] sm:$0xff]  ;;  %1660 = vmatpush.msra.mxu0 %v921_v34 }
 0x1bd   :  { %v805_v56 = vadd.f32 %v804_v59, %v740_v52  ;;  %v1045_v40 = vld [vmem:[#allocation8 + $0x570] sm:$0xff] }
 0x1be   :  { %1413 = vmatmul.f32.vlgmr.msrb.gmra.mxu0 %v3246_v29  ;;  %1478 = vmatmul.f32.vlgmr.msrb.gmra.mxu1 %v4108_v14  ;;  %v1220_v59 = vadd.f32 %v1219_v46, %v1155_v17  ;;  %v1109_v34 = vld [vmem:[#allocation8 + $0x770] sm:$0xff] }
 0x1bf   :  { %v3556_v1 = vmax.f32 %v805_v56, 0.0  ;;  %1791 = vmatpush.msra.mxu2 %v1045_v40  ;;  %1856 = vmatpush.msra.mxu3 %v1109_v34  ;;  %v4113_v34 = vld [vmem:[#allocation32_spill] sm:$0xff] }
 0x1c1   :  { %4109 = vst [vmem:[#allocation42_spill] sm:$0xff] %v3556_v1  ;;  %1393 = vmatmul.f32.gmra.mxu3 %v3556_v1  ;;  %v4111_v1 = vld [vmem:[#allocation31_spill] sm:$0xff] }
 0x1c2   :  { %1543 = vmatmul.f32.vlgmr.msrb.gmra.mxu2 %v4110_v33  ;;  %v917_v33 = vld [vmem:[#allocation8 + $0x170] sm:$0xff] }
 0x1c3   :  { %v1157_v22 = vpop.f32.mrf.mxu0  ;;  %v1222_v52 = vpop.f32.mrf.mxu1  ;;  %1661 = vmatpush.msra.mxu0 %v917_v33  ;;  %v913_v33 = vld [vmem:[#allocation8 + $0x150] sm:$0xff] }
 0x1c4   :  { %v1158_v41 = vadd.f32 %v1157_v22, %v3552_v3  ;;  %v1041_v22 = vld [vmem:[#allocation8 + $0x550] sm:$0xff] }
 0x1c5   :  { %v1284_v14 = vpop.f32.mrf.mxu2  ;;  %1792 = vmatpush.msra.mxu2 %v1041_v22  ;;  %1662 = vmatpush.msra.mxu0 %v913_v33  ;;  %v909_v33 = vld [vmem:[#allocation8 + $0x130] sm:$0xff] }
 0x1c6   :  { %v1285_v56 = vadd.f32 %v1284_v14, %v1220_v59  ;;  %1416 = vmatmul.f32.gmra.mxu0 %v3266_v62  ;;  %1481 = vmatmul.f32.gmra.mxu1 %v3271_v49  ;;  %v1223_v14 = vadd.f32 %v1222_v52, %v1158_v41  ;;  %v977_v52 = vld [vmem:[#allocation8 + $0x350] sm:$0xff] }
 0x1c7   :  { %1727 = vmatpush.msra.mxu1 %v977_v52  ;;  %1663 = vmatpush.msra.mxu0 %v909_v33  ;;  %v905_v33 = vld [vmem:[#allocation8 + $0x110] sm:$0xff] }
 0x1c9   :  { %1608 = vmatmul.f32.vlgmr.msrb.gmra.mxu3 %v3276_v16  ;;  %1664 = vmatpush.msra.mxu0 %v905_v33  ;;  %v901_v33 = vld [vmem:[#allocation8 + $0xf0] sm:$0xff] }
 0x1ca   :  { %1546 = vmatmul.f32.gmra.mxu2 %v4111_v1  ;;  %v1105_v1 = vld [vmem:[#allocation8 + $0x750] sm:$0xff] }
 0x1cb   :  { %v1160_v19 = vpop.f32.mrf.mxu0  ;;  %v1225_v46 = vpop.f32.mrf.mxu1  ;;  %1857 = vmatpush.msra.mxu3 %v1105_v1  ;;  %v4115_v1 = vld [vmem:[#allocation33_spill] sm:$0xff]  ;;  %1665 = vmatpush.msra.mxu0 %v901_v33 }
 0x1cc   :  { %v1349_v17 = vpop.f32.mrf.mxu3  ;;  %v1161_v40 = vadd.f32 %v1160_v19, %v3552_v3  ;;  %v1037_v19 = vld [vmem:[#allocation8 + $0x530] sm:$0xff] }
 0x1cd   :  { %v3566_v59 = vadd.f32 %v1349_v17, %v1285_v56  ;;  %v1287_v49 = vpop.f32.mrf.mxu2  ;;  %1793 = vmatpush.msra.mxu2 %v1037_v19  ;;  %v897_v33 = vld [vmem:[#allocation8 + $0xd0] sm:$0xff] }
 0x1ce   :  { %v1288_v62 = vadd.f32 %v1287_v49, %v1223_v14  ;;  %1419 = vmatmul.f32.gmra.mxu0 %v3284_v23  ;;  %1484 = vmatmul.f32.gmra.mxu1 %v3289_v12  ;;  %v1226_v49 = vadd.f32 %v1225_v46, %v1161_v40  ;;  %v973_v46 = vld [vmem:[#allocation8 + $0x330] sm:$0xff] }
 0x1cf   :  { %4112 = vst [vmem:[#allocation43_spill] sm:$0xff] %v3566_v59  ;;  %1728 = vmatpush.msra.mxu1 %v973_v46  ;;  %1666 = vmatpush.msra.mxu0 %v897_v33  ;;  %v893_v33 = vld [vmem:[#allocation8 + $0xb0] sm:$0xff] }
 0x1d1   :  { %1611 = vmatmul.f32.gmra.mxu3 %v3294_v50  ;;  %1667 = vmatpush.msra.mxu0 %v893_v33  ;;  %v889_v33 = vld [vmem:[#allocation8 + $0x90] sm:$0xff] }
 0x1d2   :  { %1549 = vmatmul.f32.gmra.mxu2 %v4113_v34  ;;  %v1101_v34 = vld [vmem:[#allocation8 + $0x730] sm:$0xff] }
 0x1d3   :  { %v1163_v56 = vpop.f32.mrf.mxu0  ;;  %v1228_v41 = vpop.f32.mrf.mxu1  ;;  %1858 = vmatpush.msra.mxu3 %v1101_v34  ;;  %v4117_v34 = vld [vmem:[#allocation34_spill] sm:$0xff]  ;;  %1668 = vmatpush.msra.mxu0 %v889_v33  ;;  %v885_v33 = vld [vmem:[#allocation8 + $0x70] sm:$0xff] }
 0x1d4   :  { %v1352_v8 = vpop.f32.mrf.mxu3  ;;  %v1164_v22 = vadd.f32 %v1163_v56, %v3552_v3  ;;  %v1033_v56 = vld [vmem:[#allocation8 + $0x510] sm:$0xff] }
 0x1d5   :  { %v3573_v14 = vadd.f32 %v1352_v8, %v1288_v62  ;;  %v1290_v17 = vpop.f32.mrf.mxu2  ;;  %1794 = vmatpush.msra.mxu2 %v1033_v56  ;;  %1669 = vmatpush.msra.mxu0 %v885_v33  ;;  %v881_v33 = vld [vmem:[#allocation8 + $0x50] sm:$0xff] }
 0x1d6   :  { %v1291_v59 = vadd.f32 %v1290_v17, %v1226_v49  ;;  %1422 = vmatmul.f32.gmra.mxu0 %v3302_v18  ;;  %1487 = vmatmul.f32.gmra.mxu1 %v3307_v26  ;;  %v1229_v52 = vadd.f32 %v1228_v41, %v1164_v22  ;;  %v969_v41 = vld [vmem:[#allocation8 + $0x310] sm:$0xff] }
 0x1d7   :  { %4114 = vst [vmem:[#allocation44_spill] sm:$0xff] %v3573_v14  ;;  %1729 = vmatpush.msra.mxu1 %v969_v41  ;;  %1670 = vmatpush.msra.mxu0 %v881_v33  ;;  %v877_v33 = vld [vmem:[#allocation8 + $0x30] sm:$0xff] }
 0x1d9   :  { %1614 = vmatmul.f32.gmra.mxu3 %v3312_v42  ;;  %1671 = vmatpush.msra.mxu0 %v877_v33  ;;  %v1001_v33 = vld [vmem:[#allocation8 + $0x410] sm:$0xff] }
 0x1da   :  { %1552 = vmatmul.f32.gmra.mxu2 %v4115_v1  ;;  %v1097_v1 = vld [vmem:[#allocation8 + $0x710] sm:$0xff] }
 0x1db   :  { %v1166_v62 = vpop.f32.mrf.mxu0  ;;  %v1231_v40 = vpop.f32.mrf.mxu1  ;;  %1859 = vmatpush.msra.mxu3 %v1097_v1  ;;  %v4119_v1 = vld [vmem:[#allocation35_spill] sm:$0xff] }
 0x1dc   :  { %v1355_v49 = vpop.f32.mrf.mxu3  ;;  %v1167_v19 = vadd.f32 %v1166_v62, %v3552_v3  ;;  %v1029_v62 = vld [vmem:[#allocation8 + $0x4f0] sm:$0xff] }
 0x1dd   :  { %v3580_v8 = vadd.f32 %v1355_v49, %v1291_v59  ;;  %v1293_v17 = vpop.f32.mrf.mxu2  ;;  %1795 = vmatpush.msra.mxu2 %v1029_v62 }
 0x1de   :  { %v1294_v14 = vadd.f32 %v1293_v17, %v1229_v52  ;;  %1425 = vmatmul.f32.gmra.mxu0 %v3320_v37  ;;  %1490 = vmatmul.f32.gmra.mxu1 %v3325_v48  ;;  %v1232_v46 = vadd.f32 %v1231_v40, %v1167_v19  ;;  %v965_v40 = vld [vmem:[#allocation8 + $0x2f0] sm:$0xff] }
 0x1df   :  { %4116 = vst [vmem:[#allocation45_spill] sm:$0xff] %v3580_v8  ;;  %1730 = vmatpush.msra.mxu1 %v965_v40 }
 0x1e1   :  { %1617 = vmatmul.f32.gmra.mxu3 %v3330_v30 }
 0x1e2   :  { %1555 = vmatmul.f32.gmra.mxu2 %v4117_v34  ;;  %v1093_v34 = vld [vmem:[#allocation8 + $0x6f0] sm:$0xff] }
 0x1e3   :  { %v1169_v59 = vpop.f32.mrf.mxu0  ;;  %v1234_v22 = vpop.f32.mrf.mxu1  ;;  %1860 = vmatpush.msra.mxu3 %v1093_v34  ;;  %v4121_v34 = vld [vmem:[#allocation36_spill] sm:$0xff] }
 0x1e4   :  { %v1358_v52 = vpop.f32.mrf.mxu3  ;;  %v1170_v56 = vadd.f32 %v1169_v59, %v3552_v3  ;;  %v1025_v59 = vld [vmem:[#allocation8 + $0x4d0] sm:$0xff] }
 0x1e5   :  { %v3587_v49 = vadd.f32 %v1358_v52, %v1294_v14  ;;  %v1296_v17 = vpop.f32.mrf.mxu2  ;;  %1796 = vmatpush.msra.mxu2 %v1025_v59 }
 0x1e6   :  { %v1297_v8 = vadd.f32 %v1296_v17, %v1232_v46  ;;  %1428 = vmatmul.f32.gmra.mxu0 %v3338_v55  ;;  %1493 = vmatmul.f32.gmra.mxu1 %v3343_v6  ;;  %v1235_v41 = vadd.f32 %v1234_v22, %v1170_v56  ;;  %v961_v22 = vld [vmem:[#allocation8 + $0x2d0] sm:$0xff] }
 0x1e7   :  { %4118 = vst [vmem:[#allocation46_spill] sm:$0xff] %v3587_v49  ;;  %1731 = vmatpush.msra.mxu1 %v961_v22 }
 0x1e9   :  { %1620 = vmatmul.f32.gmra.mxu3 %v3348_v28 }
 0x1ea   :  { %1558 = vmatmul.f32.gmra.mxu2 %v4119_v1  ;;  %v1089_v1 = vld [vmem:[#allocation8 + $0x6d0] sm:$0xff] }
 0x1eb   :  { %v1172_v14 = vpop.f32.mrf.mxu0  ;;  %v1237_v19 = vpop.f32.mrf.mxu1  ;;  %1861 = vmatpush.msra.mxu3 %v1089_v1  ;;  %v957_v1 = vld [vmem:[#allocation8 + $0x2b0] sm:$0xff] }
 0x1ec   :  { %v1361_v46 = vpop.f32.mrf.mxu3  ;;  %v1173_v62 = vadd.f32 %v1172_v14, %v3552_v3  ;;  %v1021_v14 = vld [vmem:[#allocation8 + $0x4b0] sm:$0xff]  ;;  %1732 = vmatpush.msra.mxu1 %v957_v1 }
 0x1ed   :  { %v3594_v52 = vadd.f32 %v1361_v46, %v1297_v8  ;;  %v1299_v17 = vpop.f32.mrf.mxu2  ;;  %1797 = vmatpush.msra.mxu2 %v1021_v14 }
 0x1ee   :  { %v1300_v49 = vadd.f32 %v1299_v17, %v1235_v41  ;;  %1431 = vmatmul.f32.gmra.mxu0 %v3356_v15  ;;  %1496 = vmatmul.f32.gmra.mxu1 %v3361_v21  ;;  %v1238_v40 = vadd.f32 %v1237_v19, %v1173_v62 }
 0x1ef   :  { %4120 = vst [vmem:[#allocation47_spill] sm:$0xff] %v3594_v52 }
 0x1f1   :  { %1623 = vmatmul.f32.gmra.mxu3 %v3366_v39 }
 0x1f2   :  { %1561 = vmatmul.f32.gmra.mxu2 %v4121_v34  ;;  %v1085_v34 = vld [vmem:[#allocation8 + $0x6b0] sm:$0xff] }
 0x1f3   :  { %v1175_v8 = vpop.f32.mrf.mxu0  ;;  %v1240_v56 = vpop.f32.mrf.mxu1  ;;  %1862 = vmatpush.msra.mxu3 %v1085_v34  ;;  %v953_v34 = vld [vmem:[#allocation8 + $0x290] sm:$0xff] }
 0x1f4   :  { %v1364_v41 = vpop.f32.mrf.mxu3  ;;  %v1176_v59 = vadd.f32 %v1175_v8, %v3552_v3  ;;  %v1017_v8 = vld [vmem:[#allocation8 + $0x490] sm:$0xff]  ;;  %1733 = vmatpush.msra.mxu1 %v953_v34 }
 0x1f5   :  { %v3601_v46 = vadd.f32 %v1364_v41, %v1300_v49  ;;  %v1302_v17 = vpop.f32.mrf.mxu2  ;;  %1798 = vmatpush.msra.mxu2 %v1017_v8 }
 0x1f6   :  { %v1303_v52 = vadd.f32 %v1302_v17, %v1238_v40  ;;  %1434 = vmatmul.f32.gmra.mxu0 %v3376_v44  ;;  %1499 = vmatmul.f32.gmra.mxu1 %v3379_v36  ;;  %v1241_v62 = vadd.f32 %v1240_v56, %v1176_v59 }
 0x1f7   :  { %4122 = vst [vmem:[#allocation48_spill] sm:$0xff] %v3601_v46  ;;  %v1081_v46 = vld [vmem:[#allocation8 + $0x690] sm:$0xff] }
 0x1f8   :  { %1863 = vmatpush.msra.mxu3 %v1081_v46  ;;  %v949_v46 = vld [vmem:[#allocation8 + $0x270] sm:$0xff] }
 0x1f9   :  { %1626 = vmatmul.f32.gmra.mxu3 %v3387_v60  ;;  %1734 = vmatpush.msra.mxu1 %v949_v46 }
 0x1fa   :  { %1564 = vmatmul.f32.gmra.mxu2 %v3390_v25 }
 0x1fb   :  { %v1178_v49 = vpop.f32.mrf.mxu0  ;;  %v1243_v19 = vpop.f32.mrf.mxu1 }
 0x1fc   :  { %v1367_v22 = vpop.f32.mrf.mxu3  ;;  %v1179_v14 = vadd.f32 %v1178_v49, %v3552_v3  ;;  %v1013_v49 = vld [vmem:[#allocation8 + $0x470] sm:$0xff] }
 0x1fd   :  { %v3608_v40 = vadd.f32 %v1367_v22, %v1303_v52  ;;  %v1305_v41 = vpop.f32.mrf.mxu2  ;;  %1799 = vmatpush.msra.mxu2 %v1013_v49 }
 0x1fe   :  { %v1306_v17 = vadd.f32 %v1305_v41, %v1241_v62  ;;  %1437 = vmatmul.f32.gmra.mxu0 %v3394_v20  ;;  %1502 = vmatmul.f32.gmra.mxu1 %v3399_v27  ;;  %v1244_v59 = vadd.f32 %v1243_v19, %v1179_v14 }
 0x1ff   :  { %4123 = vst [vmem:[#allocation49_spill] sm:$0xff] %v3608_v40  ;;  %v1077_v40 = vld [vmem:[#allocation8 + $0x670] sm:$0xff] }
 0x200   :  { %1864 = vmatpush.msra.mxu3 %v1077_v40  ;;  %v945_v40 = vld [vmem:[#allocation8 + $0x250] sm:$0xff] }
 0x201   :  { %1629 = vmatmul.f32.gmra.mxu3 %v3406_v38  ;;  %1735 = vmatpush.msra.mxu1 %v945_v40 }
 0x202   :  { %1567 = vmatmul.f32.gmra.mxu2 %v3410_v13 }
 0x203   :  { %v1181_v52 = vpop.f32.mrf.mxu0  ;;  %v1246_v56 = vpop.f32.mrf.mxu1 }
 0x204   :  { %v1370_v1 = vpop.f32.mrf.mxu3  ;;  %v1182_v8 = vadd.f32 %v1181_v52, %v3552_v3  ;;  %v1009_v52 = vld [vmem:[#allocation8 + $0x450] sm:$0xff] }
 0x205   :  { %v3615_v62 = vadd.f32 %v1370_v1, %v1306_v17  ;;  %v1308_v22 = vpop.f32.mrf.mxu2  ;;  %1800 = vmatpush.msra.mxu2 %v1009_v52 }
 0x206   :  { %v1309_v41 = vadd.f32 %v1308_v22, %v1244_v59  ;;  %1440 = vmatmul.f32.gmra.mxu0 %v3417_v11  ;;  %1505 = vmatmul.f32.gmra.mxu1 %v3419_v4  ;;  %v1247_v14 = vadd.f32 %v1246_v56, %v1182_v8 }
 0x207   :  { %4124 = vst [vmem:[#allocation50_spill] sm:$0xff] %v3615_v62  ;;  %v1073_v62 = vld [vmem:[#allocation8 + $0x650] sm:$0xff] }
 0x208   :  { %1865 = vmatpush.msra.mxu3 %v1073_v62  ;;  %v941_v62 = vld [vmem:[#allocation8 + $0x230] sm:$0xff] }
 0x209   :  { %1632 = vmatmul.f32.gmra.mxu3 %v3427_v2  ;;  %1736 = vmatpush.msra.mxu1 %v941_v62 }
 0x20a   :  { %1570 = vmatmul.f32.gmra.mxu2 %v3430_v51 }
 0x20b   :  { %v1184_v19 = vpop.f32.mrf.mxu0  ;;  %v1249_v17 = vpop.f32.mrf.mxu1 }
 0x20c   :  { %v1373_v34 = vpop.f32.mrf.mxu3  ;;  %v1185_v49 = vadd.f32 %v1184_v19, %v3552_v3  ;;  %v1005_v19 = vld [vmem:[#allocation8 + $0x430] sm:$0xff] }
 0x20d   :  { %v3622_v59 = vadd.f32 %v1373_v34, %v1309_v41  ;;  %v1311_v1 = vpop.f32.mrf.mxu2  ;;  %1801 = vmatpush.msra.mxu2 %v1005_v19 }
 0x20e   :  { %v1312_v22 = vadd.f32 %v1311_v1, %v1247_v14  ;;  %1443 = vmatmul.f32.gmra.mxu0 %v3434_v43  ;;  %1508 = vmatmul.f32.gmra.mxu1 %v3439_v24  ;;  %v1250_v8 = vadd.f32 %v1249_v17, %v1185_v49 }
 0x20f   :  { %4125 = vst [vmem:[#allocation51_spill] sm:$0xff] %v3622_v59  ;;  %v1069_v59 = vld [vmem:[#allocation8 + $0x630] sm:$0xff]  ;;  %1802 = vmatpush.msra.mxu2 %v1001_v33 }
 0x210   :  { %1866 = vmatpush.msra.mxu3 %v1069_v59  ;;  %v4128_v59 = vld [vmem:[#allocation39_spill] sm:$0xff]  ;;  %v4132_v33 = vld [vmem:[#allocation20_spill] sm:$0xff] }
 0x211   :  { %1635 = vmatmul.f32.gmra.mxu3 %v3446_v63 }
 0x212   :  { %1573 = vmatmul.f32.gmra.mxu2 %v3450_v5 }
 0x213   :  { %v1187_v56 = vpop.f32.mrf.mxu0  ;;  %v1252_v41 = vpop.f32.mrf.mxu1 }
 0x214   :  { %v1376_v46 = vpop.f32.mrf.mxu3  ;;  %v1188_v52 = vadd.f32 %v1187_v56, %v3552_v3  ;;  %v937_v56 = vld [vmem:[#allocation8 + $0x210] sm:$0xff] }
 0x215   :  { %v3629_v14 = vadd.f32 %v1376_v46, %v1312_v22  ;;  %v1314_v34 = vpop.f32.mrf.mxu2  ;;  %1737 = vmatpush.msra.mxu1 %v937_v56 }
 0x216   :  { %v1315_v1 = vadd.f32 %v1314_v34, %v1250_v8  ;;  %1446 = vmatmul.f32.gmra.mxu0 %v3457_v57  ;;  %1511 = vmatmul.f32.gmra.mxu1 %v3459_v45  ;;  %v1253_v49 = vadd.f32 %v1252_v41, %v1188_v52  ;;  %v873_v34 = vld [vmem:[#allocation8 + $0x10] sm:$0xff] }
 0x217   :  { %4126 = vst [vmem:[#allocation52_spill] sm:$0xff] %v3629_v14  ;;  %1672 = vmatpush.msra.mxu0 %v873_v34  ;;  %v1065_v41 = vld [vmem:[#allocation8 + $0x610] sm:$0xff] }
 0x218   :  { %v4129_v52 = vld [vmem:[#allocation40_spill] sm:$0xff]  ;;  %1867 = vmatpush.msra.mxu3 %v1065_v41  ;;  %v4131_v34 = vld [vmem:[#allocation41_spill] sm:$0xff] }
 0x219   :  { %1638 = vmatmul.f32.gmra.mxu3 %v3467_v7  ;;  %v1126_v41 = vld [vmem:[#allocation8 + $0x7f8] sm:$0xff] }
 0x21a   :  { %1576 = vmatmul.f32.gmra.mxu2 %v3470_v0  ;;  %2112 = vmatpush.msrb.mxu3 %v1126_v41 }
 0x21b   :  { %v1190_v17 = vpop.f32.mrf.mxu0  ;;  %v1255_v22 = vpop.f32.mrf.mxu1 }
 0x21c   :  { %v1379_v40 = vpop.f32.mrf.mxu3  ;;  %v1191_v14 = vadd.f32 %v1190_v17, %v3552_v3  ;;  %v1062_v17 = vld [vmem:[#allocation8 + $0x5f8] sm:$0xff] }
 0x21d   :  { %v3636_v8 = vadd.f32 %v1379_v40, %v1315_v1  ;;  %v1317_v46 = vpop.f32.mrf.mxu2  ;;  %2047 = vmatpush.msrb.mxu2 %v1062_v17 }
 0x21e   :  { %v1318_v19 = vadd.f32 %v1317_v46, %v1253_v49  ;;  %1449 = vmatmul.f32.gmra.mxu0 %v3474_v35  ;;  %1514 = vmatmul.f32.gmra.mxu1 %v3479_v61  ;;  %v1256_v40 = vadd.f32 %v1255_v22, %v1191_v14  ;;  %v998_v14 = vld [vmem:[#allocation8 + $0x3f8] sm:$0xff] }
 0x21f   :  { %4127 = vst [vmem:[#allocation53_spill] sm:$0xff] %v3636_v8  ;;  %1982 = vmatpush.msrb.mxu1 %v998_v14 }
 0x221   :  { %1641 = vmatmul.f32.gmra.mxu3 %v4128_v59  ;;  %v4133_v59 = vld [vmem:[#allocation19_spill] sm:$0xff] }
 0x222   :  { %1579 = vmatmul.f32.gmra.mxu2 %v4129_v52  ;;  %v934_v52 = vld [vmem:[#allocation8 + $0x1f8] sm:$0xff] }
 0x223   :  { %v1193_v1 = vpop.f32.mrf.mxu0  ;;  %v1258_v62 = vpop.f32.mrf.mxu1  ;;  %1917 = vmatpush.msrb.mxu0 %v934_v52  ;;  %v930_v52 = vld [vmem:[#allocation8 + $0x1d8] sm:$0xff] }
 0x224   :  { %v1382_v49 = vpop.f32.mrf.mxu3  ;;  %v1194_v56 = vadd.f32 %v1193_v1, %v3552_v3  ;;  %v1058_v1 = vld [vmem:[#allocation8 + $0x5d8] sm:$0xff] }
 0x225   :  { %v3643_v46 = vadd.f32 %v1382_v49, %v1318_v19  ;;  %v1320_v8 = vpop.f32.mrf.mxu2  ;;  %2048 = vmatpush.msrb.mxu2 %v1058_v1  ;;  %1918 = vmatpush.msrb.mxu0 %v930_v52  ;;  %v926_v52 = vld [vmem:[#allocation8 + $0x1b8] sm:$0xff] }
 0x226   :  { %v1321_v61 = vadd.f32 %v1320_v8, %v1256_v40  ;;  %1452 = vmatmul.f32.gmra.mxu0 %v3497_v53  ;;  %1517 = vmatmul.f32.gmra.mxu1 %v4131_v34  ;;  %v1259_v8 = vadd.f32 %v1258_v62, %v1194_v56  ;;  %v994_v62 = vld [vmem:[#allocation8 + $0x3d8] sm:$0xff] }
 0x227   :  { %4130 = vst [vmem:[#allocation54_spill] sm:$0xff] %v3643_v46  ;;  %1983 = vmatpush.msrb.mxu1 %v994_v62  ;;  %1919 = vmatpush.msrb.mxu0 %v926_v52 }
 0x229   :  { %1644 = vmatmul.f32.gmra.mxu3 %v4132_v33 }
 0x22a   :  { %1582 = vmatmul.f32.gmra.mxu2 %v4133_v59  ;;  %v1122_v59 = vld [vmem:[#allocation8 + $0x7d8] sm:$0xff] }
 0x22b   :  { %v1196_v22 = vpop.f32.mrf.mxu0  ;;  %v1261_v19 = vpop.f32.mrf.mxu1  ;;  %2113 = vmatpush.msrb.mxu3 %v1122_v59  ;;  %v4136_v59 = vld [vmem:[#allocation22_spill] sm:$0xff] }
 0x22c   :  { %v1385_v40 = vpop.f32.mrf.mxu3  ;;  %v1197_v17 = vadd.f32 %v1196_v22, %v3552_v3  ;;  %v1054_v22 = vld [vmem:[#allocation8 + $0x5b8] sm:$0xff] }
 0x22d   :  { %v3650_v49 = vadd.f32 %v1385_v40, %v1321_v61  ;;  %v1323_v46 = vpop.f32.mrf.mxu2  ;;  %2049 = vmatpush.msrb.mxu2 %v1054_v22  ;;  %v4139_v22 = vld [vmem:[#allocation26_spill] sm:$0xff] }
 0x22e   :  { %v1324_v34 = vadd.f32 %v1323_v46, %v1259_v8  ;;  %1455 = vmatmul.f32.gmra.mxu0 %v3514_v10  ;;  %1520 = vmatmul.f32.gmra.mxu1 %v3519_v58  ;;  %v1262_v46 = vadd.f32 %v1261_v19, %v1197_v17  ;;  %v990_v19 = vld [vmem:[#allocation8 + $0x3b8] sm:$0xff] }
 0x22f   :  { %4134 = vst [vmem:[#allocation20_spill] sm:$0xff] %v3650_v49  ;;  %v1118_v49 = vld [vmem:[#allocation8 + $0x7b8] sm:$0xff]  ;;  %1984 = vmatpush.msrb.mxu1 %v990_v19 }
 0x230   :  { %2114 = vmatpush.msrb.mxu3 %v1118_v49  ;;  %v922_v49 = vld [vmem:[#allocation8 + $0x198] sm:$0xff] }
 0x231   :  { %1647 = vmatmul.f32.gmra.mxu3 %v3526_v47  ;;  %1920 = vmatpush.msrb.mxu0 %v922_v49  ;;  %v986_v19 = vld [vmem:[#allocation8 + $0x398] sm:$0xff] }
 0x232   :  { %1585 = vmatmul.f32.gmra.mxu2 %v3530_v31  ;;  %1985 = vmatpush.msrb.mxu1 %v986_v19  ;;  %v918_v49 = vld [vmem:[#allocation8 + $0x178] sm:$0xff] }
 0x233   :  { %v1199_v61 = vpop.f32.mrf.mxu0  ;;  %v1264_v56 = vpop.f32.mrf.mxu1  ;;  %1921 = vmatpush.msrb.mxu0 %v918_v49  ;;  %v914_v49 = vld [vmem:[#allocation8 + $0x158] sm:$0xff] }
 0x234   :  { %v1388_v41 = vpop.f32.mrf.mxu3  ;;  %v1200_v1 = vadd.f32 %v1199_v61, %v3552_v3 }
 0x235   :  { %v3657_v14 = vadd.f32 %v1388_v41, %v1324_v34  ;;  %v1326_v8 = vpop.f32.mrf.mxu2  ;;  %v4137_v41 = vld [vmem:[#allocation27_spill] sm:$0xff]  ;;  %1922 = vmatpush.msrb.mxu0 %v914_v49  ;;  %v910_v49 = vld [vmem:[#allocation8 + $0x138] sm:$0xff] }
 0x236   :  { %v1327_v40 = vadd.f32 %v1326_v8, %v1262_v46  ;;  %1458 = vmatmul.f32.gmra.mxu0 %v3535_v9  ;;  %1523 = vmatmul.f32.gmra.mxu1 %v3537_v54  ;;  %v1265_v62 = vadd.f32 %v1264_v56, %v1200_v1  ;;  %v3665_v8 = vperm.slane %v4137_v41, 1  ;;  %v1114_v56 = vld [vmem:[#allocation8 + $0x798] sm:$0xff]  ;;  %v4141_v1 = vld [vmem:[#allocation28_spill] sm:$0xff] }
 0x237   :  { %4135 = vst [vmem:[#allocation55_spill] sm:$0xff] %v3657_v14  ;;  %2115 = vmatpush.msrb.mxu3 %v1114_v56  ;;  %v4145_v56 = vld [vmem:[#allocation31_spill] sm:$0xff]  ;;  %1923 = vmatpush.msrb.mxu0 %v910_v49  ;;  %v906_v49 = vld [vmem:[#allocation8 + $0x118] sm:$0xff] }
 0x239   :  { %1650 = vmatmul.f32.gmra.mxu3 %v3542_v32  ;;  %v4140_v32 = vld [vmem:[#allocation42_spill] sm:$0xff]  ;;  %1924 = vmatpush.msrb.mxu0 %v906_v49 }
 0x23a   :  { %1588 = vmatmul.f32.gmra.mxu2 %v4136_v59  ;;  %v1050_v59 = vld [vmem:[#allocation8 + $0x598] sm:$0xff] }
 0x23b   :  { %v1414_v34 = vpop.f32.mrf.mxu0  ;;  %v1479_v17 = vpop.f32.mrf.mxu1  ;;  %2050 = vmatpush.msrb.mxu2 %v1050_v59  ;;  %v4144_v59 = vld [vmem:[#allocation30_spill] sm:$0xff] }
 0x23c   :  { %v1391_v46 = vpop.f32.mrf.mxu3  ;;  %v1415_v52 = vadd.f32 %v1414_v34, %v3665_v8  ;;  %v4143_v34 = vld [vmem:[#allocation29_spill] sm:$0xff] }
 0x23d   :  { %v3667_v14 = vadd.f32 %v1391_v46, %v1327_v40  ;;  %v1329_v3 = vpop.f32.mrf.mxu2  ;;  %v902_v49 = vld [vmem:[#allocation8 + $0xf8] sm:$0xff] }
 0x23e   :  { %v1330_v61 = vadd.f32 %v1329_v3, %v1265_v62  ;;  %1673 = vmatmul.f32.vlgmr.msra.gmra.mxu0 %v3246_v29  ;;  %1738 = vmatmul.f32.vlgmr.msra.gmra.mxu1 %v4139_v22  ;;  %v1480_v62 = vadd.f32 %v1479_v17, %v1415_v52  ;;  %v982_v17 = vld [vmem:[#allocation8 + $0x378] sm:$0xff] }
 0x23f   :  { %4138 = vst [vmem:[#allocation27_spill] sm:$0xff] %v3667_v14  ;;  %1986 = vmatpush.msrb.mxu1 %v982_v17  ;;  %1925 = vmatpush.msrb.mxu0 %v902_v49  ;;  %v898_v49 = vld [vmem:[#allocation8 + $0xd8] sm:$0xff] }
 0x241   :  { %1653 = vmatmul.f32.gmra.mxu3 %v4140_v32  ;;  %v1046_v32 = vld [vmem:[#allocation8 + $0x578] sm:$0xff]  ;;  %1926 = vmatpush.msrb.mxu0 %v898_v49 }
 0x242   :  { %1803 = vmatmul.f32.vlgmr.msra.gmra.mxu2 %v4141_v1  ;;  %v1110_v1 = vld [vmem:[#allocation8 + $0x778] sm:$0xff] }
 0x243   :  { %v1417_v40 = vpop.f32.mrf.mxu0  ;;  %v1482_v46 = vpop.f32.mrf.mxu1  ;;  %2051 = vmatpush.msrb.mxu2 %v1046_v32  ;;  %2116 = vmatpush.msrb.mxu3 %v1110_v1  ;;  %v1042_v32 = vld [vmem:[#allocation8 + $0x558] sm:$0xff]  ;;  %v4147_v1 = vld [vmem:[#allocation32_spill] sm:$0xff] }
 0x244   :  { %v1394_v41 = vpop.f32.mrf.mxu3  ;;  %v1418_v29 = vadd.f32 %v1417_v40, %v3665_v8  ;;  %v894_v49 = vld [vmem:[#allocation8 + $0xb8] sm:$0xff] }
 0x245   :  { %v3674_v3 = vadd.f32 %v1394_v41, %v1330_v61  ;;  %v1544_v14 = vpop.f32.mrf.mxu2  ;;  %2052 = vmatpush.msrb.mxu2 %v1042_v32  ;;  %1927 = vmatpush.msrb.mxu0 %v894_v49  ;;  %v890_v49 = vld [vmem:[#allocation8 + $0x98] sm:$0xff] }
 0x246   :  { %v1545_v22 = vadd.f32 %v1544_v14, %v1480_v62  ;;  %1676 = vmatmul.f32.gmra.mxu0 %v4143_v34  ;;  %1741 = vmatmul.f32.gmra.mxu1 %v4144_v59  ;;  %v1483_v14 = vadd.f32 %v1482_v46, %v1418_v29  ;;  %v978_v29 = vld [vmem:[#allocation8 + $0x358] sm:$0xff] }
 0x247   :  { %4142 = vst [vmem:[#allocation56_spill] sm:$0xff] %v3674_v3  ;;  %1987 = vmatpush.msrb.mxu1 %v978_v29  ;;  %1928 = vmatpush.msrb.mxu0 %v890_v49  ;;  %v886_v49 = vld [vmem:[#allocation8 + $0x78] sm:$0xff] }
 0x249   :  { %1868 = vmatmul.f32.vlgmr.msra.gmra.mxu3 %v3276_v16  ;;  %1929 = vmatpush.msrb.mxu0 %v886_v49  ;;  %v882_v49 = vld [vmem:[#allocation8 + $0x58] sm:$0xff] }
 0x24a   :  { %1806 = vmatmul.f32.gmra.mxu2 %v4145_v56  ;;  %v1106_v56 = vld [vmem:[#allocation8 + $0x758] sm:$0xff] }
 0x24b   :  { %v1420_v61 = vpop.f32.mrf.mxu0  ;;  %v1485_v52 = vpop.f32.mrf.mxu1  ;;  %2117 = vmatpush.msrb.mxu3 %v1106_v56  ;;  %v4149_v56 = vld [vmem:[#allocation33_spill] sm:$0xff]  ;;  %1930 = vmatpush.msrb.mxu0 %v882_v49 }
 0x24c   :  { %v1609_v19 = vpop.f32.mrf.mxu3  ;;  %v1421_v40 = vadd.f32 %v1420_v61, %v3665_v8  ;;  %v1038_v61 = vld [vmem:[#allocation8 + $0x538] sm:$0xff] }
 0x24d   :  { %v3681_v62 = vadd.f32 %v1609_v19, %v1545_v22  ;;  %v1547_v41 = vpop.f32.mrf.mxu2  ;;  %2053 = vmatpush.msrb.mxu2 %v1038_v61  ;;  %v878_v49 = vld [vmem:[#allocation8 + $0x38] sm:$0xff] }
 0x24e   :  { %v1548_v3 = vadd.f32 %v1547_v41, %v1483_v14  ;;  %1679 = vmatmul.f32.gmra.mxu0 %v3284_v23  ;;  %1744 = vmatmul.f32.gmra.mxu1 %v3289_v12  ;;  %v1486_v17 = vadd.f32 %v1485_v52, %v1421_v40  ;;  %v974_v52 = vld [vmem:[#allocation8 + $0x338] sm:$0xff] }
 0x24f   :  { %4146 = vst [vmem:[#allocation29_spill] sm:$0xff] %v3681_v62  ;;  %1988 = vmatpush.msrb.mxu1 %v974_v52  ;;  %1931 = vmatpush.msrb.mxu0 %v878_v49  ;;  %v1002_v49 = vld [vmem:[#allocation8 + $0x418] sm:$0xff] }
 0x251   :  { %1871 = vmatmul.f32.gmra.mxu3 %v3294_v50 }
 0x252   :  { %1809 = vmatmul.f32.gmra.mxu2 %v4147_v1  ;;  %v1102_v1 = vld [vmem:[#allocation8 + $0x738] sm:$0xff] }
 0x253   :  { %v1423_v22 = vpop.f32.mrf.mxu0  ;;  %v1488_v46 = vpop.f32.mrf.mxu1  ;;  %2118 = vmatpush.msrb.mxu3 %v1102_v1  ;;  %v4151_v1 = vld [vmem:[#allocation34_spill] sm:$0xff] }
 0x254   :  { %v1612_v14 = vpop.f32.mrf.mxu3  ;;  %v1424_v32 = vadd.f32 %v1423_v22, %v3665_v8  ;;  %v1034_v22 = vld [vmem:[#allocation8 + $0x518] sm:$0xff] }
 0x255   :  { %v3688_v19 = vadd.f32 %v1612_v14, %v1548_v3  ;;  %v1550_v41 = vpop.f32.mrf.mxu2  ;;  %2054 = vmatpush.msrb.mxu2 %v1034_v22 }
 0x256   :  { %v1551_v62 = vadd.f32 %v1550_v41, %v1486_v17  ;;  %1682 = vmatmul.f32.gmra.mxu0 %v3302_v18  ;;  %1747 = vmatmul.f32.gmra.mxu1 %v3307_v26  ;;  %v1489_v29 = vadd.f32 %v1488_v46, %v1424_v32  ;;  %v970_v46 = vld [vmem:[#allocation8 + $0x318] sm:$0xff] }
 0x257   :  { %4148 = vst [vmem:[#allocation30_spill] sm:$0xff] %v3688_v19  ;;  %1989 = vmatpush.msrb.mxu1 %v970_v46 }
 0x259   :  { %1874 = vmatmul.f32.gmra.mxu3 %v3312_v42 }
 0x25a   :  { %1812 = vmatmul.f32.gmra.mxu2 %v4149_v56  ;;  %v1098_v56 = vld [vmem:[#allocation8 + $0x718] sm:$0xff] }
 0x25b   :  { %v1426_v3 = vpop.f32.mrf.mxu0  ;;  %v1491_v40 = vpop.f32.mrf.mxu1  ;;  %2119 = vmatpush.msrb.mxu3 %v1098_v56  ;;  %v4153_v56 = vld [vmem:[#allocation35_spill] sm:$0xff] }
 0x25c   :  { %v1615_v17 = vpop.f32.mrf.mxu3  ;;  %v1427_v61 = vadd.f32 %v1426_v3, %v3665_v8  ;;  %v1030_v3 = vld [vmem:[#allocation8 + $0x4f8] sm:$0xff] }
 0x25d   :  { %v3695_v14 = vadd.f32 %v1615_v17, %v1551_v62  ;;  %v1553_v41 = vpop.f32.mrf.mxu2  ;;  %2055 = vmatpush.msrb.mxu2 %v1030_v3 }
 0x25e   :  { %v1554_v19 = vadd.f32 %v1553_v41, %v1489_v29  ;;  %1685 = vmatmul.f32.gmra.mxu0 %v3320_v37  ;;  %1750 = vmatmul.f32.gmra.mxu1 %v3325_v48  ;;  %v1492_v52 = vadd.f32 %v1491_v40, %v1427_v61  ;;  %v966_v40 = vld [vmem:[#allocation8 + $0x2f8] sm:$0xff] }
 0x25f   :  { %4150 = vst [vmem:[#allocation57_spill] sm:$0xff] %v3695_v14  ;;  %1990 = vmatpush.msrb.mxu1 %v966_v40 }
 0x261   :  { %1877 = vmatmul.f32.gmra.mxu3 %v3330_v30 }
 0x262   :  { %1815 = vmatmul.f32.gmra.mxu2 %v4151_v1  ;;  %v1094_v1 = vld [vmem:[#allocation8 + $0x6f8] sm:$0xff] }
 0x263   :  { %v1429_v62 = vpop.f32.mrf.mxu0  ;;  %v1494_v32 = vpop.f32.mrf.mxu1  ;;  %2120 = vmatpush.msrb.mxu3 %v1094_v1  ;;  %v4155_v1 = vld [vmem:[#allocation36_spill] sm:$0xff] }
 0x264   :  { %v1618_v29 = vpop.f32.mrf.mxu3  ;;  %v1430_v22 = vadd.f32 %v1429_v62, %v3665_v8  ;;  %v1026_v62 = vld [vmem:[#allocation8 + $0x4d8] sm:$0xff] }
 0x265   :  { %v3702_v17 = vadd.f32 %v1618_v29, %v1554_v19  ;;  %v1556_v41 = vpop.f32.mrf.mxu2  ;;  %2056 = vmatpush.msrb.mxu2 %v1026_v62 }
 0x266   :  { %v1557_v14 = vadd.f32 %v1556_v41, %v1492_v52  ;;  %1688 = vmatmul.f32.gmra.mxu0 %v3338_v55  ;;  %1753 = vmatmul.f32.gmra.mxu1 %v3343_v6  ;;  %v1495_v46 = vadd.f32 %v1494_v32, %v1430_v22  ;;  %v962_v32 = vld [vmem:[#allocation8 + $0x2d8] sm:$0xff] }
 0x267   :  { %4152 = vst [vmem:[#allocation58_spill] sm:$0xff] %v3702_v17  ;;  %1991 = vmatpush.msrb.mxu1 %v962_v32 }
 0x269   :  { %1880 = vmatmul.f32.gmra.mxu3 %v3348_v28 }
 0x26a   :  { %1818 = vmatmul.f32.gmra.mxu2 %v4153_v56  ;;  %v1090_v56 = vld [vmem:[#allocation8 + $0x6d8] sm:$0xff] }
 0x26b   :  { %v1432_v19 = vpop.f32.mrf.mxu0  ;;  %v1497_v61 = vpop.f32.mrf.mxu1  ;;  %2121 = vmatpush.msrb.mxu3 %v1090_v56  ;;  %v958_v56 = vld [vmem:[#allocation8 + $0x2b8] sm:$0xff] }
 0x26c   :  { %v1621_v52 = vpop.f32.mrf.mxu3  ;;  %v1433_v3 = vadd.f32 %v1432_v19, %v3665_v8  ;;  %v1022_v19 = vld [vmem:[#allocation8 + $0x4b8] sm:$0xff]  ;;  %1992 = vmatpush.msrb.mxu1 %v958_v56 }
 0x26d   :  { %v3709_v29 = vadd.f32 %v1621_v52, %v1557_v14  ;;  %v1559_v41 = vpop.f32.mrf.mxu2  ;;  %2057 = vmatpush.msrb.mxu2 %v1022_v19 }
 0x26e   :  { %v1560_v17 = vadd.f32 %v1559_v41, %v1495_v46  ;;  %1691 = vmatmul.f32.gmra.mxu0 %v3356_v15  ;;  %1756 = vmatmul.f32.gmra.mxu1 %v3361_v21  ;;  %v1498_v40 = vadd.f32 %v1497_v61, %v1433_v3 }
 0x26f   :  { %4154 = vst [vmem:[#allocation59_spill] sm:$0xff] %v3709_v29 }
 0x271   :  { %1883 = vmatmul.f32.gmra.mxu3 %v3366_v39 }
 0x272   :  { %1821 = vmatmul.f32.gmra.mxu2 %v4155_v1  ;;  %v1086_v1 = vld [vmem:[#allocation8 + $0x6b8] sm:$0xff] }
 0x273   :  { %v1435_v14 = vpop.f32.mrf.mxu0  ;;  %v1500_v22 = vpop.f32.mrf.mxu1  ;;  %2122 = vmatpush.msrb.mxu3 %v1086_v1  ;;  %v954_v1 = vld [vmem:[#allocation8 + $0x298] sm:$0xff] }
 0x274   :  { %v1624_v46 = vpop.f32.mrf.mxu3  ;;  %v1436_v62 = vadd.f32 %v1435_v14, %v3665_v8  ;;  %v1018_v14 = vld [vmem:[#allocation8 + $0x498] sm:$0xff]  ;;  %1993 = vmatpush.msrb.mxu1 %v954_v1 }
 0x275   :  { %v3716_v52 = vadd.f32 %v1624_v46, %v1560_v17  ;;  %v1562_v41 = vpop.f32.mrf.mxu2  ;;  %2058 = vmatpush.msrb.mxu2 %v1018_v14 }
 0x276   :  { %v1563_v29 = vadd.f32 %v1562_v41, %v1498_v40  ;;  %1694 = vmatmul.f32.gmra.mxu0 %v3376_v44  ;;  %1759 = vmatmul.f32.gmra.mxu1 %v3379_v36  ;;  %v1501_v3 = vadd.f32 %v1500_v22, %v1436_v62 }
 0x277   :  { %4156 = vst [vmem:[#allocation60_spill] sm:$0xff] %v3716_v52  ;;  %v1082_v52 = vld [vmem:[#allocation8 + $0x698] sm:$0xff] }
 0x278   :  { %2123 = vmatpush.msrb.mxu3 %v1082_v52  ;;  %v950_v52 = vld [vmem:[#allocation8 + $0x278] sm:$0xff] }
 0x279   :  { %1886 = vmatmul.f32.gmra.mxu3 %v3387_v60  ;;  %1994 = vmatpush.msrb.mxu1 %v950_v52 }
 0x27a   :  { %1824 = vmatmul.f32.gmra.mxu2 %v3390_v25 }
 0x27b   :  { %v1438_v17 = vpop.f32.mrf.mxu0  ;;  %v1503_v61 = vpop.f32.mrf.mxu1 }
 0x27c   :  { %v1627_v32 = vpop.f32.mrf.mxu3  ;;  %v1439_v19 = vadd.f32 %v1438_v17, %v3665_v8  ;;  %v1014_v17 = vld [vmem:[#allocation8 + $0x478] sm:$0xff] }
 0x27d   :  { %v3723_v40 = vadd.f32 %v1627_v32, %v1563_v29  ;;  %v1565_v46 = vpop.f32.mrf.mxu2  ;;  %2059 = vmatpush.msrb.mxu2 %v1014_v17 }
 0x27e   :  { %v1566_v41 = vadd.f32 %v1565_v46, %v1501_v3  ;;  %1697 = vmatmul.f32.gmra.mxu0 %v3394_v20  ;;  %1762 = vmatmul.f32.gmra.mxu1 %v3399_v27  ;;  %v1504_v62 = vadd.f32 %v1503_v61, %v1439_v19 }
 0x27f   :  { %4157 = vst [vmem:[#allocation61_spill] sm:$0xff] %v3723_v40  ;;  %v1078_v40 = vld [vmem:[#allocation8 + $0x678] sm:$0xff] }
 0x280   :  { %2124 = vmatpush.msrb.mxu3 %v1078_v40  ;;  %v946_v40 = vld [vmem:[#allocation8 + $0x258] sm:$0xff] }
 0x281   :  { %1889 = vmatmul.f32.gmra.mxu3 %v3406_v38  ;;  %1995 = vmatpush.msrb.mxu1 %v946_v40 }
 0x282   :  { %1827 = vmatmul.f32.gmra.mxu2 %v3410_v13 }
 0x283   :  { %v1441_v29 = vpop.f32.mrf.mxu0  ;;  %v1506_v22 = vpop.f32.mrf.mxu1 }
 0x284   :  { %v1630_v56 = vpop.f32.mrf.mxu3  ;;  %v1442_v14 = vadd.f32 %v1441_v29, %v3665_v8  ;;  %v1010_v29 = vld [vmem:[#allocation8 + $0x458] sm:$0xff] }
 0x285   :  { %v3730_v3 = vadd.f32 %v1630_v56, %v1566_v41  ;;  %v1568_v32 = vpop.f32.mrf.mxu2  ;;  %2060 = vmatpush.msrb.mxu2 %v1010_v29 }
 0x286   :  { %v1569_v46 = vadd.f32 %v1568_v32, %v1504_v62  ;;  %1700 = vmatmul.f32.gmra.mxu0 %v3417_v11  ;;  %1765 = vmatmul.f32.gmra.mxu1 %v3419_v4  ;;  %v1507_v19 = vadd.f32 %v1506_v22, %v1442_v14 }
 0x287   :  { %4158 = vst [vmem:[#allocation62_spill] sm:$0xff] %v3730_v3  ;;  %v1074_v3 = vld [vmem:[#allocation8 + $0x658] sm:$0xff] }
 0x288   :  { %2125 = vmatpush.msrb.mxu3 %v1074_v3  ;;  %v942_v3 = vld [vmem:[#allocation8 + $0x238] sm:$0xff] }
 0x289   :  { %1892 = vmatmul.f32.gmra.mxu3 %v3427_v2  ;;  %1996 = vmatpush.msrb.mxu1 %v942_v3 }
 0x28a   :  { %1830 = vmatmul.f32.gmra.mxu2 %v3430_v51 }
 0x28b   :  { %v1444_v61 = vpop.f32.mrf.mxu0  ;;  %v1509_v41 = vpop.f32.mrf.mxu1 }
 0x28c   :  { %v1633_v1 = vpop.f32.mrf.mxu3  ;;  %v1445_v17 = vadd.f32 %v1444_v61, %v3665_v8  ;;  %v1006_v61 = vld [vmem:[#allocation8 + $0x438] sm:$0xff] }
 0x28d   :  { %v3737_v62 = vadd.f32 %v1633_v1, %v1569_v46  ;;  %v1571_v56 = vpop.f32.mrf.mxu2  ;;  %2061 = vmatpush.msrb.mxu2 %v1006_v61 }
 0x28e   :  { %v1572_v32 = vadd.f32 %v1571_v56, %v1507_v19  ;;  %1703 = vmatmul.f32.gmra.mxu0 %v3434_v43  ;;  %1768 = vmatmul.f32.gmra.mxu1 %v3439_v24  ;;  %v1510_v14 = vadd.f32 %v1509_v41, %v1445_v17 }
 0x28f   :  { %4159 = vst [vmem:[#allocation63_spill] sm:$0xff] %v3737_v62  ;;  %v1070_v62 = vld [vmem:[#allocation8 + $0x638] sm:$0xff]  ;;  %2062 = vmatpush.msrb.mxu2 %v1002_v49 }
 0x290   :  { %2126 = vmatpush.msrb.mxu3 %v1070_v62  ;;  %v4163_v62 = vld [vmem:[#allocation39_spill] sm:$0xff] }
 0x291   :  { %1895 = vmatmul.f32.gmra.mxu3 %v3446_v63 }
 0x292   :  { %1833 = vmatmul.f32.gmra.mxu2 %v3450_v5 }
 0x293   :  { %v1447_v22 = vpop.f32.mrf.mxu0  ;;  %v1512_v46 = vpop.f32.mrf.mxu1 }
 0x294   :  { %v1636_v52 = vpop.f32.mrf.mxu3  ;;  %v1448_v29 = vadd.f32 %v1447_v22, %v3665_v8  ;;  %v938_v22 = vld [vmem:[#allocation8 + $0x218] sm:$0xff] }
 0x295   :  { %v3744_v19 = vadd.f32 %v1636_v52, %v1572_v32  ;;  %v1574_v1 = vpop.f32.mrf.mxu2  ;;  %1997 = vmatpush.msrb.mxu1 %v938_v22  ;;  %v4167_v22 = vld [vmem:[#allocation19_spill] sm:$0xff] }
 0x296   :  { %v1575_v56 = vadd.f32 %v1574_v1, %v1510_v14  ;;  %1706 = vmatmul.f32.gmra.mxu0 %v3457_v57  ;;  %1771 = vmatmul.f32.gmra.mxu1 %v3459_v45  ;;  %v1513_v17 = vadd.f32 %v1512_v46, %v1448_v29  ;;  %v874_v1 = vld [vmem:[#allocation8 + $0x18] sm:$0xff]  ;;  %v4164_v29 = vld [vmem:[#allocation40_spill] sm:$0xff] }
 0x297   :  { %4160 = vst [vmem:[#allocation64_spill] sm:$0xff] %v3744_v19  ;;  %v4162_v19 = vld [vmem:[#allocation38_spill] sm:$0xff]  ;;  %1932 = vmatpush.msrb.mxu0 %v874_v1  ;;  %v4166_v1 = vld [vmem:[#allocation41_spill] sm:$0xff] }
 0x298   :  { %v1066_v46 = vld [vmem:[#allocation8 + $0x618] sm:$0xff] }
 0x299   :  { %1898 = vmatmul.f32.gmra.mxu3 %v3467_v7 }
 0x29a   :  { %1836 = vmatmul.f32.gmra.mxu2 %v3470_v0  ;;  %2127 = vmatpush.msrb.mxu3 %v1066_v46 }
 0x29b   :  { %v1450_v41 = vpop.f32.mrf.mxu0  ;;  %v1515_v32 = vpop.f32.mrf.mxu1 }
 0x29c   :  { %v1639_v40 = vpop.f32.mrf.mxu3  ;;  %v1451_v0 = vadd.f32 %v1450_v41, %v3665_v8 }
 0x29d   :  { %v3751_v14 = vadd.f32 %v1639_v40, %v1575_v56  ;;  %v1577_v52 = vpop.f32.mrf.mxu2 }
 0x29e   :  { %v1578_v61 = vadd.f32 %v1577_v52, %v1513_v17  ;;  %1709 = vmatmul.f32.gmra.mxu0 %v3474_v35  ;;  %1774 = vmatmul.f32.gmra.mxu1 %v4162_v19  ;;  %v1516_v40 = vadd.f32 %v1515_v32, %v1451_v0 }
 0x29f   :  { %4161 = vst [vmem:[#allocation65_spill] sm:$0xff] %v3751_v14 }
 0x2a1   :  { %1901 = vmatmul.f32.gmra.mxu3 %v4163_v62 }
 0x2a2   :  { %1839 = vmatmul.f32.gmra.mxu2 %v4164_v29 }
 0x2a3   :  { %v1453_v56 = vpop.f32.mrf.mxu0  ;;  %v1518_v3 = vpop.f32.mrf.mxu1 }
 0x2a4   :  { %v1642_v17 = vpop.f32.mrf.mxu3  ;;  %v1454_v41 = vadd.f32 %v1453_v56, %v3665_v8  ;;  %v2256_v56 = vld [vmem:[#allocation11 + $0x78] sm:$0xff] }
 0x2a5   :  { %v3758_v52 = vadd.f32 %v1642_v17, %v1578_v61  ;;  %v1580_v14 = vpop.f32.mrf.mxu2  ;;  %v2304_v17 = vld [vmem:[#allocation11 + $0x1f8] sm:$0xff]  ;;  %2309 = vmatpush.msra.mxu0 %v2256_v56  ;;  %v4170_v56 = vld [vmem:[#allocation24_spill] sm:$0xff] }
 0x2a6   :  { %v1581_v19 = vadd.f32 %v1580_v14, %v1516_v40  ;;  %1712 = vmatmul.f32.gmra.mxu0 %v3497_v53  ;;  %1777 = vmatmul.f32.gmra.mxu1 %v4166_v1  ;;  %v1519_v29 = vadd.f32 %v1518_v3, %v1454_v41  ;;  %v2288_v14 = vld [vmem:[#allocation11 + $0x178] sm:$0xff] }
 0x2a7   :  { %4165 = vst [vmem:[#allocation66_spill] sm:$0xff] %v3758_v52  ;;  %2439 = vmatpush.msra.mxu2 %v2288_v14  ;;  %v2272_v3 = vld [vmem:[#allocation11 + $0xf8] sm:$0xff]  ;;  %2504 = vmatpush.msra.mxu3 %v2304_v17 }
 0x2a8   :  { %2374 = vmatpush.msra.mxu1 %v2272_v3  ;;  %v4171_v17 = vld [vmem:[#allocation22_spill] sm:$0xff] }
 0x2a9   :  { %1904 = vmatmul.f32.gmra.mxu3 %v4132_v33 }
 0x2aa   :  { %1842 = vmatmul.f32.gmra.mxu2 %v4167_v22 }
 0x2ab   :  { %v1456_v49 = vpop.f32.mrf.mxu0  ;;  %v1521_v46 = vpop.f32.mrf.mxu1 }
 0x2ac   :  { %v1645_v62 = vpop.f32.mrf.mxu3  ;;  %v1457_v40 = vadd.f32 %v1456_v49, %v3665_v8  ;;  %v2287_v49 = vld [vmem:[#allocation11 + $0x170] sm:$0xff] }
 0x2ad   :  { %v3765_v0 = vadd.f32 %v1645_v62, %v1581_v19  ;;  %v1583_v32 = vpop.f32.mrf.mxu2  ;;  %2440 = vmatpush.msra.mxu2 %v2287_v49 }
 0x2ae   :  { %v1584_v61 = vadd.f32 %v1583_v32, %v1519_v29  ;;  %1715 = vmatmul.f32.gmra.mxu0 %v3514_v10  ;;  %1780 = vmatmul.f32.gmra.mxu1 %v3519_v58  ;;  %v1522_v29 = vadd.f32 %v1521_v46, %v1457_v40  ;;  %v2271_v46 = vld [vmem:[#allocation11 + $0xf0] sm:$0xff] }
 0x2af   :  { %4168 = vst [vmem:[#allocation41_spill] sm:$0xff] %v3765_v0  ;;  %2375 = vmatpush.msra.mxu1 %v2271_v46  ;;  %v4177_v46 = vld [vmem:[#allocation28_spill] sm:$0xff] }
 0x2b1   :  { %1907 = vmatmul.f32.gmra.mxu3 %v3526_v47  ;;  %v2303_v47 = vld [vmem:[#allocation11 + $0x1f0] sm:$0xff] }
 0x2b2   :  { %1845 = vmatmul.f32.gmra.mxu2 %v3530_v31  ;;  %v2255_v31 = vld [vmem:[#allocation11 + $0x70] sm:$0xff]  ;;  %2505 = vmatpush.msra.mxu3 %v2303_v47  ;;  %v4176_v47 = vld [vmem:[#allocation42_spill] sm:$0xff] }
 0x2b3   :  { %v1459_v19 = vpop.f32.mrf.mxu0  ;;  %v1524_v62 = vpop.f32.mrf.mxu1  ;;  %2310 = vmatpush.msra.mxu0 %v2255_v31  ;;  %v2286_v31 = vld [vmem:[#allocation11 + $0x168] sm:$0xff] }
 0x2b4   :  { %v1648_v41 = vpop.f32.mrf.mxu3  ;;  %v1460_v14 = vadd.f32 %v1459_v19, %v3665_v8  ;;  %2441 = vmatpush.msra.mxu2 %v2286_v31 }
 0x2b5   :  { %v3772_v32 = vadd.f32 %v1648_v41, %v1584_v61  ;;  %v1586_v0 = vpop.f32.mrf.mxu2 }
 0x2b6   :  { %v1587_v52 = vadd.f32 %v1586_v0, %v1522_v29  ;;  %1718 = vmatmul.f32.gmra.mxu0 %v3535_v9  ;;  %1783 = vmatmul.f32.gmra.mxu1 %v3537_v54  ;;  %v1525_v0 = vadd.f32 %v1524_v62, %v1460_v14  ;;  %v3779_v29 = vld [vmem:[#allocation10] sm:$0xf]  ;;  %v2254_v62 = vld [vmem:[#allocation11 + $0x68] sm:$0xff] }
 0x2b7   :  { %4169 = vst [vmem:[#allocation19_spill] sm:$0xff] %v3772_v32  ;;  %v3782_v41 = vperm.slane %v3779_v29, 2  ;;  %v4174_v32 = vld [vmem:[#allocation25_spill] sm:$0xff]  ;;  %v2302_v14 = vld [vmem:[#allocation11 + $0x1e8] sm:$0xff]  ;;  %2311 = vmatpush.msra.mxu0 %v2254_v62  ;;  %v2253_v62 = vld [vmem:[#allocation11 + $0x60] sm:$0xff] }
 0x2b8   :  { %4172 = vst [vmem:[#allocation67_spill] sm:$0xff] %v3779_v29  ;;  %v2270_v29 = vld [vmem:[#allocation11 + $0xe8] sm:$0xff]  ;;  %2506 = vmatpush.msra.mxu3 %v2302_v14  ;;  %v4178_v14 = vld [vmem:[#allocation31_spill] sm:$0xff] }
 0x2b9   :  { %1910 = vmatmul.f32.gmra.mxu3 %v4170_v56  ;;  %2376 = vmatpush.msra.mxu1 %v2270_v29 }
 0x2ba   :  { %1848 = vmatmul.f32.gmra.mxu2 %v4171_v17  ;;  %v4175_v17 = vld [vmem:[#allocation26_spill] sm:$0xff]  ;;  %2312 = vmatpush.msra.mxu0 %v2253_v62  ;;  %v4179_v62 = vld [vmem:[#allocation32_spill] sm:$0xff] }
 0x2bb   :  { %v1674_v61 = vpop.f32.mrf.mxu0  ;;  %v1739_v40 = vpop.f32.mrf.mxu1 }
 0x2bc   :  { %v1651_v3 = vpop.f32.mrf.mxu3  ;;  %v1675_v56 = vadd.f32 %v1674_v61, %v3782_v41  ;;  %v2285_v61 = vld [vmem:[#allocation11 + $0x160] sm:$0xff] }
 0x2bd   :  { %v3784_v8 = vadd.f32 %v1651_v3, %v1587_v52  ;;  %v1589_v19 = vpop.f32.mrf.mxu2  ;;  %2442 = vmatpush.msra.mxu2 %v2285_v61  ;;  %v2300_v61 = vld [vmem:[#allocation11 + $0x1d8] sm:$0xff] }
 0x2be   :  { %v1590_v49 = vadd.f32 %v1589_v19, %v1525_v0  ;;  %1933 = vmatmul.f32.vlgmr.msrb.gmra.mxu0 %v4174_v32  ;;  %1998 = vmatmul.f32.vlgmr.msrb.gmra.mxu1 %v4175_v17  ;;  %v1740_v0 = vadd.f32 %v1739_v40, %v1675_v56  ;;  %v2269_v56 = vld [vmem:[#allocation11 + $0xe0] sm:$0xff] }
 0x2bf   :  { %4173 = vst [vmem:[#allocation68_spill] sm:$0xff] %v3784_v8  ;;  %2377 = vmatpush.msra.mxu1 %v2269_v56 }
 0x2c1   :  { %1913 = vmatmul.f32.gmra.mxu3 %v4176_v47 }
 0x2c2   :  { %2063 = vmatmul.f32.vlgmr.msrb.gmra.mxu2 %v4177_v46  ;;  %v2301_v46 = vld [vmem:[#allocation11 + $0x1e0] sm:$0xff] }
 0x2c3   :  { %v1677_v52 = vpop.f32.mrf.mxu0  ;;  %v1742_v3 = vpop.f32.mrf.mxu1  ;;  %2507 = vmatpush.msra.mxu3 %v2301_v46 }
 0x2c4   :  { %v1654_v32 = vpop.f32.mrf.mxu3  ;;  %v1678_v31 = vadd.f32 %v1677_v52, %v3782_v41 }
 0x2c5   :  { %v3791_v19 = vadd.f32 %v1654_v32, %v1590_v49  ;;  %v1804_v17 = vpop.f32.mrf.mxu2  ;;  %2508 = vmatpush.msra.mxu3 %v2300_v61 }
 0x2c6   :  { %v1805_v8 = vadd.f32 %v1804_v17, %v1740_v0  ;;  %1936 = vmatmul.f32.gmra.mxu0 %v4143_v34  ;;  %2001 = vmatmul.f32.gmra.mxu1 %v4144_v59  ;;  %v1743_v49 = vadd.f32 %v1742_v3, %v1678_v31  ;;  %v2252_v17 = vld [vmem:[#allocation11 + $0x58] sm:$0xff] }
 0x2c7   :  { %2313 = vmatpush.msra.mxu0 %v2252_v17  ;;  %v2268_v3 = vld [vmem:[#allocation11 + $0xd8] sm:$0xff] }
 0x2c8   :  { %2378 = vmatpush.msra.mxu1 %v2268_v3  ;;  %v2250_v3 = vld [vmem:[#allocation11 + $0x48] sm:$0xff] }
 0x2c9   :  { %2128 = vmatmul.f32.vlgmr.msrb.gmra.mxu3 %v3276_v16  ;;  %v2284_v16 = vld [vmem:[#allocation11 + $0x158] sm:$0xff] }
 0x2ca   :  { %2066 = vmatmul.f32.gmra.mxu2 %v4178_v14 }
 0x2cb   :  { %v1680_v40 = vpop.f32.mrf.mxu0  ;;  %v1745_v29 = vpop.f32.mrf.mxu1  ;;  %2443 = vmatpush.msra.mxu2 %v2284_v16 }
 0x2cc   :  { %v1869_v34 = vpop.f32.mrf.mxu3  ;;  %v1681_v52 = vadd.f32 %v1680_v40, %v3782_v41 }
 0x2cd   :  { %v3798_v0 = vadd.f32 %v1869_v34, %v1805_v8  ;;  %v1807_v59 = vpop.f32.mrf.mxu2  ;;  %v2299_v34 = vld [vmem:[#allocation11 + $0x1d0] sm:$0xff] }
 0x2ce   :  { %v1808_v32 = vadd.f32 %v1807_v59, %v1743_v49  ;;  %1939 = vmatmul.f32.gmra.mxu0 %v3284_v23  ;;  %2004 = vmatmul.f32.gmra.mxu1 %v3289_v12  ;;  %v1746_v46 = vadd.f32 %v1745_v29, %v1681_v52  ;;  %v2251_v49 = vld [vmem:[#allocation11 + $0x50] sm:$0xff] }
 0x2cf   :  { %v4180_v59 = vld [vmem:[#allocation33_spill] sm:$0xff]  ;;  %2314 = vmatpush.msra.mxu0 %v2251_v49  ;;  %2509 = vmatpush.msra.mxu3 %v2299_v34  ;;  %v2249_v34 = vld [vmem:[#allocation11 + $0x40] sm:$0xff] }
 0x2d0   :  { %v2267_v29 = vld [vmem:[#allocation11 + $0xd0] sm:$0xff] }
 0x2d1   :  { %2131 = vmatmul.f32.gmra.mxu3 %v3294_v50  ;;  %v2283_v50 = vld [vmem:[#allocation11 + $0x150] sm:$0xff]  ;;  %2379 = vmatpush.msra.mxu1 %v2267_v29  ;;  %v4182_v29 = vld [vmem:[#allocation35_spill] sm:$0xff] }
 0x2d2   :  { %2069 = vmatmul.f32.gmra.mxu2 %v4179_v62  ;;  %2315 = vmatpush.msra.mxu0 %v2250_v3  ;;  %v2296_v3 = vld [vmem:[#allocation11 + $0x1b8] sm:$0xff] }
 0x2d3   :  { %v1683_v8 = vpop.f32.mrf.mxu0  ;;  %v1748_v31 = vpop.f32.mrf.mxu1  ;;  %2444 = vmatpush.msra.mxu2 %v2283_v50 }
 0x2d4   :  { %v1872_v23 = vpop.f32.mrf.mxu3  ;;  %v1684_v40 = vadd.f32 %v1683_v8, %v3782_v41  ;;  %v2298_v8 = vld [vmem:[#allocation11 + $0x1c8] sm:$0xff]  ;;  %2316 = vmatpush.msra.mxu0 %v2249_v34 }
 0x2d5   :  { %v3805_v14 = vadd.f32 %v1872_v23, %v1808_v32  ;;  %v1810_v12 = vpop.f32.mrf.mxu2  ;;  %2510 = vmatpush.msra.mxu3 %v2298_v8  ;;  %v4183_v8 = vld [vmem:[#allocation36_spill] sm:$0xff] }
 0x2d6   :  { %v1811_v56 = vadd.f32 %v1810_v12, %v1746_v46  ;;  %1942 = vmatmul.f32.gmra.mxu0 %v3302_v18  ;;  %2007 = vmatmul.f32.gmra.mxu1 %v3307_v26  ;;  %v1749_v52 = vadd.f32 %v1748_v31, %v1684_v40  ;;  %v4181_v46 = vld [vmem:[#allocation34_spill] sm:$0xff]  ;;  %v2266_v31 = vld [vmem:[#allocation11 + $0xc8] sm:$0xff] }
 0x2d7   :  { %2380 = vmatpush.msra.mxu1 %v2266_v31 }
 0x2d9   :  { %2134 = vmatmul.f32.gmra.mxu3 %v3312_v42  ;;  %v2282_v42 = vld [vmem:[#allocation11 + $0x148] sm:$0xff] }
 0x2da   :  { %2072 = vmatmul.f32.gmra.mxu2 %v4180_v59  ;;  %v2297_v59 = vld [vmem:[#allocation11 + $0x1c0] sm:$0xff] }
 0x2db   :  { %v1686_v32 = vpop.f32.mrf.mxu0  ;;  %v1751_v16 = vpop.f32.mrf.mxu1  ;;  %2445 = vmatpush.msra.mxu2 %v2282_v42  ;;  %2511 = vmatpush.msra.mxu3 %v2297_v59 }
 0x2dc   :  { %v1875_v18 = vpop.f32.mrf.mxu3  ;;  %v1687_v62 = vadd.f32 %v1686_v32, %v3782_v41  ;;  %v2265_v32 = vld [vmem:[#allocation11 + $0xc0] sm:$0xff] }
 0x2dd   :  { %v3812_v17 = vadd.f32 %v1875_v18, %v1811_v56  ;;  %v1813_v26 = vpop.f32.mrf.mxu2  ;;  %2381 = vmatpush.msra.mxu1 %v2265_v32  ;;  %2512 = vmatpush.msra.mxu3 %v2296_v3  ;;  %v2245_v3 = vld [vmem:[#allocation11 + $0x20] sm:$0xff] }
 0x2de   :  { %v1814_v61 = vadd.f32 %v1813_v26, %v1749_v52  ;;  %1945 = vmatmul.f32.gmra.mxu0 %v3320_v37  ;;  %2010 = vmatmul.f32.gmra.mxu1 %v3325_v48  ;;  %v1752_v56 = vadd.f32 %v1751_v16, %v1687_v62  ;;  %v2248_v62 = vld [vmem:[#allocation11 + $0x38] sm:$0xff] }
 0x2df   :  { %2317 = vmatpush.msra.mxu0 %v2248_v62 }
 0x2e1   :  { %2137 = vmatmul.f32.gmra.mxu3 %v3330_v30  ;;  %v2281_v30 = vld [vmem:[#allocation11 + $0x140] sm:$0xff] }
 0x2e2   :  { %2075 = vmatmul.f32.gmra.mxu2 %v4181_v46  ;;  %v2264_v46 = vld [vmem:[#allocation11 + $0xb8] sm:$0xff] }
 0x2e3   :  { %v1689_v23 = vpop.f32.mrf.mxu0  ;;  %v1754_v12 = vpop.f32.mrf.mxu1  ;;  %2446 = vmatpush.msra.mxu2 %v2281_v30  ;;  %2382 = vmatpush.msra.mxu1 %v2264_v46  ;;  %v2295_v30 = vld [vmem:[#allocation11 + $0x1b0] sm:$0xff]  ;;  %v2261_v46 = vld [vmem:[#allocation11 + $0xa0] sm:$0xff] }
 0x2e4   :  { %v1878_v37 = vpop.f32.mrf.mxu3  ;;  %v1690_v49 = vadd.f32 %v1689_v23, %v3782_v41  ;;  %2513 = vmatpush.msra.mxu3 %v2295_v30 }
 0x2e5   :  { %v3819_v50 = vadd.f32 %v1878_v37, %v1814_v61  ;;  %v1816_v48 = vpop.f32.mrf.mxu2 }
 0x2e6   :  { %v1817_v40 = vadd.f32 %v1816_v48, %v1752_v56  ;;  %1948 = vmatmul.f32.gmra.mxu0 %v3338_v55  ;;  %2013 = vmatmul.f32.gmra.mxu1 %v3343_v6  ;;  %v1755_v18 = vadd.f32 %v1754_v12, %v1690_v49  ;;  %v2263_v49 = vld [vmem:[#allocation11 + $0xb0] sm:$0xff] }
 0x2e7   :  { %2383 = vmatpush.msra.mxu1 %v2263_v49 }
 0x2e9   :  { %2140 = vmatmul.f32.gmra.mxu3 %v3348_v28  ;;  %v2280_v28 = vld [vmem:[#allocation11 + $0x138] sm:$0xff] }
 0x2ea   :  { %2078 = vmatmul.f32.gmra.mxu2 %v4182_v29 }
 0x2eb   :  { %v1692_v16 = vpop.f32.mrf.mxu0  ;;  %v1757_v52 = vpop.f32.mrf.mxu1  ;;  %2447 = vmatpush.msra.mxu2 %v2280_v28 }
 0x2ec   :  { %v1881_v55 = vpop.f32.mrf.mxu3  ;;  %v1693_v42 = vadd.f32 %v1692_v16, %v3782_v41 }
 0x2ed   :  { %v3826_v26 = vadd.f32 %v1881_v55, %v1817_v40  ;;  %v1819_v6 = vpop.f32.mrf.mxu2  ;;  %v2247_v40 = vld [vmem:[#allocation11 + $0x30] sm:$0xff]  ;;  %v2262_v55 = vld [vmem:[#allocation11 + $0xa8] sm:$0xff] }
 0x2ee   :  { %v1820_v61 = vadd.f32 %v1819_v6, %v1755_v18  ;;  %1951 = vmatmul.f32.gmra.mxu0 %v3356_v15  ;;  %2016 = vmatmul.f32.gmra.mxu1 %v3361_v21  ;;  %v1758_v12 = vadd.f32 %v1757_v52, %v1693_v42  ;;  %v2294_v18 = vld [vmem:[#allocation11 + $0x1a8] sm:$0xff] }
 0x2ef   :  { %2318 = vmatpush.msra.mxu0 %v2247_v40  ;;  %2514 = vmatpush.msra.mxu3 %v2294_v18  ;;  %v2241_v18 = vld [vmem:[#allocation11] sm:$0xff] }
 0x2f0   :  { %2384 = vmatpush.msra.mxu1 %v2262_v55 }
 0x2f1   :  { %2143 = vmatmul.f32.gmra.mxu3 %v3366_v39  ;;  %v2279_v39 = vld [vmem:[#allocation11 + $0x130] sm:$0xff] }
 0x2f2   :  { %2081 = vmatmul.f32.gmra.mxu2 %v4183_v8  ;;  %v2293_v8 = vld [vmem:[#allocation11 + $0x1a0] sm:$0xff]  ;;  %2385 = vmatpush.msra.mxu1 %v2261_v46 }
 0x2f3   :  { %v1695_v31 = vpop.f32.mrf.mxu0  ;;  %v1760_v23 = vpop.f32.mrf.mxu1  ;;  %2448 = vmatpush.msra.mxu2 %v2279_v39  ;;  %2515 = vmatpush.msra.mxu3 %v2293_v8  ;;  %v2260_v39 = vld [vmem:[#allocation11 + $0x98] sm:$0xff] }
 0x2f4   :  { %v1884_v15 = vpop.f32.mrf.mxu3  ;;  %v1696_v48 = vadd.f32 %v1695_v31, %v3782_v41  ;;  %2386 = vmatpush.msra.mxu1 %v2260_v39 }
 0x2f5   :  { %v3833_v56 = vadd.f32 %v1884_v15, %v1820_v61  ;;  %v1822_v21 = vpop.f32.mrf.mxu2 }
 0x2f6   :  { %v1823_v37 = vadd.f32 %v1822_v21, %v1758_v12  ;;  %1954 = vmatmul.f32.gmra.mxu0 %v3376_v44  ;;  %2019 = vmatmul.f32.gmra.mxu1 %v3379_v36  ;;  %v1761_v29 = vadd.f32 %v1760_v23, %v1696_v48 }
 0x2f9   :  { %2146 = vmatmul.f32.gmra.mxu3 %v3387_v60  ;;  %v2278_v60 = vld [vmem:[#allocation11 + $0x128] sm:$0xff] }
 0x2fa   :  { %2084 = vmatmul.f32.gmra.mxu2 %v3390_v25  ;;  %v2246_v25 = vld [vmem:[#allocation11 + $0x28] sm:$0xff] }
 0x2fb   :  { %v1698_v34 = vpop.f32.mrf.mxu0  ;;  %v1763_v59 = vpop.f32.mrf.mxu1  ;;  %2449 = vmatpush.msra.mxu2 %v2278_v60  ;;  %2319 = vmatpush.msra.mxu0 %v2246_v25  ;;  %v2242_v60 = vld [vmem:[#allocation11 + $0x8] sm:$0xff] }
 0x2fc   :  { %v1887_v44 = vpop.f32.mrf.mxu3  ;;  %v1699_v52 = vadd.f32 %v1698_v34, %v3782_v41 }
 0x2fd   :  { %v3840_v32 = vadd.f32 %v1887_v44, %v1823_v37  ;;  %v1825_v36 = vpop.f32.mrf.mxu2  ;;  %2320 = vmatpush.msra.mxu0 %v2245_v3  ;;  %v2292_v37 = vld [vmem:[#allocation11 + $0x198] sm:$0xff]  ;;  %v4184_v44 = vld [vmem:[#allocation37_spill] sm:$0xff] }
 0x2fe   :  { %v1826_v16 = vadd.f32 %v1825_v36, %v1761_v29  ;;  %1957 = vmatmul.f32.gmra.mxu0 %v3394_v20  ;;  %2022 = vmatmul.f32.gmra.mxu1 %v3399_v27  ;;  %v1764_v28 = vadd.f32 %v1763_v59, %v1699_v52  ;;  %v2291_v59 = vld [vmem:[#allocation11 + $0x190] sm:$0xff] }
 0x2ff   :  { %2516 = vmatpush.msra.mxu3 %v2292_v37  ;;  %v2259_v29 = vld [vmem:[#allocation11 + $0x90] sm:$0xff] }
 0x300   :  { %2387 = vmatpush.msra.mxu1 %v2259_v29 }
 0x301   :  { %2149 = vmatmul.f32.gmra.mxu3 %v3406_v38  ;;  %v2277_v38 = vld [vmem:[#allocation11 + $0x120] sm:$0xff] }
 0x302   :  { %2087 = vmatmul.f32.gmra.mxu2 %v3410_v13  ;;  %2517 = vmatpush.msra.mxu3 %v2291_v59 }
 0x303   :  { %v1701_v6 = vpop.f32.mrf.mxu0  ;;  %v1766_v61 = vpop.f32.mrf.mxu1  ;;  %2450 = vmatpush.msra.mxu2 %v2277_v38  ;;  %v2273_v38 = vld [vmem:[#allocation11 + $0x100] sm:$0xff] }
 0x304   :  { %v1890_v20 = vpop.f32.mrf.mxu3  ;;  %v1702_v13 = vadd.f32 %v1701_v6, %v3782_v41  ;;  %v4185_v6 = vld [vmem:[#allocation38_spill] sm:$0xff] }
 0x305   :  { %v3847_v42 = vadd.f32 %v1890_v20, %v1826_v16  ;;  %v1828_v27 = vpop.f32.mrf.mxu2  ;;  %v4186_v20 = vld [vmem:[#allocation39_spill] sm:$0xff] }
 0x306   :  { %v3849_v62 = vadd.f32 %v1828_v27, %v1764_v28  ;;  %1960 = vmatmul.f32.gmra.mxu0 %v3417_v11  ;;  %2025 = vmatmul.f32.gmra.mxu1 %v3419_v4  ;;  %v1767_v12 = vadd.f32 %v1766_v61, %v1702_v13  ;;  %v2274_v61 = vld [vmem:[#allocation11 + $0x108] sm:$0xff] }
 0x307   :  { %v2290_v27 = vld [vmem:[#allocation11 + $0x188] sm:$0xff] }
 0x308   :  { %v4187_v13 = vld [vmem:[#allocation40_spill] sm:$0xff]  ;;  %2518 = vmatpush.msra.mxu3 %v2290_v27 }
 0x309   :  { %2152 = vmatmul.f32.gmra.mxu3 %v3427_v2  ;;  %v2276_v2 = vld [vmem:[#allocation11 + $0x118] sm:$0xff] }
 0x30a   :  { %2090 = vmatmul.f32.gmra.mxu2 %v3430_v51  ;;  %v2244_v51 = vld [vmem:[#allocation11 + $0x18] sm:$0xff] }
 0x30b   :  { %v1704_v31 = vpop.f32.mrf.mxu0  ;;  %v1769_v23 = vpop.f32.mrf.mxu1  ;;  %2451 = vmatpush.msra.mxu2 %v2276_v2  ;;  %2321 = vmatpush.msra.mxu0 %v2244_v51 }
 0x30c   :  { %v3856_v11 = vpop.f32.mrf.mxu3  ;;  %v1705_v21 = vadd.f32 %v1704_v31, %v3782_v41 }
 0x30d   :  { %v1831_v4 = vpop.f32.mrf.mxu2 }
 0x30e   :  { %v3858_v15 = vadd.f32 %v1831_v4, %v1767_v12  ;;  %1963 = vmatmul.f32.gmra.mxu0 %v3434_v43  ;;  %2028 = vmatmul.f32.gmra.mxu1 %v3439_v24  ;;  %v1770_v30 = vadd.f32 %v1769_v23, %v1705_v21  ;;  %v2289_v12 = vld [vmem:[#allocation11 + $0x180] sm:$0xff] }
 0x30f   :  { %2519 = vmatpush.msra.mxu3 %v2289_v12  ;;  %v4197_v12 = vld [vmem:[#allocation45_spill] sm:$0xff] }
 0x311   :  { %2155 = vmatmul.f32.gmra.mxu3 %v3446_v63  ;;  %v2275_v63 = vld [vmem:[#allocation11 + $0x110] sm:$0xff] }
 0x312   :  { %2093 = vmatmul.f32.gmra.mxu2 %v3450_v5  ;;  %v2243_v5 = vld [vmem:[#allocation11 + $0x10] sm:$0xff] }
 0x313   :  { %v1707_v48 = vpop.f32.mrf.mxu0  ;;  %v1772_v40 = vpop.f32.mrf.mxu1  ;;  %2452 = vmatpush.msra.mxu2 %v2275_v63  ;;  %2322 = vmatpush.msra.mxu0 %v2243_v5  ;;  %v4191_v5 = vld [vmem:[#allocation22_spill] sm:$0xff] }
 0x314   :  { %v3865_v43 = vpop.f32.mrf.mxu3  ;;  %v1708_v34 = vadd.f32 %v1707_v48, %v3782_v41 }
 0x315   :  { %v1834_v24 = vpop.f32.mrf.mxu2  ;;  %2323 = vmatpush.msra.mxu0 %v2242_v60  ;;  %2453 = vmatpush.msra.mxu2 %v2274_v61  ;;  %v4195_v61 = vld [vmem:[#allocation44_spill] sm:$0xff] }
 0x316   :  { %v3867_v49 = vadd.f32 %v1834_v24, %v1770_v30  ;;  %1966 = vmatmul.f32.gmra.mxu0 %v3457_v57  ;;  %2031 = vmatmul.f32.gmra.mxu1 %v3459_v45  ;;  %v2258_v57 = vld [vmem:[#allocation11 + $0x88] sm:$0xff]  ;;  %v1773_v52 = vadd.f32 %v1772_v40, %v1708_v34  ;;  %v4189_v40 = vld [vmem:[#allocation21_spill] sm:$0xff] }
 0x317   :  { %2388 = vmatpush.msra.mxu1 %v2258_v57  ;;  %2324 = vmatpush.msra.mxu0 %v2241_v18 }
 0x318   :  { %2454 = vmatpush.msra.mxu2 %v2273_v38 }
 0x319   :  { %2158 = vmatmul.f32.gmra.mxu3 %v3467_v7  ;;  %v2257_v7 = vld [vmem:[#allocation11 + $0x80] sm:$0xff] }
 0x31a   :  { %2096 = vmatmul.f32.gmra.mxu2 %v4184_v44  ;;  %2389 = vmatpush.msra.mxu1 %v2257_v7  ;;  %v4192_v44 = vld [vmem:[#allocation43_spill] sm:$0xff] }
 0x31b   :  { %v1710_v36 = vpop.f32.mrf.mxu0  ;;  %v1775_v16 = vpop.f32.mrf.mxu1 }
 0x31c   :  { %v3874_v45 = vpop.f32.mrf.mxu3  ;;  %v1711_v28 = vadd.f32 %v1710_v36, %v3782_v41  ;;  %v2177_v36 = vmax.f32 %v4192_v44, 0.0 }
 0x31d   :  { %v1837_v25 = vpop.f32.mrf.mxu2 }
 0x31e   :  { %v3876_v55 = vadd.f32 %v1837_v25, %v1773_v52  ;;  %1969 = vmatmul.f32.gmra.mxu0 %v3474_v35  ;;  %2034 = vmatmul.f32.gmra.mxu1 %v4185_v6  ;;  %v1776_v46 = vadd.f32 %v1775_v16, %v1711_v28  ;;  %v4193_v16 = vld [vmem:[#allocation29_spill] sm:$0xff]  ;;  %v2181_v28 = vmax.f32 %v4195_v61, 0.0  ;;  %v4202_v61 = vld [vmem:[#allocation59_spill] sm:$0xff] }
 0x31f   :  { %v2178_v60 = vmax.f32 %v4193_v16, 0.0 }
 0x321   :  { %2161 = vmatmul.f32.gmra.mxu3 %v4186_v20  ;;  %v4196_v20 = vld [vmem:[#allocation30_spill] sm:$0xff] }
 0x322   :  { %2099 = vmatmul.f32.gmra.mxu2 %v4187_v13  ;;  %v2182_v27 = vmax.f32 %v4196_v20, 0.0 }
 0x323   :  { %v1713_v3 = vpop.f32.mrf.mxu0  ;;  %v1778_v8 = vpop.f32.mrf.mxu1 }
 0x324   :  { %v3883_v35 = vpop.f32.mrf.mxu3  ;;  %v1714_v4 = vadd.f32 %v1713_v3, %v3782_v41 }
 0x325   :  { %v1840_v31 = vpop.f32.mrf.mxu2 }
 0x326   :  { %v3885_v23 = vadd.f32 %v1840_v31, %v1776_v46  ;;  %1972 = vmatmul.f32.gmra.mxu0 %v3497_v53  ;;  %2037 = vmatmul.f32.gmra.mxu1 %v4166_v1  ;;  %v1779_v51 = vadd.f32 %v1778_v8, %v1714_v4  ;;  %v4188_v1 = vld [vmem:[#allocation23_spill] sm:$0xff]  ;;  %v2185_v4 = vmax.f32 %v4197_v12, 0.0  ;;  %v4203_v12 = vld [vmem:[#allocation48_spill] sm:$0xff] }
 0x329   :  { %2164 = vmatmul.f32.gmra.mxu3 %v4132_v33 }
 0x32a   :  { %2102 = vmatmul.f32.gmra.mxu2 %v4167_v22 }
 0x32b   :  { %v1716_v2 = vpop.f32.mrf.mxu0  ;;  %v1781_v21 = vpop.f32.mrf.mxu1 }
 0x32c   :  { %v3892_v37 = vpop.f32.mrf.mxu3  ;;  %v1717_v53 = vadd.f32 %v1716_v2, %v3782_v41  ;;  %v4198_v2 = vld [vmem:[#allocation57_spill] sm:$0xff] }
 0x32d   :  { %v1843_v39 = vpop.f32.mrf.mxu2 }
 0x32e   :  { %v3894_v48 = vadd.f32 %v1843_v39, %v1779_v51  ;;  %1975 = vmatmul.f32.gmra.mxu0 %v3514_v10  ;;  %2040 = vmatmul.f32.gmra.mxu1 %v3519_v58  ;;  %v1782_v30 = vadd.f32 %v1781_v21, %v1717_v53  ;;  %v4190_v58 = vld [vmem:[#allocation24_spill] sm:$0xff]  ;;  %v2186_v21 = vmax.f32 %v4198_v2, 0.0 }
 0x32f   :  { %v4204_v2 = vld [vmem:[#allocation60_spill] sm:$0xff] }
 0x331   :  { %2167 = vmatmul.f32.gmra.mxu3 %v4188_v1 }
 0x332   :  { %2105 = vmatmul.f32.gmra.mxu2 %v4189_v40 }
 0x333   :  { %v1719_v33 = vpop.f32.mrf.mxu0  ;;  %v1784_v22 = vpop.f32.mrf.mxu1 }
 0x334   :  { %v3901_v24 = vpop.f32.mrf.mxu3  ;;  %v1720_v10 = vadd.f32 %v1719_v33, %v3782_v41  ;;  %v2187_v33 = vmax.f32 %v3812_v17, 0.0  ;;  %v2191_v17 = vmax.f32 %v3819_v50, 0.0  ;;  %v2195_v50 = vmax.f32 %v3826_v26, 0.0 }
 0x335   :  { %v1846_v63 = vpop.f32.mrf.mxu2  ;;  %v2199_v26 = vmax.f32 %v3833_v56, 0.0  ;;  %v2203_v56 = vmax.f32 %v3840_v32, 0.0  ;;  %v2207_v32 = vmax.f32 %v3847_v42, 0.0 }
 0x336   :  { %v3903_v34 = vadd.f32 %v1846_v63, %v1782_v30  ;;  %1978 = vmatmul.f32.gmra.mxu0 %v3535_v9  ;;  %2043 = vmatmul.f32.gmra.mxu1 %v3537_v54  ;;  %v1785_v57 = vadd.f32 %v1784_v22, %v1720_v10  ;;  %v2179_v9 = vmax.f32 %v3798_v0, 0.0  ;;  %v4194_v54 = vld [vmem:[#allocation67_spill] sm:$0xff]  ;;  %v2183_v0 = vmax.f32 %v3805_v14, 0.0  ;;  %v4199_v10 = vld [vmem:[#allocation46_spill] sm:$0xff] }
 0x337   :  { %v3918_v41 = vperm.slane %v4194_v54, 3 }
 0x339   :  { %2170 = vmatmul.f32.gmra.mxu3 %v4190_v58  ;;  %v2189_v58 = vmax.f32 %v4199_v10, 0.0 }
 0x33a   :  { %2108 = vmatmul.f32.gmra.mxu2 %v4191_v5  ;;  %v4200_v5 = vld [vmem:[#allocation58_spill] sm:$0xff] }
 0x33b   :  { %v1934_v59 = vpop.f32.mrf.mxu0  ;;  %v1999_v29 = vpop.f32.mrf.mxu1 }
 0x33c   :  { %v3912_v52 = vpop.f32.mrf.mxu3  ;;  %v1935_v13 = vadd.f32 %v1934_v59, %v3918_v41  ;;  %v2190_v59 = vmax.f32 %v4200_v5, 0.0 }
 0x33d   :  { %v1849_v25 = vpop.f32.mrf.mxu2 }
 0x33e   :  { %v3914_v18 = vadd.f32 %v1849_v25, %v1785_v57  ;;  %2325 = vmatmul.f32.vlgmr.msra.gmra.mxu0 %v2177_v36  ;;  %2390 = vmatmul.f32.vlgmr.msra.gmra.mxu1 %v2178_v60  ;;  %v2000_v8 = vadd.f32 %v1999_v29, %v1935_v13 }
 0x341   :  { %2173 = vmatmul.f32.gmra.mxu3 %v4176_v47 }
 0x342   :  { %2455 = vmatmul.f32.vlgmr.msra.gmra.mxu2 %v2179_v9 }
 0x343   :  { %v1937_v7 = vpop.f32.mrf.mxu0  ;;  %v2002_v6 = vpop.f32.mrf.mxu1 }
 0x344   :  { %v3923_v38 = vpop.f32.mrf.mxu3  ;;  %v1938_v39 = vadd.f32 %v1937_v7, %v3918_v41  ;;  %v4201_v7 = vld [vmem:[#allocation47_spill] sm:$0xff] }
 0x345   :  { %v2064_v3 = vpop.f32.mrf.mxu2 }
 0x346   :  { %2328 = vmatmul.f32.gmra.mxu0 %v2181_v28  ;;  %2393 = vmatmul.f32.gmra.mxu1 %v2182_v27  ;;  %v2065_v46 = vadd.f32 %v2064_v3, %v2000_v8  ;;  %v2003_v14 = vadd.f32 %v2002_v6, %v1938_v39  ;;  %v2193_v6 = vmax.f32 %v4201_v7, 0.0  ;;  %v2194_v28 = vmax.f32 %v4202_v61, 0.0  ;;  %v4208_v7 = vld [vmem:[#allocation62_spill] sm:$0xff] }
 0x34a   :  { %2458 = vmatmul.f32.gmra.mxu2 %v2183_v0 }
 0x34b   :  { %v1940_v47 = vpop.f32.mrf.mxu0  ;;  %v2005_v31 = vpop.f32.mrf.mxu1 }
 0x34c   :  { %v2129_v51 = vpop.f32.mrf.mxu3  ;;  %v1941_v44 = vadd.f32 %v1940_v47, %v3918_v41 }
 0x34d   :  { %v2130_v53 = vadd.f32 %v2129_v51, %v2065_v46  ;;  %v2067_v1 = vpop.f32.mrf.mxu2 }
 0x34e   :  { %2331 = vmatmul.f32.gmra.mxu0 %v2185_v4  ;;  %2396 = vmatmul.f32.gmra.mxu1 %v2186_v21  ;;  %v2068_v22 = vadd.f32 %v2067_v1, %v2003_v14  ;;  %v2006_v57 = vadd.f32 %v2005_v31, %v1941_v44  ;;  %v2197_v4 = vmax.f32 %v4203_v12, 0.0  ;;  %v2198_v21 = vmax.f32 %v4204_v2, 0.0 }
 0x34f   :  { %v2180_v40 = vmax.f32 %v2130_v53, 0.0 }
 0x351   :  { %2520 = vmatmul.f32.vlgmr.msra.gmra.mxu3 %v2180_v40 }
 0x352   :  { %2461 = vmatmul.f32.gmra.mxu2 %v2187_v33 }
 0x353   :  { %v1943_v30 = vpop.f32.mrf.mxu0  ;;  %v2008_v63 = vpop.f32.mrf.mxu1 }
 0x354   :  { %v2132_v29 = vpop.f32.mrf.mxu3  ;;  %v1944_v27 = vadd.f32 %v1943_v30, %v3918_v41 }
 0x355   :  { %v2133_v36 = vadd.f32 %v2132_v29, %v2068_v22  ;;  %v2070_v16 = vpop.f32.mrf.mxu2 }
 0x356   :  { %2334 = vmatmul.f32.gmra.mxu0 %v2189_v58  ;;  %2399 = vmatmul.f32.gmra.mxu1 %v2190_v59  ;;  %v2071_v25 = vadd.f32 %v2070_v16, %v2006_v57  ;;  %v2009_v8 = vadd.f32 %v2008_v63, %v1944_v27  ;;  %v4205_v63 = vld [vmem:[#allocation49_spill] sm:$0xff] }
 0x357   :  { %v2184_v60 = vmax.f32 %v2133_v36, 0.0  ;;  %v2201_v10 = vmax.f32 %v4205_v63, 0.0  ;;  %v4206_v58 = vld [vmem:[#allocation61_spill] sm:$0xff] }
 0x358   :  { %v2202_v5 = vmax.f32 %v4206_v58, 0.0 }
 0x359   :  { %2523 = vmatmul.f32.gmra.mxu3 %v2184_v60 }
 0x35a   :  { %2464 = vmatmul.f32.gmra.mxu2 %v2191_v17 }
 0x35b   :  { %v1946_v9 = vpop.f32.mrf.mxu0  ;;  %v2011_v54 = vpop.f32.mrf.mxu1 }
 0x35c   :  { %v2135_v20 = vpop.f32.mrf.mxu3  ;;  %v1947_v39 = vadd.f32 %v1946_v9, %v3918_v41  ;;  %v4207_v9 = vld [vmem:[#allocation50_spill] sm:$0xff] }
 0x35d   :  { %v2136_v13 = vadd.f32 %v2135_v20, %v2071_v25  ;;  %v2073_v3 = vpop.f32.mrf.mxu2 }
 0x35e   :  { %2337 = vmatmul.f32.gmra.mxu0 %v2193_v6  ;;  %2402 = vmatmul.f32.gmra.mxu1 %v2194_v28  ;;  %v2074_v46 = vadd.f32 %v2073_v3, %v2009_v8  ;;  %v2012_v33 = vadd.f32 %v2011_v54, %v1947_v39  ;;  %v2205_v54 = vmax.f32 %v4207_v9, 0.0  ;;  %v2206_v6 = vmax.f32 %v4208_v7, 0.0 }
 0x35f   :  { %v2188_v0 = vmax.f32 %v2136_v13, 0.0 }
 0x361   :  { %2526 = vmatmul.f32.gmra.mxu3 %v2188_v0 }
 0x362   :  { %2467 = vmatmul.f32.gmra.mxu2 %v2195_v50 }
 0x363   :  { %v1949_v47 = vpop.f32.mrf.mxu0  ;;  %v2014_v31 = vpop.f32.mrf.mxu1 }
 0x364   :  { %v2138_v51 = vpop.f32.mrf.mxu3  ;;  %v1950_v29 = vadd.f32 %v1949_v47, %v3918_v41 }
 0x365   :  { %v2139_v53 = vadd.f32 %v2138_v51, %v2074_v46  ;;  %v2076_v1 = vpop.f32.mrf.mxu2  ;;  %v4209_v46 = vld [vmem:[#allocation51_spill] sm:$0xff] }
 0x366   :  { %2340 = vmatmul.f32.gmra.mxu0 %v2197_v4  ;;  %2405 = vmatmul.f32.gmra.mxu1 %v2198_v21  ;;  %v2077_v14 = vadd.f32 %v2076_v1, %v2012_v33  ;;  %v2015_v60 = vadd.f32 %v2014_v31, %v1950_v29  ;;  %v2209_v47 = vmax.f32 %v4209_v46, 0.0  ;;  %v4210_v31 = vld [vmem:[#allocation63_spill] sm:$0xff]  ;;  %v1894_v4 = vadd.f32 %v3856_v11, %v3849_v62 }
 0x367   :  { %v2192_v40 = vmax.f32 %v2139_v53, 0.0  ;;  %v2210_v12 = vmax.f32 %v4210_v31, 0.0  ;;  %v1897_v62 = vadd.f32 %v3865_v43, %v3858_v15  ;;  %v1900_v15 = vadd.f32 %v3874_v45, %v3867_v49 }
 0x368   :  { %v2211_v53 = vmax.f32 %v1894_v4, 0.0  ;;  %v1903_v49 = vadd.f32 %v3883_v35, %v3876_v55  ;;  %v1906_v55 = vadd.f32 %v3892_v37, %v3885_v23  ;;  %v1909_v23 = vadd.f32 %v3901_v24, %v3894_v48 }
 0x369   :  { %2529 = vmatmul.f32.gmra.mxu3 %v2192_v40  ;;  %v2215_v29 = vmax.f32 %v1897_v62, 0.0  ;;  %v1912_v48 = vadd.f32 %v3912_v52, %v3903_v34  ;;  %v1915_v34 = vadd.f32 %v3923_v38, %v3914_v18 }
 0x36a   :  { %2470 = vmatmul.f32.gmra.mxu2 %v2199_v26 }
 0x36b   :  { %v1952_v22 = vpop.f32.mrf.mxu0  ;;  %v2017_v30 = vpop.f32.mrf.mxu1 }
 0x36c   :  { %v2141_v59 = vpop.f32.mrf.mxu3  ;;  %v1953_v28 = vadd.f32 %v1952_v22, %v3918_v41 }
 0x36d   :  { %v2142_v44 = vadd.f32 %v2141_v59, %v2077_v14  ;;  %v2079_v36 = vpop.f32.mrf.mxu2  ;;  %v4211_v14 = vld [vmem:[#allocation52_spill] sm:$0xff] }
 0x36e   :  { %2343 = vmatmul.f32.gmra.mxu0 %v2201_v10  ;;  %2408 = vmatmul.f32.gmra.mxu1 %v2202_v5  ;;  %v2080_v17 = vadd.f32 %v2079_v36, %v2015_v60  ;;  %v2018_v3 = vadd.f32 %v2017_v30, %v1953_v28  ;;  %v2213_v22 = vmax.f32 %v4211_v14, 0.0  ;;  %v4212_v30 = vld [vmem:[#allocation64_spill] sm:$0xff]  ;;  %v4213_v60 = vld [vmem:[#allocation53_spill] sm:$0xff] }
 0x36f   :  { %v2196_v16 = vmax.f32 %v2142_v44, 0.0  ;;  %v2214_v63 = vmax.f32 %v4212_v30, 0.0 }
 0x371   :  { %2532 = vmatmul.f32.gmra.mxu3 %v2196_v16 }
 0x372   :  { %2473 = vmatmul.f32.gmra.mxu2 %v2203_v56 }
 0x373   :  { %v1955_v57 = vpop.f32.mrf.mxu0  ;;  %v2020_v25 = vpop.f32.mrf.mxu1 }
 0x374   :  { %v2144_v61 = vpop.f32.mrf.mxu3  ;;  %v1956_v21 = vadd.f32 %v1955_v57, %v3918_v41  ;;  %v4214_v57 = vld [vmem:[#allocation65_spill] sm:$0xff] }
 0x375   :  { %v2145_v20 = vadd.f32 %v2144_v61, %v2080_v17  ;;  %v2082_v27 = vpop.f32.mrf.mxu2  ;;  %v2217_v17 = vmax.f32 %v4213_v60, 0.0  ;;  %v2219_v61 = vmax.f32 %v1900_v15, 0.0  ;;  %v4221_v15 = vld [vmem:[#allocation27_spill] sm:$0xff] }
 0x376   :  { %2346 = vmatmul.f32.gmra.mxu0 %v2205_v54  ;;  %2411 = vmatmul.f32.gmra.mxu1 %v2206_v6  ;;  %v2083_v0 = vadd.f32 %v2082_v27, %v2018_v3  ;;  %v2021_v1 = vadd.f32 %v2020_v25, %v1956_v21  ;;  %v2218_v25 = vmax.f32 %v4214_v57, 0.0 }
 0x377   :  { %v2200_v13 = vmax.f32 %v2145_v20, 0.0 }
 0x379   :  { %2535 = vmatmul.f32.gmra.mxu3 %v2200_v13 }
 0x37a   :  { %2476 = vmatmul.f32.gmra.mxu2 %v2207_v32  ;;  %v4215_v32 = vld [vmem:[#allocation54_spill] sm:$0xff] }
 0x37b   :  { %v1958_v50 = vpop.f32.mrf.mxu0  ;;  %v2023_v8 = vpop.f32.mrf.mxu1  ;;  %v2221_v3 = vmax.f32 %v4215_v32, 0.0 }
 0x37c   :  { %v2147_v2 = vpop.f32.mrf.mxu3  ;;  %v1959_v10 = vadd.f32 %v1958_v50, %v3918_v41 }
 0x37d   :  { %v2148_v51 = vadd.f32 %v2147_v2, %v2083_v0  ;;  %v2085_v39 = vpop.f32.mrf.mxu2  ;;  %v4216_v0 = vld [vmem:[#allocation66_spill] sm:$0xff] }
 0x37e   :  { %2349 = vmatmul.f32.gmra.mxu0 %v2209_v47  ;;  %2414 = vmatmul.f32.gmra.mxu1 %v2210_v12  ;;  %v2086_v40 = vadd.f32 %v2085_v39, %v2021_v1  ;;  %v2024_v44 = vadd.f32 %v2023_v8, %v1959_v10  ;;  %v2222_v50 = vmax.f32 %v4216_v0, 0.0  ;;  %v2223_v12 = vmax.f32 %v1903_v49, 0.0  ;;  %v4217_v39 = vld [vmem:[#allocation20_spill] sm:$0xff]  ;;  %v4219_v10 = vld [vmem:[#allocation55_spill] sm:$0xff] }
 0x37f   :  { %v2204_v42 = vmax.f32 %v2148_v51, 0.0  ;;  %v4223_v0 = vld [vmem:[#allocation56_spill] sm:$0xff]  ;;  %v2238_v49 = vmax.f32 %v3791_v19, 0.0 }
 0x381   :  { %2538 = vmatmul.f32.gmra.mxu3 %v2204_v42  ;;  %v2225_v42 = vmax.f32 %v4217_v39, 0.0 }
 0x382   :  { %2479 = vmatmul.f32.gmra.mxu2 %v2211_v53  ;;  %v4218_v53 = vld [vmem:[#allocation41_spill] sm:$0xff] }
 0x383   :  { %v1961_v26 = vpop.f32.mrf.mxu0  ;;  %v2026_v33 = vpop.f32.mrf.mxu1  ;;  %v2226_v1 = vmax.f32 %v4218_v53, 0.0 }
 0x384   :  { %v2150_v11 = vpop.f32.mrf.mxu3  ;;  %v1962_v9 = vadd.f32 %v1961_v26, %v3918_v41 }
 0x385   :  { %v2151_v58 = vadd.f32 %v2150_v11, %v2086_v40  ;;  %v2088_v5 = vpop.f32.mrf.mxu2 }
 0x386   :  { %2352 = vmatmul.f32.gmra.mxu0 %v2213_v22  ;;  %2417 = vmatmul.f32.gmra.mxu1 %v2214_v63  ;;  %v2089_v36 = vadd.f32 %v2088_v5, %v2024_v44  ;;  %v2027_v28 = vadd.f32 %v2026_v33, %v1962_v9  ;;  %v2227_v22 = vmax.f32 %v1906_v55, 0.0  ;;  %v4220_v5 = vld [vmem:[#allocation19_spill] sm:$0xff]  ;;  %v4222_v9 = vld [vmem:[#allocation68_spill] sm:$0xff] }
 0x387   :  { %v2208_v59 = vmax.f32 %v2151_v58, 0.0  ;;  %v2229_v58 = vmax.f32 %v4219_v10, 0.0 }
 0x389   :  { %2541 = vmatmul.f32.gmra.mxu3 %v2208_v59  ;;  %v2230_v59 = vmax.f32 %v4220_v5, 0.0 }
 0x38a   :  { %2482 = vmatmul.f32.gmra.mxu2 %v2215_v29 }
 0x38b   :  { %v1964_v16 = vpop.f32.mrf.mxu0  ;;  %v2029_v56 = vpop.f32.mrf.mxu1 }
 0x38c   :  { %v2153_v43 = vpop.f32.mrf.mxu3  ;;  %v1965_v8 = vadd.f32 %v1964_v16, %v3918_v41 }
 0x38d   :  { %v2154_v54 = vadd.f32 %v2153_v43, %v2089_v36  ;;  %v2091_v7 = vpop.f32.mrf.mxu2  ;;  %v2233_v43 = vmax.f32 %v4221_v15, 0.0 }
 0x38e   :  { %2355 = vmatmul.f32.gmra.mxu0 %v2217_v17  ;;  %2420 = vmatmul.f32.gmra.mxu1 %v2218_v25  ;;  %v2092_v20 = vadd.f32 %v2091_v7, %v2027_v28  ;;  %v2030_v4 = vadd.f32 %v2029_v56, %v1965_v8  ;;  %v2231_v56 = vmax.f32 %v1909_v23, 0.0 }
 0x38f   :  { %v2212_v6 = vmax.f32 %v2154_v54, 0.0  ;;  %v2234_v54 = vmax.f32 %v4222_v9, 0.0 }
 0x391   :  { %2544 = vmatmul.f32.gmra.mxu3 %v2212_v6 }
 0x392   :  { %2485 = vmatmul.f32.gmra.mxu2 %v2219_v61 }
 0x393   :  { %v1967_v27 = vpop.f32.mrf.mxu0  ;;  %v2032_v13 = vpop.f32.mrf.mxu1 }
 0x394   :  { %v2156_v45 = vpop.f32.mrf.mxu3  ;;  %v1968_v40 = vadd.f32 %v1967_v27, %v3918_v41 }
 0x395   :  { %v2157_v46 = vadd.f32 %v2156_v45, %v2092_v20  ;;  %v2094_v47 = vpop.f32.mrf.mxu2  ;;  %v2235_v20 = vmax.f32 %v1912_v48, 0.0 }
 0x396   :  { %2358 = vmatmul.f32.gmra.mxu0 %v2221_v3  ;;  %2423 = vmatmul.f32.gmra.mxu1 %v2222_v50  ;;  %v2095_v2 = vadd.f32 %v2094_v47, %v2030_v4  ;;  %v2033_v30 = vadd.f32 %v2032_v13, %v1968_v40  ;;  %v2237_v50 = vmax.f32 %v4223_v0, 0.0 }
 0x397   :  { %v2216_v31 = vmax.f32 %v2157_v46, 0.0 }
 0x399   :  { %2547 = vmatmul.f32.gmra.mxu3 %v2216_v31  ;;  %v2239_v31 = vmax.f32 %v1915_v34, 0.0 }
 0x39a   :  { %2488 = vmatmul.f32.gmra.mxu2 %v2223_v12 }
 0x39b   :  { %v1970_v21 = vpop.f32.mrf.mxu0  ;;  %v2035_v51 = vpop.f32.mrf.mxu1 }
 0x39c   :  { %v2159_v35 = vpop.f32.mrf.mxu3  ;;  %v1971_v29 = vadd.f32 %v1970_v21, %v3918_v41 }
 0x39d   :  { %v2160_v26 = vadd.f32 %v2159_v35, %v2095_v2  ;;  %v2097_v33 = vpop.f32.mrf.mxu2 }
 0x39e   :  { %2361 = vmatmul.f32.gmra.mxu0 %v2225_v42  ;;  %2426 = vmatmul.f32.gmra.mxu1 %v2226_v1  ;;  %v2098_v63 = vadd.f32 %v2097_v33, %v2033_v30  ;;  %v2036_v60 = vadd.f32 %v2035_v51, %v1971_v29 }
 0x39f   :  { %v2220_v14 = vmax.f32 %v2160_v26, 0.0 }
 0x3a1   :  { %2550 = vmatmul.f32.gmra.mxu3 %v2220_v14  ;;  %v3995_v14 = vld [vmem:[%s4025_s6] ss:$0 sm:$0xff]  ;;  %s2860_s6 = smov [#allocation13]  }
 0x3a2   :  { %2491 = vmatmul.f32.gmra.mxu2 %v2227_v22  ;;  %s2605_s10 = sshll.u32 %s2860_s6, 4  ;;  %s2606_s10 = int_to_ptr.vmem [resolvable:$true] %s2605_s10 }
 0x3a3   :  { %v1973_v62 = vpop.f32.mrf.mxu0  ;;  %v2038_v11 = vpop.f32.mrf.mxu1 }
 0x3a4   :  { %v2162_v37 = vpop.f32.mrf.mxu3  ;;  %v1974_v7 = vadd.f32 %v1973_v62, %v3918_v41 }
 0x3a5   :  { %v2163_v44 = vadd.f32 %v2162_v37, %v2098_v63  ;;  %v2100_v36 = vpop.f32.mrf.mxu2 }
 0x3a6   :  { %2364 = vmatmul.f32.gmra.mxu0 %v2229_v58  ;;  %2429 = vmatmul.f32.gmra.mxu1 %v2230_v59  ;;  %v2101_v17 = vadd.f32 %v2100_v36, %v2036_v60  ;;  %v2039_v27 = vadd.f32 %v2038_v11, %v1974_v7 }
 0x3a7   :  { %v2224_v16 = vmax.f32 %v2163_v44, 0.0 }
 0x3a9   :  { %2553 = vmatmul.f32.gmra.mxu3 %v2224_v16 }
 0x3aa   :  { %2494 = vmatmul.f32.gmra.mxu2 %v2231_v56 }
 0x3ab   :  { %v1976_v57 = vpop.f32.mrf.mxu0  ;;  %v2041_v25 = vpop.f32.mrf.mxu1 }
 0x3ac   :  { %v2165_v24 = vpop.f32.mrf.mxu3  ;;  %v1977_v45 = vadd.f32 %v1976_v57, %v3918_v41 }
 0x3ad   :  { %v2166_v6 = vadd.f32 %v2165_v24, %v2101_v17  ;;  %v2103_v61 = vpop.f32.mrf.mxu2 }
 0x3ae   :  { %2367 = vmatmul.f32.gmra.mxu0 %v2233_v43  ;;  %2432 = vmatmul.f32.gmra.mxu1 %v2234_v54  ;;  %v2104_v13 = vadd.f32 %v2103_v61, %v2039_v27  ;;  %v2042_v12 = vadd.f32 %v2041_v25, %v1977_v45 }
 0x3af   :  { %v2228_v28 = vmax.f32 %v2166_v6, 0.0 }
 0x3b1   :  { %2556 = vmatmul.f32.gmra.mxu3 %v2228_v28 }
 0x3b2   :  { %2497 = vmatmul.f32.gmra.mxu2 %v2235_v20 }
 0x3b3   :  { %v1979_v32 = vpop.f32.mrf.mxu0  ;;  %v2044_v3 = vpop.f32.mrf.mxu1 }
 0x3b4   :  { %v2168_v52 = vpop.f32.mrf.mxu3  ;;  %v1980_v19 = vadd.f32 %v1979_v32, %v3918_v41 }
 0x3b5   :  { %v2169_v8 = vadd.f32 %v2168_v52, %v2104_v13  ;;  %v2106_v46 = vpop.f32.mrf.mxu2 }
 0x3b6   :  { %2370 = vmatmul.f32.gmra.mxu0 %v2237_v50  ;;  %2435 = vmatmul.f32.gmra.mxu1 %v2238_v49  ;;  %v2107_v4 = vadd.f32 %v2106_v46, %v2042_v12  ;;  %v2045_v42 = vadd.f32 %v2044_v3, %v1980_v19 }
 0x3b7   :  { %v2232_v47 = vmax.f32 %v2169_v8, 0.0 }
 0x3b9   :  { %2559 = vmatmul.f32.gmra.mxu3 %v2232_v47 }
 0x3ba   :  { %2500 = vmatmul.f32.gmra.mxu2 %v2239_v31 }
 0x3bb   :  { %v2326_v2 = vpop.f32.mrf.mxu0  ;;  %v2391_v21 = vpop.f32.mrf.mxu1 }
 0x3bc   :  { %v2171_v51 = vpop.f32.mrf.mxu3  ;;  %v2327_v30 = vadd.f32 %v3995_v14, %v2326_v2 }
 0x3bd   :  { %v2172_v39 = vadd.f32 %v2171_v51, %v2107_v4  ;;  %v2109_v18 = vpop.f32.mrf.mxu2 }
 0x3be   :  { %v2110_v53 = vadd.f32 %v2109_v18, %v2045_v42  ;;  %v2392_v62 = vadd.f32 %v2391_v21, %v2327_v30 }
 0x3bf   :  { %v2236_v38 = vmax.f32 %v2172_v39, 0.0 }
 0x3c1   :  { %2562 = vmatmul.f32.gmra.mxu3 %v2236_v38 }
 0x3c3   :  { %v2329_v1 = vpop.f32.mrf.mxu0  ;;  %v2394_v55 = vpop.f32.mrf.mxu1 }
 0x3c4   :  { %v2174_v35 = vpop.f32.mrf.mxu3  ;;  %v2330_v59 = vadd.f32 %v3995_v14, %v2329_v1 }
 0x3c5   :  { %v2175_v40 = vadd.f32 %v2174_v35, %v2110_v53  ;;  %v2456_v26 = vpop.f32.mrf.mxu2 }
 0x3c6   :  { %v2457_v11 = vadd.f32 %v2456_v26, %v2392_v62  ;;  %v2395_v29 = vadd.f32 %v2394_v55, %v2330_v59 }
 0x3c7   :  { %v2240_v33 = vmax.f32 %v2175_v40, 0.0 }
 0x3c9   :  { %2565 = vmatmul.f32.gmra.mxu3 %v2240_v33 }
 0x3cb   :  { %v2332_v22 = vpop.f32.mrf.mxu0  ;;  %v2397_v41 = vpop.f32.mrf.mxu1 }
 0x3cc   :  { %v2333_v17 = vadd.f32 %v3995_v14, %v2332_v22 }
 0x3cd   :  { %v2459_v63 = vpop.f32.mrf.mxu2 }
 0x3ce   :  { %v2460_v44 = vadd.f32 %v2459_v63, %v2395_v29  ;;  %v2398_v15 = vadd.f32 %v2397_v41, %v2333_v17 }
 0x3d3   :  { %v2335_v10 = vpop.f32.mrf.mxu0  ;;  %v2400_v58 = vpop.f32.mrf.mxu1 }
 0x3d4   :  { %v2521_v5 = vpop.f32.mrf.mxu3  ;;  %v2336_v7 = vadd.f32 %v3995_v14, %v2335_v10 }
 0x3d5   :  { %v2522_v23 = vadd.f32 %v2521_v5, %v2457_v11  ;;  %v2462_v37 = vpop.f32.mrf.mxu2 }
 0x3d6   :  { %v2463_v43 = vadd.f32 %v2462_v37, %v2398_v15  ;;  %v2401_v28 = vadd.f32 %v2400_v58, %v2336_v7 }
 0x3d7   :  { %2637 = vtanh.f32 %v2522_v23 }
 0x3db   :  { %v2338_v36 = vpop.f32.mrf.mxu0  ;;  %v2403_v16 = vpop.f32.mrf.mxu1 }
 0x3dc   :  { %v2524_v56 = vpop.f32.mrf.mxu3  ;;  %v2339_v3 = vadd.f32 %v3995_v14, %v2338_v36 }
 0x3dd   :  { %v2638_v60 = vpop.eup %2637  ;;  %v2525_v57 = vadd.f32 %v2524_v56, %v2460_v44  ;;  %v2465_v25 = vpop.f32.mrf.mxu2 }
 0x3de   :  { %2585 = vst [vmem:[#allocation13] sm:$0xff] %v2638_v60  ;;  %v2466_v20 = vadd.f32 %v2465_v25, %v2401_v28  ;;  %v2404_v34 = vadd.f32 %v2403_v16, %v2339_v3 }
 0x3df   :  { %2639 = vtanh.f32 %v2525_v57 }
 0x3e3   :  { %v2341_v9 = vpop.f32.mrf.mxu0  ;;  %v2406_v54 = vpop.f32.mrf.mxu1 }
 0x3e4   :  { %v2527_v48 = vpop.f32.mrf.mxu3  ;;  %v2342_v47 = vadd.f32 %v3995_v14, %v2341_v9 }
 0x3e5   :  { %v2640_v24 = vpop.eup %2639  ;;  %v2528_v6 = vadd.f32 %v2527_v48, %v2463_v43  ;;  %v2468_v61 = vpop.f32.mrf.mxu2 }
 0x3e6   :  { %2586 = vst [vmem:[#allocation13 + $0x8] sm:$0xff] %v2640_v24  ;;  %v2469_v52 = vadd.f32 %v2468_v61, %v2404_v34  ;;  %v2407_v2 = vadd.f32 %v2406_v54, %v2342_v47 }
 0x3e7   :  { %2641 = vtanh.f32 %v2528_v6 }
 0x3eb   :  { %v2344_v27 = vpop.f32.mrf.mxu0  ;;  %v2409_v0 = vpop.f32.mrf.mxu1 }
 0x3ec   :  { %v2530_v13 = vpop.f32.mrf.mxu3  ;;  %v2345_v18 = vadd.f32 %v3995_v14, %v2344_v27 }
 0x3ed   :  { %v2642_v32 = vpop.eup %2641  ;;  %v2531_v50 = vadd.f32 %v2530_v13, %v2466_v20  ;;  %v2471_v49 = vpop.f32.mrf.mxu2 }
 0x3ee   :  { %2587 = vst [vmem:[#allocation13 + $0x10] sm:$0xff] %v2642_v32  ;;  %v2472_v21 = vadd.f32 %v2471_v49, %v2407_v2  ;;  %v2410_v53 = vadd.f32 %v2409_v0, %v2345_v18 }
 0x3ef   :  { %2643 = vtanh.f32 %v2531_v50 }
 0x3f3   :  { %v2347_v45 = vpop.f32.mrf.mxu0  ;;  %v2412_v4 = vpop.f32.mrf.mxu1 }
 0x3f4   :  { %v2533_v8 = vpop.f32.mrf.mxu3  ;;  %v2348_v26 = vadd.f32 %v3995_v14, %v2347_v45 }
 0x3f5   :  { %v2644_v46 = vpop.eup %2643  ;;  %v2534_v31 = vadd.f32 %v2533_v8, %v2469_v52  ;;  %v2474_v12 = vpop.f32.mrf.mxu2 }
 0x3f6   :  { %2588 = vst [vmem:[#allocation13 + $0x18] sm:$0xff] %v2644_v46  ;;  %v2475_v55 = vadd.f32 %v2474_v12, %v2410_v53  ;;  %v2413_v30 = vadd.f32 %v2412_v4, %v2348_v26 }
 0x3f7   :  { %2645 = vtanh.f32 %v2534_v31 }
 0x3fb   :  { %v2350_v51 = vpop.f32.mrf.mxu0  ;;  %v2415_v1 = vpop.f32.mrf.mxu1 }
 0x3fc   :  { %v2536_v19 = vpop.f32.mrf.mxu3  ;;  %v2351_v58 = vadd.f32 %v3995_v14, %v2350_v51 }
 0x3fd   :  { %v2646_v39 = vpop.eup %2645  ;;  %v2537_v38 = vadd.f32 %v2536_v19, %v2472_v21  ;;  %v2477_v42 = vpop.f32.mrf.mxu2 }
 0x3fe   :  { %2589 = vst [vmem:[#allocation13 + $0x20] sm:$0xff] %v2646_v39  ;;  %v2478_v63 = vadd.f32 %v2477_v42, %v2413_v30  ;;  %v2416_v37 = vadd.f32 %v2415_v1, %v2351_v58 }
 0x3ff   :  { %2647 = vtanh.f32 %v2537_v38 }
 0x403   :  { %v2353_v41 = vpop.f32.mrf.mxu0  ;;  %v2418_v62 = vpop.f32.mrf.mxu1 }
 0x404   :  { %v2539_v35 = vpop.f32.mrf.mxu3  ;;  %v2354_v16 = vadd.f32 %v3995_v14, %v2353_v41 }
 0x405   :  { %v2648_v40 = vpop.eup %2647  ;;  %v2540_v33 = vadd.f32 %v2539_v35, %v2475_v55  ;;  %v2480_v22 = vpop.f32.mrf.mxu2 }
 0x406   :  { %2590 = vst [vmem:[#allocation13 + $0x28] sm:$0xff] %v2648_v40  ;;  %v2481_v29 = vadd.f32 %v2480_v22, %v2416_v37  ;;  %v2419_v57 = vadd.f32 %v2418_v62, %v2354_v16 }
 0x407   :  { %2649 = vtanh.f32 %v2540_v33 }
 0x40b   :  { %v2356_v23 = vpop.f32.mrf.mxu0  ;;  %v2421_v56 = vpop.f32.mrf.mxu1 }
 0x40c   :  { %v2542_v11 = vpop.f32.mrf.mxu3  ;;  %v2357_v54 = vadd.f32 %v3995_v14, %v2356_v23 }
 0x40d   :  { %v2650_v10 = vpop.eup %2649  ;;  %v2543_v5 = vadd.f32 %v2542_v11, %v2478_v63  ;;  %v2483_v59 = vpop.f32.mrf.mxu2 }
 0x40e   :  { %2591 = vst [vmem:[#allocation13 + $0x30] sm:$0xff] %v2650_v10  ;;  %v2484_v15 = vadd.f32 %v2483_v59, %v2419_v57  ;;  %v2422_v6 = vadd.f32 %v2421_v56, %v2357_v54 }
 0x40f   :  { %2651 = vtanh.f32 %v2543_v5 }
 0x413   :  { %v2359_v25 = vpop.f32.mrf.mxu0  ;;  %v2424_v24 = vpop.f32.mrf.mxu1 }
 0x414   :  { %v2545_v44 = vpop.f32.mrf.mxu3  ;;  %v2360_v13 = vadd.f32 %v3995_v14, %v2359_v25 }
 0x415   :  { %v2652_v36 = vpop.eup %2651  ;;  %v2546_v60 = vadd.f32 %v2545_v44, %v2481_v29  ;;  %v2486_v17 = vpop.f32.mrf.mxu2 }
 0x416   :  { %2592 = vst [vmem:[#allocation13 + $0x38] sm:$0xff] %v2652_v36  ;;  %v2487_v61 = vadd.f32 %v2486_v17, %v2422_v6  ;;  %v2425_v3 = vadd.f32 %v2424_v24, %v2360_v13 }
 0x417   :  { %2653 = vtanh.f32 %v2546_v60 }
 0x41b   :  { %v2362_v28 = vpop.f32.mrf.mxu0  ;;  %v2427_v0 = vpop.f32.mrf.mxu1 }
 0x41c   :  { %v2548_v43 = vpop.f32.mrf.mxu3  ;;  %v2363_v45 = vadd.f32 %v3995_v14, %v2362_v28 }
 0x41d   :  { %v2654_v9 = vpop.eup %2653  ;;  %v2549_v48 = vadd.f32 %v2548_v43, %v2484_v15  ;;  %v2489_v7 = vpop.f32.mrf.mxu2 }
 0x41e   :  { %2593 = vst [vmem:[#allocation13 + $0x40] sm:$0xff] %v2654_v9  ;;  %v2490_v49 = vadd.f32 %v2489_v7, %v2425_v3  ;;  %v2428_v47 = vadd.f32 %v2427_v0, %v2363_v45 }
 0x41f   :  { %2655 = vtanh.f32 %v2549_v48 }
 0x423   :  { %v2365_v46 = vpop.f32.mrf.mxu0  ;;  %v2430_v31 = vpop.f32.mrf.mxu1 }
 0x424   :  { %v2551_v20 = vpop.f32.mrf.mxu3  ;;  %v2366_v51 = vadd.f32 %v3995_v14, %v2365_v46 }
 0x425   :  { %v2656_v27 = vpop.eup %2655  ;;  %v2552_v32 = vadd.f32 %v2551_v20, %v2487_v61  ;;  %v2492_v50 = vpop.f32.mrf.mxu2 }
 0x426   :  { %2594 = vst [vmem:[#allocation13 + $0x48] sm:$0xff] %v2656_v27  ;;  %v2493_v12 = vadd.f32 %v2492_v50, %v2428_v47  ;;  %v2431_v18 = vadd.f32 %v2430_v31, %v2366_v51 }
 0x427   :  { %2657 = vtanh.f32 %v2552_v32 }
 0x42b   :  { %v2368_v39 = vpop.f32.mrf.mxu0  ;;  %v2433_v35 = vpop.f32.mrf.mxu1 }
 0x42c   :  { %v2554_v34 = vpop.f32.mrf.mxu3  ;;  %v2369_v1 = vadd.f32 %v3995_v14, %v2368_v39 }
 0x42d   :  { %v2658_v52 = vpop.eup %2657  ;;  %v2555_v8 = vadd.f32 %v2554_v34, %v2490_v49  ;;  %v2495_v4 = vpop.f32.mrf.mxu2 }
 0x42e   :  { %2595 = vst [vmem:[#allocation13 + $0x50] sm:$0xff] %v2658_v52  ;;  %v2496_v38 = vadd.f32 %v2495_v4, %v2431_v18  ;;  %v2434_v26 = vadd.f32 %v2433_v35, %v2369_v1 }
 0x42f   :  { %2659 = vtanh.f32 %v2555_v8 }
 0x433   :  { %v2371_v33 = vpop.f32.mrf.mxu0  ;;  %v2436_v11 = vpop.f32.mrf.mxu1 }
 0x434   :  { %v2557_v2 = vpop.f32.mrf.mxu3  ;;  %v2372_v63 = vadd.f32 %v3995_v14, %v2371_v33 }
 0x435   :  { %v2660_v21 = vpop.eup %2659  ;;  %v2558_v19 = vadd.f32 %v2557_v2, %v2493_v12  ;;  %v2498_v40 = vpop.f32.mrf.mxu2 }
 0x436   :  { %2596 = vst [vmem:[#allocation13 + $0x58] sm:$0xff] %v2660_v21  ;;  %v2499_v22 = vadd.f32 %v2498_v40, %v2434_v26  ;;  %v2437_v58 = vadd.f32 %v2436_v11, %v2372_v63 }
 0x437   :  { %2661 = vtanh.f32 %v2558_v19 }
 0x43c   :  { %v2560_v42 = vpop.f32.mrf.mxu3 }
 0x43d   :  { %v2662_v53 = vpop.eup %2661  ;;  %v2561_v55 = vadd.f32 %v2560_v42, %v2496_v38  ;;  %v2501_v10 = vpop.f32.mrf.mxu2 }
 0x43e   :  { %2597 = vst [vmem:[#allocation13 + $0x60] sm:$0xff] %v2662_v53  ;;  %v2502_v5 = vadd.f32 %v2501_v10, %v2437_v58 }
 0x43f   :  { %2663 = vtanh.f32 %v2561_v55 }
 0x444   :  { %v2563_v41 = vpop.f32.mrf.mxu3 }
 0x445   :  { %v2664_v30 = vpop.eup %2663  ;;  %v2564_v62 = vadd.f32 %v2563_v41, %v2499_v22 }
 0x446   :  { %2598 = vst [vmem:[#allocation13 + $0x68] sm:$0xff] %v2664_v30 }
 0x447   :  { %2665 = vtanh.f32 %v2564_v62 }
 0x44c   :  { %v2566_v59 = vpop.f32.mrf.mxu3 }
 0x44d   :  { %v2666_v23 = vpop.eup %2665  ;;  %v2567_v37 = vadd.f32 %v2566_v59, %v2502_v5 }
 0x44e   :  { %2599 = vst [vmem:[#allocation13 + $0x70] sm:$0xff] %v2666_v23 }
 0x44f   :  { %2667 = vtanh.f32 %v2567_v37 }
 0x455   :  { %v2668_v14 = vpop.eup %2667 }
 0x456   :  { %2600 = vst [vmem:[#allocation13 + $0x78] sm:$0xff] %v2668_v14 }
 0x457   :  { %2613 = dma.vmem_to_hbm [thread:$0]  %s2606_s10, 2048, %s2608_s13, [#allocation4], %s2858_s8, %s2858_s8, %s2859_s9  }
 0x458   :  { %2846 = dma.done.wait [#allocation4], 2048  }
 0x459   :  { %2847 = vsyncadd [#allocation4], 4294965248 }
 0x45a   :  { %2618 = vsyncpa [#allocation3], 1 }
 0x45b   :  { %2619 = vsyncpa [#allocation6], 1 }
 0x45c   :  { %2620 = vsyncpa [#allocation9], 1 }
 0x45d   :  { %2621 = vsyncpa [#allocation12], 1 }
 0x45e   :  { %2622 = vsyncpa [#allocation4], 1 }

</bundles_post_ra>
